<compile_context>
chip_gen: v7x
topology: tpu7x:2x2x1
jax: 0.10.0
libtpu: 0.0.40
codegen_flags: <defaults>
</compile_context>

<pallas_src>
import numpy as np

import jax
import jax.numpy as jnp
from jax.experimental import pallas as pl
from jax.experimental.pallas import tpu as pltpu


# ---------------------------------------------------------------------------
# Fused Pallas kernel: conv1 -> relu -> pool1 -> conv2 -> relu -> pool2 ->
# flatten -> fc1 -> relu -> fc2, entirely VMEM resident, batch stacked on
# sublanes (no per-sample loop).
# ---------------------------------------------------------------------------

def _visual_cnn_kernel(xwin_ref,                     # (3, B*26, 28)  shifted row windows
                       c1we_ref, c1wo_ref, c1b_ref,  # (3,28,208) x2, (1,208)
                       c2we_ref, c2wo_ref, c2b_ref,  # (3,208,160) x2, (1,160)
                       selq_ref, selp2_ref, selfc_ref,  # (6,B*11,B*26), (2,B*5,B*11), (5,B,B*5)
                       fc1w_ref, fc1b_ref,           # (5,160,128), (1,128)
                       fc2w_ref, fc2b_ref,           # (128,10), (1,10)
                       o_ref):                       # (B, 10)
    f32 = jnp.float32

    def dot(a, b):
        return jnp.dot(a, b, preferred_element_type=f32)

    # ---- conv1 + bias + ReLU on the whole batch at once.
    # xwin[dy] rows: b*26 + h  (h = output row, 0..25);  columns: input w (28).
    # Output column layout: j*16 + cout with j = pooled-w index (w = 2j / 2j+1).
    x0, x1, x2 = xwin_ref[0], xwin_ref[1], xwin_ref[2]          # (B*26, 28)
    ae = dot(x0, c1we_ref[0]) + dot(x1, c1we_ref[1]) + dot(x2, c1we_ref[2])
    ao = dot(x0, c1wo_ref[0]) + dot(x1, c1wo_ref[1]) + dot(x2, c1wo_ref[2])
    c1b = c1b_ref[...]
    # w-direction 2x2-pool reduction = elementwise max of even/odd slabs.
    hw1 = jnp.maximum(jnp.maximum(ae + c1b, 0.0),
                      jnp.maximum(ao + c1b, 0.0))               # (B*26, 208)

    # h-direction pool-1 reduction, with conv2's 3x3 row shift folded into the
    # block-diagonal 0/1 selectors: q[dy][b*11+i] = pool1[b, i+dy, :].
    q0 = jnp.maximum(dot(selq_ref[0], hw1), dot(selq_ref[1], hw1))  # (B*11, 208)
    q1 = jnp.maximum(dot(selq_ref[2], hw1), dot(selq_ref[3], hw1))
    q2 = jnp.maximum(dot(selq_ref[4], hw1), dot(selq_ref[5], hw1))

    # ---- conv2 + bias + ReLU (same banded even/odd scheme).
    be = dot(q0, c2we_ref[0]) + dot(q1, c2we_ref[1]) + dot(q2, c2we_ref[2])
    bo = dot(q0, c2wo_ref[0]) + dot(q1, c2wo_ref[1]) + dot(q2, c2wo_ref[2])
    c2b = c2b_ref[...]
    hw2 = jnp.maximum(jnp.maximum(be + c2b, 0.0),
                      jnp.maximum(bo + c2b, 0.0))               # (B*11, 160)
    # h-direction pool-2 reduction (11 -> 5, floor).
    p2 = jnp.maximum(dot(selp2_ref[0], hw2), dot(selp2_ref[1], hw2))  # (B*5, 160)

    # ---- fc1 + ReLU.  PyTorch's (c, h, w) flatten order is already folded
    # into a row permutation of fc1w, so we contract the five pooled-h blocks
    # of p2 (each 160 = 5*32 wide, (w, c)-ordered).  selfc[hp] picks row
    # b*5 + hp of p2 for every sample b.
    z = dot(dot(selfc_ref[0], p2), fc1w_ref[0])
    for hp in range(1, 5):
        z = z + dot(dot(selfc_ref[hp], p2), fc1w_ref[hp])
    z = jnp.maximum(z + fc1b_ref[...], 0.0)                     # (B, 128)

    # ---- fc2 -> logits.
    o_ref[...] = dot(z, fc2w_ref[...]) + fc2b_ref[...]          # (B, 10)


# ---------------------------------------------------------------------------
# One-time parameter preparation (plain JAX, outside the kernel):
#   - banded per-kernel-row weight matrices so each conv is a few MXU matmuls,
#   - even/odd output-column split so the w-pooling is an elementwise max,
#   - fc1 rows permuted from PyTorch's (c, h, w) flatten order to (h, w, c).
# ---------------------------------------------------------------------------

def _conv_band_matrices(w_oihw, w_in_size, w_out_size):
    """Banded matrices B[dy] of shape (w_in*cin, w_out, cout) such that
    row-layout input r[w_in*cin + ci] gives (r @ B[dy])[w_out*cout + co] =
    sum_{dx} input[w_out+dx, ci] * W[co, ci, dy, dx]  (valid conv, stride 1)."""
    cout, cin, kh, kw = w_oihw.shape
    delta = jnp.arange(w_in_size)[:, None] - jnp.arange(w_out_size)[None, :]
    valid = (delta >= 0) & (delta < kw)
    dxc = jnp.clip(delta, 0, kw - 1)
    mats = []
    for dy in range(kh):
        tap = jnp.transpose(w_oihw[:, :, dy, :], (2, 1, 0))       # (kw, cin, cout)
        m = jnp.where(valid[:, :, None, None], tap[dxc], 0.0)     # (w_in, w_out, cin, cout)
        m = jnp.transpose(m, (0, 2, 1, 3))                        # (w_in, cin, w_out, cout)
        mats.append(m.reshape(w_in_size * cin, w_out_size, cout))
    return jnp.stack(mats, axis=0)                                # (kh, w_in*cin, w_out, cout)


def prepare_params(params):
    """Convert PyTorch-layout parameters into the fused kernel's operands."""
    # conv1: (16,1,3,3) -> banded (3, 28, 26, 16); split output w into even/odd.
    band1 = _conv_band_matrices(params["w1"], 28, 26)
    c1we = band1[:, :, 0::2, :].reshape(3, 28, 13 * 16)
    c1wo = band1[:, :, 1::2, :].reshape(3, 28, 13 * 16)
    c1b = jnp.tile(params["b1"], 13).reshape(1, 13 * 16)

    # conv2: (32,16,3,3) -> banded (3, 208, 11, 32); floor-pool drops w=10.
    band2 = _conv_band_matrices(params["w2"], 13, 11)
    c2we = band2[:, :, 0:10:2, :].reshape(3, 208, 5 * 32)
    c2wo = band2[:, :, 1:10:2, :].reshape(3, 208, 5 * 32)
    c2b = jnp.tile(params["b2"], 5).reshape(1, 5 * 32)

    # fc1: fold PyTorch's NCHW (c, h, w) flatten order into a row permutation so
    # the kernel can consume pool2 in its natural (h, w, c) order.
    hp, wp, co = jnp.meshgrid(jnp.arange(5), jnp.arange(5), jnp.arange(32),
                              indexing="ij")
    orig = (co * 25 + hp * 5 + wp).reshape(-1)                 # (800,)
    fc1w = params["w3"].T[orig, :].reshape(5, 160, 128)        # per-pooled-h blocks
    fc1b = params["b3"].reshape(1, 128)
    fc2w = params["w4"].T                                      # (128, 10)
    fc2b = params["b4"].reshape(1, 10)

    return dict(c1we=c1we, c1wo=c1wo, c1b=c1b,
                c2we=c2we, c2wo=c2wo, c2b=c2b,
                fc1w=fc1w, fc1b=fc1b, fc2w=fc2w, fc2b=fc2b)


def _make_selectors(batch):
    """Block-diagonal 0/1 selector matrices for the batch-stacked layout.

    selq[2*dy+eo][b*11+i, b*26+2*(i+dy)+eo] = 1  (pool1 + conv2 row shift)
    selp2[eo][b*5+i, b*11+2*i+eo]            = 1  (pool2, floor 11 -> 5)
    selfc[hp][b, b*5+hp]                     = 1  (fc1 per-pooled-h row pick)
    """
    selq = np.zeros((6, batch * 11, batch * 26), np.float32)
    selp2 = np.zeros((2, batch * 5, batch * 11), np.float32)
    selfc = np.zeros((5, batch, batch * 5), np.float32)
    for b in range(batch):
        for dy in range(3):
            for i in range(11):
                selq[2 * dy + 0, b * 11 + i, b * 26 + 2 * (i + dy) + 0] = 1.0
                selq[2 * dy + 1, b * 11 + i, b * 26 + 2 * (i + dy) + 1] = 1.0
        for i in range(5):
            selp2[0, b * 5 + i, b * 11 + 2 * i + 0] = 1.0
            selp2[1, b * 5 + i, b * 11 + 2 * i + 1] = 1.0
        for hp in range(5):
            selfc[hp, b, b * 5 + hp] = 1.0
    return jnp.asarray(selq), jnp.asarray(selp2), jnp.asarray(selfc)


# ---------------------------------------------------------------------------
# Forward pass: a single pallas_call, no grid, everything whole-array in VMEM.
# ---------------------------------------------------------------------------

@jax.jit
def visual_cnn_forward(prep, x_nchw):
    B, C, H, W = x_nchw.shape
    assert (C, H, W) == (1, 28, 28), "classifier (32*5*5) fixes input to 1x28x28"

    # Three shifted row windows of the 28x28 inputs, batch stacked on rows.
    # (Trivial XLA slices/reshapes outside the kernel; the kernel itself never
    #  reshapes or transposes activations.)
    x = x_nchw[:, 0]                                            # (B, 28, 28)
    xwin = jnp.stack([x[:, 0:26, :].reshape(B * 26, 28),
                      x[:, 1:27, :].reshape(B * 26, 28),
                      x[:, 2:28, :].reshape(B * 26, 28)], axis=0)

    selq, selp2, selfc = _make_selectors(B)   # trace-time constants (static B)

    vmem_spec = pl.BlockSpec(memory_space=pltpu.MemorySpace.VMEM)
    return pl.pallas_call(
        _visual_cnn_kernel,
        out_shape=jax.ShapeDtypeStruct((B, 10), jnp.float32),
        in_specs=[vmem_spec] * 14,
        out_specs=vmem_spec,
        # No grid: single invocation, fully VMEM resident (~1.5 MiB at B=2).
        # For very large batches, add a grid over B marked "parallel" so both
        # TensorCores on v7x get work and weights stay resident across steps.
    )(xwin,
      prep["c1we"], prep["c1wo"], prep["c1b"],
      prep["c2we"], prep["c2wo"], prep["c2b"],
      selq, selp2, selfc,
      prep["fc1w"], prep["fc1b"], prep["fc2w"], prep["fc2b"])


# ---------------------------------------------------------------------------
# Parameters (PyTorch layouts) and a pure-JAX reference for verification.
# ---------------------------------------------------------------------------

def init_params(key):
    ks = jax.random.split(key, 8)
    return {
        "w1": 0.1 * jax.random.normal(ks[0], (16, 1, 3, 3), jnp.float32),
        "b1": 0.1 * jax.random.normal(ks[1], (16,), jnp.float32),
        "w2": 0.05 * jax.random.normal(ks[2], (32, 16, 3, 3), jnp.float32),
        "b2": 0.05 * jax.random.normal(ks[3], (32,), jnp.float32),
        "w3": 0.02 * jax.random.normal(ks[4], (128, 32 * 5 * 5), jnp.float32),
        "b3": 0.02 * jax.random.normal(ks[5], (128,), jnp.float32),
        "w4": 0.05 * jax.random.normal(ks[6], (10, 128), jnp.float32),
        "b4": 0.05 * jax.random.normal(ks[7], (10,), jnp.float32),
    }


def reference_forward(params, x):
    """Plain-JAX (XLA) reference matching the PyTorch module exactly."""
    hi = jax.lax.Precision.HIGHEST
    dn = ("NCHW", "OIHW", "NCHW")
    y = jax.lax.conv_general_dilated(x, params["w1"], (1, 1), "VALID",
                                     dimension_numbers=dn, precision=hi)
    y = jax.nn.relu(y + params["b1"][None, :, None, None])
    y = jax.lax.reduce_window(y, -jnp.inf, jax.lax.max,
                              (1, 1, 2, 2), (1, 1, 2, 2), "VALID")
    y = jax.lax.conv_general_dilated(y, params["w2"], (1, 1), "VALID",
                                     dimension_numbers=dn, precision=hi)
    y = jax.nn.relu(y + params["b2"][None, :, None, None])
    y = jax.lax.reduce_window(y, -jnp.inf, jax.lax.max,
                              (1, 1, 2, 2), (1, 1, 2, 2), "VALID")
    y = y.reshape(y.shape[0], -1)                      # NCHW (c, h, w) flatten
    y = jax.nn.relu(jnp.dot(y, params["w3"].T, precision=hi) + params["b3"])
    return jnp.dot(y, params["w4"].T, precision=hi) + params["b4"]


if __name__ == "__main__":
    key = jax.random.PRNGKey(0)
    k_params, k_x = jax.random.split(key)

    params = init_params(k_params)
    x = jax.random.normal(k_x, (2, 1, 28, 28), jnp.float32)

    prep = prepare_params(params)          # one-time weight repacking
    logits = visual_cnn_forward(prep, x)   # single fused Pallas kernel
    jax.block_until_ready(logits)

    assert logits.shape == (2, 10), logits.shape
    assert bool(jnp.all(jnp.isfinite(logits)))

    # Loose tolerance: the kernel's f32 MXU matmuls may use bf16-pass emulation
    # while the reference runs at Precision.HIGHEST; wiring bugs would show up
    # as O(0.1) discrepancies, far above this threshold.
    ref = reference_forward(params, x)
    np.testing.assert_allclose(np.asarray(logits), np.asarray(ref),
                               rtol=5e-2, atol=1e-2)

    print("KERNEL_OK")
</pallas_src>

<mosaic_0001>
module attributes {stable_mosaic.version = 11 : i64} {
  func.func @_visual_cnn_kernel(%arg0: memref<3x52x28xf32, #tpu.memory_space<vmem>>, %arg1: memref<3x28x208xf32, #tpu.memory_space<vmem>>, %arg2: memref<3x28x208xf32, #tpu.memory_space<vmem>>, %arg3: memref<1x208xf32, #tpu.memory_space<vmem>>, %arg4: memref<3x208x160xf32, #tpu.memory_space<vmem>>, %arg5: memref<3x208x160xf32, #tpu.memory_space<vmem>>, %arg6: memref<1x160xf32, #tpu.memory_space<vmem>>, %arg7: memref<6x22x52xf32, #tpu.memory_space<vmem>>, %arg8: memref<2x10x22xf32, #tpu.memory_space<vmem>>, %arg9: memref<5x2x10xf32, #tpu.memory_space<vmem>>, %arg10: memref<5x160x128xf32, #tpu.memory_space<vmem>>, %arg11: memref<1x128xf32, #tpu.memory_space<vmem>>, %arg12: memref<128x10xf32, #tpu.memory_space<vmem>>, %arg13: memref<1x10xf32, #tpu.memory_space<vmem>>, %arg14: memref<2x10xf32, #tpu.memory_space<vmem>>) attributes {dimension_semantics = [], scalar_prefetch = 0 : i64, scratch_operands = 0 : i64, tpu.core_type = #tpu.core_type<tc>} {
    %c0 = arith.constant 0 : index
    %c0_0 = arith.constant 0 : index
    %c0_1 = arith.constant 0 : index
    %0 = vector.load %arg0[%c0, %c0_0, %c0_1] : memref<3x52x28xf32, #tpu.memory_space<vmem>>, vector<1x52x28xf32>
    %1 = vector.shape_cast %0 : vector<1x52x28xf32> to vector<52x28xf32>
    %c1 = arith.constant 1 : index
    %c0_2 = arith.constant 0 : index
    %c0_3 = arith.constant 0 : index
    %2 = vector.load %arg0[%c1, %c0_2, %c0_3] : memref<3x52x28xf32, #tpu.memory_space<vmem>>, vector<1x52x28xf32>
    %3 = vector.shape_cast %2 : vector<1x52x28xf32> to vector<52x28xf32>
    %c2 = arith.constant 2 : index
    %c0_4 = arith.constant 0 : index
    %c0_5 = arith.constant 0 : index
    %4 = vector.load %arg0[%c2, %c0_4, %c0_5] : memref<3x52x28xf32, #tpu.memory_space<vmem>>, vector<1x52x28xf32>
    %5 = vector.shape_cast %4 : vector<1x52x28xf32> to vector<52x28xf32>
    %c0_6 = arith.constant 0 : index
    %c0_7 = arith.constant 0 : index
    %c0_8 = arith.constant 0 : index
    %6 = vector.load %arg1[%c0_6, %c0_7, %c0_8] : memref<3x28x208xf32, #tpu.memory_space<vmem>>, vector<1x28x208xf32>
    %7 = vector.shape_cast %6 : vector<1x28x208xf32> to vector<28x208xf32>
    %cst = arith.constant dense<0.000000e+00> : vector<52x208xf32>
    %8 = tpu.matmul %1, %7, %cst {dimension_numbers = #tpu.dot_dimension_numbers<[1], [0], [0], [1], [0, 0, 1, 1], [], []>} : vector<52x28xf32>, vector<28x208xf32>, vector<52x208xf32> -> vector<52x208xf32>
    %c1_9 = arith.constant 1 : index
    %c0_10 = arith.constant 0 : index
    %c0_11 = arith.constant 0 : index
    %9 = vector.load %arg1[%c1_9, %c0_10, %c0_11] : memref<3x28x208xf32, #tpu.memory_space<vmem>>, vector<1x28x208xf32>
    %10 = vector.shape_cast %9 : vector<1x28x208xf32> to vector<28x208xf32>
    %cst_12 = arith.constant dense<0.000000e+00> : vector<52x208xf32>
    %11 = tpu.matmul %3, %10, %cst_12 {dimension_numbers = #tpu.dot_dimension_numbers<[1], [0], [0], [1], [0, 0, 1, 1], [], []>} : vector<52x28xf32>, vector<28x208xf32>, vector<52x208xf32> -> vector<52x208xf32>
    %12 = arith.addf %8, %11 : vector<52x208xf32>
    %c2_13 = arith.constant 2 : index
    %c0_14 = arith.constant 0 : index
    %c0_15 = arith.constant 0 : index
    %13 = vector.load %arg1[%c2_13, %c0_14, %c0_15] : memref<3x28x208xf32, #tpu.memory_space<vmem>>, vector<1x28x208xf32>
    %14 = vector.shape_cast %13 : vector<1x28x208xf32> to vector<28x208xf32>
    %cst_16 = arith.constant dense<0.000000e+00> : vector<52x208xf32>
    %15 = tpu.matmul %5, %14, %cst_16 {dimension_numbers = #tpu.dot_dimension_numbers<[1], [0], [0], [1], [0, 0, 1, 1], [], []>} : vector<52x28xf32>, vector<28x208xf32>, vector<52x208xf32> -> vector<52x208xf32>
    %16 = arith.addf %12, %15 : vector<52x208xf32>
    %c0_17 = arith.constant 0 : index
    %c0_18 = arith.constant 0 : index
    %c0_19 = arith.constant 0 : index
    %17 = vector.load %arg2[%c0_17, %c0_18, %c0_19] : memref<3x28x208xf32, #tpu.memory_space<vmem>>, vector<1x28x208xf32>
    %18 = vector.shape_cast %17 : vector<1x28x208xf32> to vector<28x208xf32>
    %cst_20 = arith.constant dense<0.000000e+00> : vector<52x208xf32>
    %19 = tpu.matmul %1, %18, %cst_20 {dimension_numbers = #tpu.dot_dimension_numbers<[1], [0], [0], [1], [0, 0, 1, 1], [], []>} : vector<52x28xf32>, vector<28x208xf32>, vector<52x208xf32> -> vector<52x208xf32>
    %c1_21 = arith.constant 1 : index
    %c0_22 = arith.constant 0 : index
    %c0_23 = arith.constant 0 : index
    %20 = vector.load %arg2[%c1_21, %c0_22, %c0_23] : memref<3x28x208xf32, #tpu.memory_space<vmem>>, vector<1x28x208xf32>
    %21 = vector.shape_cast %20 : vector<1x28x208xf32> to vector<28x208xf32>
    %cst_24 = arith.constant dense<0.000000e+00> : vector<52x208xf32>
    %22 = tpu.matmul %3, %21, %cst_24 {dimension_numbers = #tpu.dot_dimension_numbers<[1], [0], [0], [1], [0, 0, 1, 1], [], []>} : vector<52x28xf32>, vector<28x208xf32>, vector<52x208xf32> -> vector<52x208xf32>
    %23 = arith.addf %19, %22 : vector<52x208xf32>
    %c2_25 = arith.constant 2 : index
    %c0_26 = arith.constant 0 : index
    %c0_27 = arith.constant 0 : index
    %24 = vector.load %arg2[%c2_25, %c0_26, %c0_27] : memref<3x28x208xf32, #tpu.memory_space<vmem>>, vector<1x28x208xf32>
    %25 = vector.shape_cast %24 : vector<1x28x208xf32> to vector<28x208xf32>
    %cst_28 = arith.constant dense<0.000000e+00> : vector<52x208xf32>
    %26 = tpu.matmul %5, %25, %cst_28 {dimension_numbers = #tpu.dot_dimension_numbers<[1], [0], [0], [1], [0, 0, 1, 1], [], []>} : vector<52x28xf32>, vector<28x208xf32>, vector<52x208xf32> -> vector<52x208xf32>
    %27 = arith.addf %23, %26 : vector<52x208xf32>
    %c0_29 = arith.constant 0 : index
    %c0_30 = arith.constant 0 : index
    %28 = vector.load %arg3[%c0_29, %c0_30] : memref<1x208xf32, #tpu.memory_space<vmem>>, vector<1x208xf32>
    %29 = vector.broadcast %28 : vector<1x208xf32> to vector<52x208xf32>
    %30 = arith.addf %16, %29 : vector<52x208xf32>
    %cst_31 = arith.constant 0.000000e+00 : f32
    %31 = vector.broadcast %cst_31 : f32 to vector<52x208xf32>
    %32 = arith.maximumf %30, %31 : vector<52x208xf32>
    %33 = vector.broadcast %28 : vector<1x208xf32> to vector<52x208xf32>
    %34 = arith.addf %27, %33 : vector<52x208xf32>
    %cst_32 = arith.constant 0.000000e+00 : f32
    %35 = vector.broadcast %cst_32 : f32 to vector<52x208xf32>
    %36 = arith.maximumf %34, %35 : vector<52x208xf32>
    %37 = arith.maximumf %32, %36 : vector<52x208xf32>
    %c0_33 = arith.constant 0 : index
    %c0_34 = arith.constant 0 : index
    %c0_35 = arith.constant 0 : index
    %38 = vector.load %arg7[%c0_33, %c0_34, %c0_35] : memref<6x22x52xf32, #tpu.memory_space<vmem>>, vector<1x22x52xf32>
    %39 = vector.shape_cast %38 : vector<1x22x52xf32> to vector<22x52xf32>
    %cst_36 = arith.constant dense<0.000000e+00> : vector<22x208xf32>
    %40 = tpu.matmul %39, %37, %cst_36 {dimension_numbers = #tpu.dot_dimension_numbers<[1], [0], [0], [1], [0, 0, 1, 1], [], []>} : vector<22x52xf32>, vector<52x208xf32>, vector<22x208xf32> -> vector<22x208xf32>
    %c1_37 = arith.constant 1 : index
    %c0_38 = arith.constant 0 : index
    %c0_39 = arith.constant 0 : index
    %41 = vector.load %arg7[%c1_37, %c0_38, %c0_39] : memref<6x22x52xf32, #tpu.memory_space<vmem>>, vector<1x22x52xf32>
    %42 = vector.shape_cast %41 : vector<1x22x52xf32> to vector<22x52xf32>
    %cst_40 = arith.constant dense<0.000000e+00> : vector<22x208xf32>
    %43 = tpu.matmul %42, %37, %cst_40 {dimension_numbers = #tpu.dot_dimension_numbers<[1], [0], [0], [1], [0, 0, 1, 1], [], []>} : vector<22x52xf32>, vector<52x208xf32>, vector<22x208xf32> -> vector<22x208xf32>
    %44 = arith.maximumf %40, %43 : vector<22x208xf32>
    %c2_41 = arith.constant 2 : index
    %c0_42 = arith.constant 0 : index
    %c0_43 = arith.constant 0 : index
    %45 = vector.load %arg7[%c2_41, %c0_42, %c0_43] : memref<6x22x52xf32, #tpu.memory_space<vmem>>, vector<1x22x52xf32>
    %46 = vector.shape_cast %45 : vector<1x22x52xf32> to vector<22x52xf32>
    %cst_44 = arith.constant dense<0.000000e+00> : vector<22x208xf32>
    %47 = tpu.matmul %46, %37, %cst_44 {dimension_numbers = #tpu.dot_dimension_numbers<[1], [0], [0], [1], [0, 0, 1, 1], [], []>} : vector<22x52xf32>, vector<52x208xf32>, vector<22x208xf32> -> vector<22x208xf32>
    %c3 = arith.constant 3 : index
    %c0_45 = arith.constant 0 : index
    %c0_46 = arith.constant 0 : index
    %48 = vector.load %arg7[%c3, %c0_45, %c0_46] : memref<6x22x52xf32, #tpu.memory_space<vmem>>, vector<1x22x52xf32>
    %49 = vector.shape_cast %48 : vector<1x22x52xf32> to vector<22x52xf32>
    %cst_47 = arith.constant dense<0.000000e+00> : vector<22x208xf32>
    %50 = tpu.matmul %49, %37, %cst_47 {dimension_numbers = #tpu.dot_dimension_numbers<[1], [0], [0], [1], [0, 0, 1, 1], [], []>} : vector<22x52xf32>, vector<52x208xf32>, vector<22x208xf32> -> vector<22x208xf32>
    %51 = arith.maximumf %47, %50 : vector<22x208xf32>
    %c4 = arith.constant 4 : index
    %c0_48 = arith.constant 0 : index
    %c0_49 = arith.constant 0 : index
    %52 = vector.load %arg7[%c4, %c0_48, %c0_49] : memref<6x22x52xf32, #tpu.memory_space<vmem>>, vector<1x22x52xf32>
    %53 = vector.shape_cast %52 : vector<1x22x52xf32> to vector<22x52xf32>
    %cst_50 = arith.constant dense<0.000000e+00> : vector<22x208xf32>
    %54 = tpu.matmul %53, %37, %cst_50 {dimension_numbers = #tpu.dot_dimension_numbers<[1], [0], [0], [1], [0, 0, 1, 1], [], []>} : vector<22x52xf32>, vector<52x208xf32>, vector<22x208xf32> -> vector<22x208xf32>
    %c5 = arith.constant 5 : index
    %c0_51 = arith.constant 0 : index
    %c0_52 = arith.constant 0 : index
    %55 = vector.load %arg7[%c5, %c0_51, %c0_52] : memref<6x22x52xf32, #tpu.memory_space<vmem>>, vector<1x22x52xf32>
    %56 = vector.shape_cast %55 : vector<1x22x52xf32> to vector<22x52xf32>
    %cst_53 = arith.constant dense<0.000000e+00> : vector<22x208xf32>
    %57 = tpu.matmul %56, %37, %cst_53 {dimension_numbers = #tpu.dot_dimension_numbers<[1], [0], [0], [1], [0, 0, 1, 1], [], []>} : vector<22x52xf32>, vector<52x208xf32>, vector<22x208xf32> -> vector<22x208xf32>
    %58 = arith.maximumf %54, %57 : vector<22x208xf32>
    %c0_54 = arith.constant 0 : index
    %c0_55 = arith.constant 0 : index
    %c0_56 = arith.constant 0 : index
    %59 = vector.load %arg4[%c0_54, %c0_55, %c0_56] : memref<3x208x160xf32, #tpu.memory_space<vmem>>, vector<1x208x160xf32>
    %60 = vector.shape_cast %59 : vector<1x208x160xf32> to vector<208x160xf32>
    %cst_57 = arith.constant dense<0.000000e+00> : vector<22x160xf32>
    %61 = tpu.matmul %44, %60, %cst_57 {dimension_numbers = #tpu.dot_dimension_numbers<[1], [0], [0], [1], [0, 0, 1, 1], [], []>} : vector<22x208xf32>, vector<208x160xf32>, vector<22x160xf32> -> vector<22x160xf32>
    %c1_58 = arith.constant 1 : index
    %c0_59 = arith.constant 0 : index
    %c0_60 = arith.constant 0 : index
    %62 = vector.load %arg4[%c1_58, %c0_59, %c0_60] : memref<3x208x160xf32, #tpu.memory_space<vmem>>, vector<1x208x160xf32>
    %63 = vector.shape_cast %62 : vector<1x208x160xf32> to vector<208x160xf32>
    %cst_61 = arith.constant dense<0.000000e+00> : vector<22x160xf32>
    %64 = tpu.matmul %51, %63, %cst_61 {dimension_numbers = #tpu.dot_dimension_numbers<[1], [0], [0], [1], [0, 0, 1, 1], [], []>} : vector<22x208xf32>, vector<208x160xf32>, vector<22x160xf32> -> vector<22x160xf32>
    %65 = arith.addf %61, %64 : vector<22x160xf32>
    %c2_62 = arith.constant 2 : index
    %c0_63 = arith.constant 0 : index
    %c0_64 = arith.constant 0 : index
    %66 = vector.load %arg4[%c2_62, %c0_63, %c0_64] : memref<3x208x160xf32, #tpu.memory_space<vmem>>, vector<1x208x160xf32>
    %67 = vector.shape_cast %66 : vector<1x208x160xf32> to vector<208x160xf32>
    %cst_65 = arith.constant dense<0.000000e+00> : vector<22x160xf32>
    %68 = tpu.matmul %58, %67, %cst_65 {dimension_numbers = #tpu.dot_dimension_numbers<[1], [0], [0], [1], [0, 0, 1, 1], [], []>} : vector<22x208xf32>, vector<208x160xf32>, vector<22x160xf32> -> vector<22x160xf32>
    %69 = arith.addf %65, %68 : vector<22x160xf32>
    %c0_66 = arith.constant 0 : index
    %c0_67 = arith.constant 0 : index
    %c0_68 = arith.constant 0 : index
    %70 = vector.load %arg5[%c0_66, %c0_67, %c0_68] : memref<3x208x160xf32, #tpu.memory_space<vmem>>, vector<1x208x160xf32>
    %71 = vector.shape_cast %70 : vector<1x208x160xf32> to vector<208x160xf32>
    %cst_69 = arith.constant dense<0.000000e+00> : vector<22x160xf32>
    %72 = tpu.matmul %44, %71, %cst_69 {dimension_numbers = #tpu.dot_dimension_numbers<[1], [0], [0], [1], [0, 0, 1, 1], [], []>} : vector<22x208xf32>, vector<208x160xf32>, vector<22x160xf32> -> vector<22x160xf32>
    %c1_70 = arith.constant 1 : index
    %c0_71 = arith.constant 0 : index
    %c0_72 = arith.constant 0 : index
    %73 = vector.load %arg5[%c1_70, %c0_71, %c0_72] : memref<3x208x160xf32, #tpu.memory_space<vmem>>, vector<1x208x160xf32>
    %74 = vector.shape_cast %73 : vector<1x208x160xf32> to vector<208x160xf32>
    %cst_73 = arith.constant dense<0.000000e+00> : vector<22x160xf32>
    %75 = tpu.matmul %51, %74, %cst_73 {dimension_numbers = #tpu.dot_dimension_numbers<[1], [0], [0], [1], [0, 0, 1, 1], [], []>} : vector<22x208xf32>, vector<208x160xf32>, vector<22x160xf32> -> vector<22x160xf32>
    %76 = arith.addf %72, %75 : vector<22x160xf32>
    %c2_74 = arith.constant 2 : index
    %c0_75 = arith.constant 0 : index
    %c0_76 = arith.constant 0 : index
    %77 = vector.load %arg5[%c2_74, %c0_75, %c0_76] : memref<3x208x160xf32, #tpu.memory_space<vmem>>, vector<1x208x160xf32>
    %78 = vector.shape_cast %77 : vector<1x208x160xf32> to vector<208x160xf32>
    %cst_77 = arith.constant dense<0.000000e+00> : vector<22x160xf32>
    %79 = tpu.matmul %58, %78, %cst_77 {dimension_numbers = #tpu.dot_dimension_numbers<[1], [0], [0], [1], [0, 0, 1, 1], [], []>} : vector<22x208xf32>, vector<208x160xf32>, vector<22x160xf32> -> vector<22x160xf32>
    %80 = arith.addf %76, %79 : vector<22x160xf32>
    %c0_78 = arith.constant 0 : index
    %c0_79 = arith.constant 0 : index
    %81 = vector.load %arg6[%c0_78, %c0_79] : memref<1x160xf32, #tpu.memory_space<vmem>>, vector<1x160xf32>
    %82 = vector.broadcast %81 : vector<1x160xf32> to vector<22x160xf32>
    %83 = arith.addf %69, %82 : vector<22x160xf32>
    %cst_80 = arith.constant 0.000000e+00 : f32
    %84 = vector.broadcast %cst_80 : f32 to vector<22x160xf32>
    %85 = arith.maximumf %83, %84 : vector<22x160xf32>
    %86 = vector.broadcast %81 : vector<1x160xf32> to vector<22x160xf32>
    %87 = arith.addf %80, %86 : vector<22x160xf32>
    %cst_81 = arith.constant 0.000000e+00 : f32
    %88 = vector.broadcast %cst_81 : f32 to vector<22x160xf32>
    %89 = arith.maximumf %87, %88 : vector<22x160xf32>
    %90 = arith.maximumf %85, %89 : vector<22x160xf32>
    %c0_82 = arith.constant 0 : index
    %c0_83 = arith.constant 0 : index
    %c0_84 = arith.constant 0 : index
    %91 = vector.load %arg8[%c0_82, %c0_83, %c0_84] : memref<2x10x22xf32, #tpu.memory_space<vmem>>, vector<1x10x22xf32>
    %92 = vector.shape_cast %91 : vector<1x10x22xf32> to vector<10x22xf32>
    %cst_85 = arith.constant dense<0.000000e+00> : vector<10x160xf32>
    %93 = tpu.matmul %92, %90, %cst_85 {dimension_numbers = #tpu.dot_dimension_numbers<[1], [0], [0], [1], [0, 0, 1, 1], [], []>} : vector<10x22xf32>, vector<22x160xf32>, vector<10x160xf32> -> vector<10x160xf32>
    %c1_86 = arith.constant 1 : index
    %c0_87 = arith.constant 0 : index
    %c0_88 = arith.constant 0 : index
    %94 = vector.load %arg8[%c1_86, %c0_87, %c0_88] : memref<2x10x22xf32, #tpu.memory_space<vmem>>, vector<1x10x22xf32>
    %95 = vector.shape_cast %94 : vector<1x10x22xf32> to vector<10x22xf32>
    %cst_89 = arith.constant dense<0.000000e+00> : vector<10x160xf32>
    %96 = tpu.matmul %95, %90, %cst_89 {dimension_numbers = #tpu.dot_dimension_numbers<[1], [0], [0], [1], [0, 0, 1, 1], [], []>} : vector<10x22xf32>, vector<22x160xf32>, vector<10x160xf32> -> vector<10x160xf32>
    %97 = arith.maximumf %93, %96 : vector<10x160xf32>
    %c0_90 = arith.constant 0 : index
    %c0_91 = arith.constant 0 : index
    %c0_92 = arith.constant 0 : index
    %98 = vector.load %arg9[%c0_90, %c0_91, %c0_92] : memref<5x2x10xf32, #tpu.memory_space<vmem>>, vector<1x2x10xf32>
    %99 = vector.shape_cast %98 : vector<1x2x10xf32> to vector<2x10xf32>
    %cst_93 = arith.constant dense<0.000000e+00> : vector<2x160xf32>
    %100 = tpu.matmul %99, %97, %cst_93 {dimension_numbers = #tpu.dot_dimension_numbers<[1], [0], [0], [1], [0, 0, 1, 1], [], []>} : vector<2x10xf32>, vector<10x160xf32>, vector<2x160xf32> -> vector<2x160xf32>
    %c0_94 = arith.constant 0 : index
    %c0_95 = arith.constant 0 : index
    %c0_96 = arith.constant 0 : index
    %101 = vector.load %arg10[%c0_94, %c0_95, %c0_96] : memref<5x160x128xf32, #tpu.memory_space<vmem>>, vector<1x160x128xf32>
    %102 = vector.shape_cast %101 : vector<1x160x128xf32> to vector<160x128xf32>
    %cst_97 = arith.constant dense<0.000000e+00> : vector<2x128xf32>
    %103 = tpu.matmul %100, %102, %cst_97 {dimension_numbers = #tpu.dot_dimension_numbers<[1], [0], [0], [1], [0, 0, 1, 1], [], []>} : vector<2x160xf32>, vector<160x128xf32>, vector<2x128xf32> -> vector<2x128xf32>
    %c1_98 = arith.constant 1 : index
    %c0_99 = arith.constant 0 : index
    %c0_100 = arith.constant 0 : index
    %104 = vector.load %arg9[%c1_98, %c0_99, %c0_100] : memref<5x2x10xf32, #tpu.memory_space<vmem>>, vector<1x2x10xf32>
    %105 = vector.shape_cast %104 : vector<1x2x10xf32> to vector<2x10xf32>
    %cst_101 = arith.constant dense<0.000000e+00> : vector<2x160xf32>
    %106 = tpu.matmul %105, %97, %cst_101 {dimension_numbers = #tpu.dot_dimension_numbers<[1], [0], [0], [1], [0, 0, 1, 1], [], []>} : vector<2x10xf32>, vector<10x160xf32>, vector<2x160xf32> -> vector<2x160xf32>
    %c1_102 = arith.constant 1 : index
    %c0_103 = arith.constant 0 : index
    %c0_104 = arith.constant 0 : index
    %107 = vector.load %arg10[%c1_102, %c0_103, %c0_104] : memref<5x160x128xf32, #tpu.memory_space<vmem>>, vector<1x160x128xf32>
    %108 = vector.shape_cast %107 : vector<1x160x128xf32> to vector<160x128xf32>
    %cst_105 = arith.constant dense<0.000000e+00> : vector<2x128xf32>
    %109 = tpu.matmul %106, %108, %cst_105 {dimension_numbers = #tpu.dot_dimension_numbers<[1], [0], [0], [1], [0, 0, 1, 1], [], []>} : vector<2x160xf32>, vector<160x128xf32>, vector<2x128xf32> -> vector<2x128xf32>
    %110 = arith.addf %103, %109 : vector<2x128xf32>
    %c2_106 = arith.constant 2 : index
    %c0_107 = arith.constant 0 : index
    %c0_108 = arith.constant 0 : index
    %111 = vector.load %arg9[%c2_106, %c0_107, %c0_108] : memref<5x2x10xf32, #tpu.memory_space<vmem>>, vector<1x2x10xf32>
    %112 = vector.shape_cast %111 : vector<1x2x10xf32> to vector<2x10xf32>
    %cst_109 = arith.constant dense<0.000000e+00> : vector<2x160xf32>
    %113 = tpu.matmul %112, %97, %cst_109 {dimension_numbers = #tpu.dot_dimension_numbers<[1], [0], [0], [1], [0, 0, 1, 1], [], []>} : vector<2x10xf32>, vector<10x160xf32>, vector<2x160xf32> -> vector<2x160xf32>
    %c2_110 = arith.constant 2 : index
    %c0_111 = arith.constant 0 : index
    %c0_112 = arith.constant 0 : index
    %114 = vector.load %arg10[%c2_110, %c0_111, %c0_112] : memref<5x160x128xf32, #tpu.memory_space<vmem>>, vector<1x160x128xf32>
    %115 = vector.shape_cast %114 : vector<1x160x128xf32> to vector<160x128xf32>
    %cst_113 = arith.constant dense<0.000000e+00> : vector<2x128xf32>
    %116 = tpu.matmul %113, %115, %cst_113 {dimension_numbers = #tpu.dot_dimension_numbers<[1], [0], [0], [1], [0, 0, 1, 1], [], []>} : vector<2x160xf32>, vector<160x128xf32>, vector<2x128xf32> -> vector<2x128xf32>
    %117 = arith.addf %110, %116 : vector<2x128xf32>
    %c3_114 = arith.constant 3 : index
    %c0_115 = arith.constant 0 : index
    %c0_116 = arith.constant 0 : index
    %118 = vector.load %arg9[%c3_114, %c0_115, %c0_116] : memref<5x2x10xf32, #tpu.memory_space<vmem>>, vector<1x2x10xf32>
    %119 = vector.shape_cast %118 : vector<1x2x10xf32> to vector<2x10xf32>
    %cst_117 = arith.constant dense<0.000000e+00> : vector<2x160xf32>
    %120 = tpu.matmul %119, %97, %cst_117 {dimension_numbers = #tpu.dot_dimension_numbers<[1], [0], [0], [1], [0, 0, 1, 1], [], []>} : vector<2x10xf32>, vector<10x160xf32>, vector<2x160xf32> -> vector<2x160xf32>
    %c3_118 = arith.constant 3 : index
    %c0_119 = arith.constant 0 : index
    %c0_120 = arith.constant 0 : index
    %121 = vector.load %arg10[%c3_118, %c0_119, %c0_120] : memref<5x160x128xf32, #tpu.memory_space<vmem>>, vector<1x160x128xf32>
    %122 = vector.shape_cast %121 : vector<1x160x128xf32> to vector<160x128xf32>
    %cst_121 = arith.constant dense<0.000000e+00> : vector<2x128xf32>
    %123 = tpu.matmul %120, %122, %cst_121 {dimension_numbers = #tpu.dot_dimension_numbers<[1], [0], [0], [1], [0, 0, 1, 1], [], []>} : vector<2x160xf32>, vector<160x128xf32>, vector<2x128xf32> -> vector<2x128xf32>
    %124 = arith.addf %117, %123 : vector<2x128xf32>
    %c4_122 = arith.constant 4 : index
    %c0_123 = arith.constant 0 : index
    %c0_124 = arith.constant 0 : index
    %125 = vector.load %arg9[%c4_122, %c0_123, %c0_124] : memref<5x2x10xf32, #tpu.memory_space<vmem>>, vector<1x2x10xf32>
    %126 = vector.shape_cast %125 : vector<1x2x10xf32> to vector<2x10xf32>
    %cst_125 = arith.constant dense<0.000000e+00> : vector<2x160xf32>
    %127 = tpu.matmul %126, %97, %cst_125 {dimension_numbers = #tpu.dot_dimension_numbers<[1], [0], [0], [1], [0, 0, 1, 1], [], []>} : vector<2x10xf32>, vector<10x160xf32>, vector<2x160xf32> -> vector<2x160xf32>
    %c4_126 = arith.constant 4 : index
    %c0_127 = arith.constant 0 : index
    %c0_128 = arith.constant 0 : index
    %128 = vector.load %arg10[%c4_126, %c0_127, %c0_128] : memref<5x160x128xf32, #tpu.memory_space<vmem>>, vector<1x160x128xf32>
    %129 = vector.shape_cast %128 : vector<1x160x128xf32> to vector<160x128xf32>
    %cst_129 = arith.constant dense<0.000000e+00> : vector<2x128xf32>
    %130 = tpu.matmul %127, %129, %cst_129 {dimension_numbers = #tpu.dot_dimension_numbers<[1], [0], [0], [1], [0, 0, 1, 1], [], []>} : vector<2x160xf32>, vector<160x128xf32>, vector<2x128xf32> -> vector<2x128xf32>
    %131 = arith.addf %124, %130 : vector<2x128xf32>
    %c0_130 = arith.constant 0 : index
    %c0_131 = arith.constant 0 : index
    %132 = vector.load %arg11[%c0_130, %c0_131] : memref<1x128xf32, #tpu.memory_space<vmem>>, vector<1x128xf32>
    %133 = vector.broadcast %132 : vector<1x128xf32> to vector<2x128xf32>
    %134 = arith.addf %131, %133 : vector<2x128xf32>
    %cst_132 = arith.constant 0.000000e+00 : f32
    %135 = vector.broadcast %cst_132 : f32 to vector<2x128xf32>
    %136 = arith.maximumf %134, %135 : vector<2x128xf32>
    %c0_133 = arith.constant 0 : index
    %c0_134 = arith.constant 0 : index
    %137 = vector.load %arg12[%c0_133, %c0_134] : memref<128x10xf32, #tpu.memory_space<vmem>>, vector<128x10xf32>
    %cst_135 = arith.constant dense<0.000000e+00> : vector<2x10xf32>
    %138 = tpu.matmul %136, %137, %cst_135 {dimension_numbers = #tpu.dot_dimension_numbers<[1], [0], [0], [1], [0, 0, 1, 1], [], []>} : vector<2x128xf32>, vector<128x10xf32>, vector<2x10xf32> -> vector<2x10xf32>
    %c0_136 = arith.constant 0 : index
    %c0_137 = arith.constant 0 : index
    %139 = vector.load %arg13[%c0_136, %c0_137] : memref<1x10xf32, #tpu.memory_space<vmem>>, vector<1x10xf32>
    %140 = vector.broadcast %139 : vector<1x10xf32> to vector<2x10xf32>
    %141 = arith.addf %138, %140 : vector<2x10xf32>
    %c0_138 = arith.constant 0 : index
    %c0_139 = arith.constant 0 : index
    %142 = vector.load %arg14[%c0_138, %c0_139] : memref<2x10xf32, #tpu.memory_space<vmem>>, vector<2x10xf32>
    tpu.vector_store %arg14[%c0_138, %c0_139], %141 {strides = array<i32>} : memref<2x10xf32, #tpu.memory_space<vmem>>, vector<2x10xf32>,
    return
  }
}

</mosaic_0001>

<bundles_post_ra>
// kernel: visual_cnn_forward.1
= control target key start
LH: loop header
LB: loop body
LE: loop exit
PB: predicated region body
PF: predicated region fallthrough
CT: control target
= control target key end

     0   :  { %vm110_vm0 = vcmask 1043456   ;;  %v4937_v7 = vmov 0.0   ;;  %vm4938_vm1 = vmmov 1   ;;  %vm88_vm3 = vcmask 228352   ;;  %s7069_s0 = inlined_call_operand.vmem [shape: f32[3,52,28], index: 0, kind: input, shape index: {}]   ;;  %s7070_s1 = inlined_call_operand.vmem [shape: f32[3,28,208], index: 1, kind: input, shape index: {}]   ;;  %s7071_s2 = inlined_call_operand.vmem [shape: f32[3,28,208], index: 2, kind: input, shape index: {}]   ;;  %s7072_s3 = inlined_call_operand.vmem [shape: f32[1,208], index: 3, kind: input, shape index: {}]   ;;  %s7073_s4 = inlined_call_operand.vmem [shape: f32[3,208,160], index: 4, kind: input, shape index: {}]   ;;  %s7074_s5 = inlined_call_operand.vmem [shape: f32[3,208,160], index: 5, kind: input, shape index: {}]   ;;  %s7075_s6 = inlined_call_operand.vmem [shape: f32[1,160], index: 6, kind: input, shape index: {}]   ;;  %s7076_s7 = inlined_call_operand.vmem [shape: f32[6,22,52], index: 7, kind: input, shape index: {}]   ;;  %s7077_s8 = inlined_call_operand.vmem [shape: f32[2,10,22], index: 8, kind: input, shape index: {}]   ;;  %s7078_s9 = inlined_call_operand.vmem [shape: f32[5,2,10], index: 9, kind: input, shape index: {}]   ;;  %s7079_s10 = inlined_call_operand.vmem [shape: f32[5,160,128], index: 10, kind: input, shape index: {}]   ;;  %s7080_s11 = inlined_call_operand.vmem [shape: f32[1,128], index: 11, kind: input, shape index: {}]   ;;  %s7081_s12 = inlined_call_operand.vmem [shape: f32[128,10], index: 12, kind: input, shape index: {}]   ;;  %s7082_s13 = inlined_call_operand.vmem [shape: f32[1,10], index: 13, kind: input, shape index: {}]   ;;  %s7083_s14 = inlined_call_operand.hbm [shape: f32[2,10], index: 14, kind: output, shape index: {}]  }
   0x1   :  { %v3648_v0 = vld [vmem:[%s7070_s1 + $0x48] sm:$0xff]  ;;  %v3650_v1 = vld [vmem:[%s7070_s1 + $0x58] sm:$0xff]  ;;  %v3647_v5 = vld [vmem:[%s7070_s1 + $0x40] sm:$0xff]  ;;  %181 = vmatprep.mubr.f32.mxu0 %v4937_v7  ;;  %602 = vmatprep.mubr.f32.mxu1 %v4937_v7 }
   0x2   :  { %v3691_v2 = vld [vmem:[%s7071_s2 + $0x48] sm:$0xff]  ;;  %v4172_v3 = vpack.c.bf16 %v3650_v1, %v3648_v0  ;;  %v3693_v4 = vld [vmem:[%s7071_s2 + $0x58] sm:$0xff]  ;;  %v3649_v6 = vld [vmem:[%s7070_s1 + $0x50] sm:$0xff] }
   0x3   :  { %v4202_v8 = vpack.c.bf16 %v3693_v4, %v3691_v2  ;;  %v4174_v9 = vpack.c.bf16 %v3649_v6, %v3647_v5  ;;  %v3690_v10 = vld [vmem:[%s7071_s2 + $0x40] sm:$0xff]  ;;  %v3692_v11 = vld [vmem:[%s7071_s2 + $0x50] sm:$0xff]  ;;  %v3652_v12 = vld [vmem:[%s7070_s1 + $0x68] sm:$0xff] }
   0x4   :  { %4173 = vmatprep.subr.bf16.mxu0 %v4172_v3  ;;  %v4204_v13 = vpack.c.bf16 %v3692_v11, %v3690_v10  ;;  %v3654_v14 = vld [vmem:[%s7070_s1 + $0x78] sm:$0xf]  ;;  %vm5051_vm2 = vmpackc.low %vm110_vm0, %vm4938_vm1  ;;  %v3695_v16 = vld [vmem:[%s7071_s2 + $0x68] sm:$0xff] }
   0x5   :  { %4203 = vmatprep.subr.bf16.mxu1 %v4202_v8  ;;  %4175 = vmatpush1.bf16.msra.mxu0 %v4174_v9  ;;  %v4176_v17 = vpack.c.bf16 %v3654_v14, %v3652_v12  ;;  %v3697_v18 = vld [vmem:[%s7071_s2 + $0x78] sm:$0xf]  ;;  %v3651_v19 = vld [vmem:[%s7070_s1 + $0x60] sm:$0xff]  ;;  %v3653_v20 = vld [vmem:[%s7070_s1 + $0x70] sm:$0xf] }
   0x6   :  { %4205 = vmatpush1.bf16.msra.mxu1 %v4204_v13  ;;  %v4206_v21 = vpack.c.bf16 %v3697_v18, %v3695_v16  ;;  %v4179_v22 = vpack.c.bf16 %v3653_v20, %v3651_v19  ;;  %v3694_v23 = vld [vmem:[%s7071_s2 + $0x60] sm:$0xff]  ;;  %v3696_v24 = vld [vmem:[%s7071_s2 + $0x70] sm:$0xf]  ;;  %v72_v26 = vld [vmem:[%s7070_s1 + $0x8] sm:$0xff] }
   0x7   :  { %4178 = vmatprep.subr.msk.bf16.mxu0 %vm5051_vm2, %v4176_v17  ;;  %v4209_v25 = vpack.c.bf16 %v3696_v24, %v3694_v23  ;;  %v74_v27 = vld [vmem:[%s7070_s1 + $0x18] sm:$0xff]  ;;  %v516_v30 = vld [vmem:[%s7071_s2 + $0x8] sm:$0xff]  ;;  %v71_v33 = vld [vmem:[%s7070_s1] sm:$0xff] }
   0x8   :  { %4208 = vmatprep.subr.msk.bf16.mxu1 %vm5051_vm2, %v4206_v21  ;;  %v3633_v28 = vld [vmem:[%s7069_s0 + $0x38] sm:$0xff]  ;;  %v4182_v29 = vpack.c.bf16 %v74_v27, %v72_v26  ;;  %v73_v34 = vld [vmem:[%s7070_s1 + $0x10] sm:$0xff]  ;;  %v515_v35 = vld [vmem:[%s7071_s2] sm:$0xff] }
   0x9   :  { %v518_v31 = vld [vmem:[%s7071_s2 + $0x18] sm:$0xff]  ;;  %4181 = vmatpush1.bf16.msk.msra.mxu0 %vm5051_vm2, %v4179_v22  ;;  %v4184_v36 = vpack.c.bf16 %v73_v34, %v71_v33  ;;  %v517_v37 = vld [vmem:[%s7071_s2 + $0x10] sm:$0xff]  ;;  %v3634_v38 = vld [vmem:[%s7069_s0 + $0x40] sm:$0xff] }
   0xa   :  { %v4212_v32 = vpack.c.bf16 %v518_v31, %v516_v30  ;;  %4211 = vmatpush1.bf16.msk.msra.mxu1 %vm5051_vm2, %v4209_v25  ;;  %4183 = vmatprep.subr.bf16.mxu0 %v4182_v29  ;;  %v4214_v39 = vpack.c.bf16 %v517_v37, %v515_v35  ;;  %v76_v40 = vld [vmem:[%s7070_s1 + $0x28] sm:$0xff]  ;;  %v78_v41 = vld [vmem:[%s7070_s1 + $0x38] sm:$0xf]  ;;  %v75_v45 = vld [vmem:[%s7070_s1 + $0x20] sm:$0xff] }
   0xb   :  { %v4186_v42 = vpack.c.bf16 %v78_v41, %v76_v40  ;;  %v520_v43 = vld [vmem:[%s7071_s2 + $0x28] sm:$0xff]  ;;  %v522_v44 = vld [vmem:[%s7071_s2 + $0x38] sm:$0xf]  ;;  %v77_v47 = vld [vmem:[%s7070_s1 + $0x30] sm:$0xf] }
   0xc   :  { %4213 = vmatprep.subr.bf16.mxu1 %v4212_v32  ;;  %3657 = vmatmul.mubr.msk.f32.vlgmr.msra.gmra.mrb[0].mxu0 %vm88_vm3, %v3633_v28  ;;  %v4216_v46 = vpack.c.bf16 %v522_v44, %v520_v43  ;;  %v519_v48 = vld [vmem:[%s7071_s2 + $0x20] sm:$0xff]  ;;  %v521_v49 = vld [vmem:[%s7071_s2 + $0x30] sm:$0xf]  ;;  %v4189_v50 = vpack.c.bf16 %v77_v47, %v75_v45  ;;  %v3674_v52 = vld [vmem:[%s7070_s1 + $0x88] sm:$0xff] }
   0xd   :  { %3700 = vmatmul.mubr.msk.f32.vlgmr.msra.gmra.mrb[0].mxu1 %vm88_vm3, %v3633_v28  ;;  %187 = vmatprep.mubr.f32.mxu0 %v4937_v7  ;;  %v4219_v51 = vpack.c.bf16 %v521_v49, %v519_v48  ;;  %v3676_v53 = vld [vmem:[%s7070_s1 + $0x98] sm:$0xff]  ;;  %v3717_v54 = vld [vmem:[%s7071_s2 + $0x88] sm:$0xff]  ;;  %v3636_v59 = vld [vmem:[%s7069_s0 + $0x50] sm:$0xff] }
   0xe   :  { %608 = vmatprep.mubr.f32.mxu1 %v4937_v7  ;;  %4185 = vmatpush1.bf16.msra.mxu0 %v4184_v36  ;;  %v4192_v55 = vpack.c.bf16 %v3676_v53, %v3674_v52  ;;  %v3719_v56 = vld [vmem:[%s7071_s2 + $0x98] sm:$0xff]  ;;  %v3635_v57 = vld [vmem:[%s7069_s0 + $0x48] sm:$0xff] }
   0xf   :  { %4215 = vmatpush1.bf16.msra.mxu1 %v4214_v39  ;;  %4188 = vmatprep.subr.msk.bf16.mxu0 %vm5051_vm2, %v4186_v42  ;;  %v4222_v58 = vpack.c.bf16 %v3719_v56, %v3717_v54 }
  0x10   :  { %3658 = vmatmul.mubr.msk.f32.gmra.mrb[2].mxu0 %vm88_vm3, %v3634_v38  ;;  %4218 = vmatprep.subr.msk.bf16.mxu1 %vm5051_vm2, %v4216_v46 }
  0x11   :  { %3701 = vmatmul.mubr.msk.f32.gmra.mrb[2].mxu1 %vm88_vm3, %v3634_v38  ;;  %193 = vmatprep.mubr.f32.mxu0 %v4937_v7 }
  0x12   :  { %614 = vmatprep.mubr.f32.mxu1 %v4937_v7  ;;  %4191 = vmatpush1.bf16.msk.msra.mxu0 %vm5051_vm2, %v4189_v50 }
  0x13   :  { %4221 = vmatpush1.bf16.msk.msra.mxu1 %vm5051_vm2, %v4219_v51  ;;  %4193 = vmatprep.subr.bf16.mxu0 %v4192_v55 }
  0x14   :  { %3659 = vmatmul.mubr.msk.f32.gmra.mrb[4].mxu0 %vm88_vm3, %v3635_v57  ;;  %4223 = vmatprep.subr.bf16.mxu1 %v4222_v58 }
  0x15   :  { %3702 = vmatmul.mubr.msk.f32.gmra.mrb[4].mxu1 %vm88_vm3, %v3635_v57  ;;  %199 = vmatprep.mubr.f32.mxu0 %v4937_v7 }
  0x16   :  { %620 = vmatprep.mubr.f32.mxu1 %v4937_v7 }
  0x18   :  { %3660 = vmatmul.mubr.msk.f32.gmra.mrb[6].mxu0 %vm88_vm3, %v3636_v59 }
  0x19   :  { %19 = vsyncpa [#allocation3], 0  ;;  %3703 = vmatmul.mubr.msk.f32.gmra.mrb[6].mxu1 %vm88_vm3, %v3636_v59  ;;  %205 = vmatprep.mubr.f32.mxu0 %v4937_v7  ;;  %v3637_v60 = vld [vmem:[%s7069_s0 + $0x58] sm:$0xff]  ;;  %v3638_v61 = vld [vmem:[%s7069_s0 + $0x60] sm:$0xff]  ;;  %v896_v32 = vlaneseq  ;;  %vm979_vm4 = vcmask 424960   ;;  %vm1681_vm5 = vcmask 654336  }
  0x1a   :  { %626 = vmatprep.mubr.f32.mxu1 %v4937_v7  ;;  %v3639_v62 = vld [vmem:[%s7069_s0 + $0x68] sm:$0xf]  ;;  %v3673_v63 = vld [vmem:[%s7070_s1 + $0x80] sm:$0xff]  ;;  %v3675_v0 = vld [vmem:[%s7070_s1 + $0x90] sm:$0xff]  ;;  %vm2481_vm6 = vcmask 1045504   ;;  %vm2474_vm7 = vcmask 179200  }
  0x1b   :  { %v3716_v1 = vld [vmem:[%s7071_s2 + $0x80] sm:$0xff]  ;;  %v3718_v2 = vld [vmem:[%s7071_s2 + $0x90] sm:$0xff]  ;;  %v3678_v3 = vld [vmem:[%s7070_s1 + $0xa8] sm:$0xff]  ;;  %v4194_v9 = vpack.c.bf16 %v3675_v0, %v3673_v63  ;;  %v5340_v33 = vshrl.u32 %v896_v32, 7  ;;  %vm2660_vm8 = vcmask 1041408   ;;  %vm2656_vm10 = vcmask 80896  }
  0x1c   :  { %3661 = vmatmul.mubr.msk.f32.gmra.mrb[8].mxu0 %vm88_vm3, %v3637_v60  ;;  %v3680_v4 = vld [vmem:[%s7070_s1 + $0xb8] sm:$0xf]  ;;  %v48_v5 = vld [vmem:[%s7069_s0] sm:$0xff]  ;;  %v3721_v6 = vld [vmem:[%s7071_s2 + $0xa8] sm:$0xff]  ;;  %v4224_v10 = vpack.c.bf16 %v3718_v2, %v3716_v1  ;;  %vm2855_vm11 = vcmask 261120   ;;  %vm4940_vm12 = vmmov 0  }
  0x1d   :  { %3704 = vmatmul.mubr.msk.f32.gmra.mrb[8].mxu1 %vm88_vm3, %v3637_v60  ;;  %211 = vmatprep.mubr.f32.mxu0 %v4937_v7  ;;  %v3723_v8 = vld [vmem:[%s7071_s2 + $0xb8] sm:$0xf]  ;;  %v4196_v11 = vpack.c.bf16 %v3680_v4, %v3678_v3  ;;  %v3677_v12 = vld [vmem:[%s7070_s1 + $0xa0] sm:$0xff]  ;;  %v3679_v13 = vld [vmem:[%s7070_s1 + $0xb0] sm:$0xf]  ;;  %v898_v34 = vsub.s32 0, %v5340_v33 }
  0x1e   :  { %632 = vmatprep.mubr.f32.mxu1 %v4937_v7  ;;  %v4226_v14 = vpack.c.bf16 %v3723_v8, %v3721_v6  ;;  %v3720_v16 = vld [vmem:[%s7071_s2 + $0xa0] sm:$0xff]  ;;  %v3722_v17 = vld [vmem:[%s7071_s2 + $0xb0] sm:$0xf]  ;;  %v49_v18 = vld [vmem:[%s7069_s0 + $0x8] sm:$0xff]  ;;  %v4199_v19 = vpack.c.bf16 %v3679_v13, %v3677_v12  ;;  %v902_v36 = vsub.s32 1, %v5340_v33  ;;  %vm3617_vm13 = vcmask 74752  }
  0x1f   :  { %v4229_v20 = vpack.c.bf16 %v3722_v17, %v3720_v16  ;;  %v50_v21 = vld [vmem:[%s7069_s0 + $0x10] sm:$0xff]  ;;  %v51_v22 = vld [vmem:[%s7069_s0 + $0x18] sm:$0xff]  ;;  %v52_v15 = vld [vmem:[%s7069_s0 + $0x20] sm:$0xff] }
  0x20   :  { %3662 = vmatmul.mubr.msk.f32.gmra.mrb[10].mxu0 %vm88_vm3, %v3638_v61  ;;  %v53_v23 = vld [vmem:[%s7069_s0 + $0x28] sm:$0xff]  ;;  %v54_v24 = vld [vmem:[%s7069_s0 + $0x30] sm:$0xf]  ;;  %v3641_v26 = vld [vmem:[%s7069_s0 + $0x78] sm:$0xff] }
  0x21   :  { %3705 = vmatmul.mubr.msk.f32.gmra.mrb[10].mxu1 %vm88_vm3, %v3638_v61  ;;  %217 = vmatprep.mubr.f32.mxu0 %v4937_v7  ;;  %v3640_v25 = vld [vmem:[%s7069_s0 + $0x70] sm:$0xff]  ;;  %v3642_v27 = vld [vmem:[%s7069_s0 + $0x80] sm:$0xff]  ;;  %v3643_v28 = vld [vmem:[%s7069_s0 + $0x88] sm:$0xff] }
  0x22   :  { %638 = vmatprep.mubr.f32.mxu1 %v4937_v7  ;;  %v3644_v29 = vld [vmem:[%s7069_s0 + $0x90] sm:$0xff]  ;;  %v3645_v30 = vld [vmem:[%s7069_s0 + $0x98] sm:$0xff]  ;;  %v3646_v31 = vld [vmem:[%s7069_s0 + $0xa0] sm:$0xf] }
  0x23   :  { %v894_v35 = vld [vmem:[%s7072_s3] sm:$0x3]  ;;  %vm6577_vm9 = vmpackc.low %vm2660_vm8, %vm4938_vm1 }
  0x24   :  { %3663 = vmatmul.mubr.msk.f32.gmra.mrb[12].mxu0 %vm88_vm3, %v3639_v62  ;;  %v5349_v37 = vrot.slane %v894_v35, %v898_v34  ;;  %v5353_v38 = vrot.slane %v894_v35, %v902_v36 }
  0x25   :  { %3706 = vmatmul.mubr.msk.f32.gmra.mrb[12].mxu1 %vm88_vm3, %v3639_v62  ;;  %315 = vmatprep.mubr.f32.mxu0 %v4937_v7 }
  0x26   :  { %715 = vmatprep.mubr.f32.mxu1 %v4937_v7 }
  0x28   :  { %3666 = vmatmul.mubr.msk.f32.vlgmr.msra.gmra.mrb[0].mxu0 %vm88_vm3, %v48_v5 }
  0x29   :  { %3709 = vmatmul.mubr.msk.f32.vlgmr.msra.gmra.mrb[0].mxu1 %vm88_vm3, %v48_v5  ;;  %321 = vmatprep.mubr.f32.mxu0 %v4937_v7 }
  0x2a   :  { %721 = vmatprep.mubr.f32.mxu1 %v4937_v7  ;;  %4195 = vmatpush1.bf16.msra.mxu0 %v4194_v9 }
  0x2b   :  { %4225 = vmatpush1.bf16.msra.mxu1 %v4224_v10  ;;  %4198 = vmatprep.subr.msk.bf16.mxu0 %vm5051_vm2, %v4196_v11 }
  0x2c   :  { %3667 = vmatmul.mubr.msk.f32.gmra.mrb[2].mxu0 %vm88_vm3, %v49_v18  ;;  %4228 = vmatprep.subr.msk.bf16.mxu1 %vm5051_vm2, %v4226_v14 }
  0x2d   :  { %3710 = vmatmul.mubr.msk.f32.gmra.mrb[2].mxu1 %vm88_vm3, %v49_v18  ;;  %327 = vmatprep.mubr.f32.mxu0 %v4937_v7 }
  0x2e   :  { %727 = vmatprep.mubr.f32.mxu1 %v4937_v7  ;;  %4201 = vmatpush1.bf16.msk.msra.mxu0 %vm5051_vm2, %v4199_v19 }
  0x2f   :  { %4231 = vmatpush1.bf16.msk.msra.mxu1 %vm5051_vm2, %v4229_v20 }
  0x30   :  { %3668 = vmatmul.mubr.msk.f32.gmra.mrb[4].mxu0 %vm88_vm3, %v50_v21 }
  0x31   :  { %3711 = vmatmul.mubr.msk.f32.gmra.mrb[4].mxu1 %vm88_vm3, %v50_v21  ;;  %333 = vmatprep.mubr.f32.mxu0 %v4937_v7 }
  0x32   :  { %733 = vmatprep.mubr.f32.mxu1 %v4937_v7 }
  0x34   :  { %3669 = vmatmul.mubr.msk.f32.gmra.mrb[6].mxu0 %vm88_vm3, %v51_v22 }
  0x35   :  { %3712 = vmatmul.mubr.msk.f32.gmra.mrb[6].mxu1 %vm88_vm3, %v51_v22  ;;  %339 = vmatprep.mubr.f32.mxu0 %v4937_v7 }
  0x36   :  { %739 = vmatprep.mubr.f32.mxu1 %v4937_v7 }
  0x38   :  { %3670 = vmatmul.mubr.msk.f32.gmra.mrb[8].mxu0 %vm88_vm3, %v52_v15 }
  0x39   :  { %3713 = vmatmul.mubr.msk.f32.gmra.mrb[8].mxu1 %vm88_vm3, %v52_v15  ;;  %345 = vmatprep.mubr.f32.mxu0 %v4937_v7 }
  0x3a   :  { %745 = vmatprep.mubr.f32.mxu1 %v4937_v7 }
  0x3c   :  { %3671 = vmatmul.mubr.msk.f32.gmra.mrb[10].mxu0 %vm88_vm3, %v53_v23 }
  0x3d   :  { %3714 = vmatmul.mubr.msk.f32.gmra.mrb[10].mxu1 %vm88_vm3, %v53_v23  ;;  %351 = vmatprep.mubr.f32.mxu0 %v4937_v7 }
  0x3e   :  { %751 = vmatprep.mubr.f32.mxu1 %v4937_v7 }
  0x40   :  { %3672 = vmatmul.mubr.msk.f32.gmra.mrb[12].mxu0 %vm88_vm3, %v54_v24 }
  0x41   :  { %3715 = vmatmul.mubr.msk.f32.gmra.mrb[12].mxu1 %vm88_vm3, %v54_v24  ;;  %458 = vmatprep.mubr.f32.mxu0 %v4937_v7 }
  0x42   :  { %837 = vmatprep.mubr.f32.mxu1 %v4937_v7 }
  0x44   :  { %3683 = vmatmul.mubr.msk.f32.vlgmr.msra.gmra.mrb[0].mxu0 %vm88_vm3, %v3640_v25 }
  0x45   :  { %3726 = vmatmul.mubr.msk.f32.vlgmr.msra.gmra.mrb[0].mxu1 %vm88_vm3, %v3640_v25  ;;  %464 = vmatprep.mubr.f32.mxu0 %v4937_v7 }
  0x46   :  { %843 = vmatprep.mubr.f32.mxu1 %v4937_v7 }
  0x48   :  { %3684 = vmatmul.mubr.msk.f32.gmra.mrb[2].mxu0 %vm88_vm3, %v3641_v26 }
  0x49   :  { %3727 = vmatmul.mubr.msk.f32.gmra.mrb[2].mxu1 %vm88_vm3, %v3641_v26  ;;  %470 = vmatprep.mubr.f32.mxu0 %v4937_v7 }
  0x4a   :  { %849 = vmatprep.mubr.f32.mxu1 %v4937_v7 }
  0x4c   :  { %3685 = vmatmul.mubr.msk.f32.gmra.mrb[4].mxu0 %vm88_vm3, %v3642_v27 }
  0x4d   :  { %3728 = vmatmul.mubr.msk.f32.gmra.mrb[4].mxu1 %vm88_vm3, %v3642_v27  ;;  %476 = vmatprep.mubr.f32.mxu0 %v4937_v7 }
  0x4e   :  { %855 = vmatprep.mubr.f32.mxu1 %v4937_v7 }
  0x50   :  { %3686 = vmatmul.mubr.msk.f32.gmra.mrb[6].mxu0 %vm88_vm3, %v3643_v28 }
  0x51   :  { %3729 = vmatmul.mubr.msk.f32.gmra.mrb[6].mxu1 %vm88_vm3, %v3643_v28  ;;  %482 = vmatprep.mubr.f32.mxu0 %v4937_v7 }
  0x52   :  { %861 = vmatprep.mubr.f32.mxu1 %v4937_v7 }
  0x54   :  { %3687 = vmatmul.mubr.msk.f32.gmra.mrb[8].mxu0 %vm88_vm3, %v3644_v29 }
  0x55   :  { %3730 = vmatmul.mubr.msk.f32.gmra.mrb[8].mxu1 %vm88_vm3, %v3644_v29  ;;  %488 = vmatprep.mubr.f32.mxu0 %v4937_v7 }
  0x56   :  { %867 = vmatprep.mubr.f32.mxu1 %v4937_v7 }
  0x58   :  { %3688 = vmatmul.mubr.msk.f32.gmra.mrb[10].mxu0 %vm88_vm3, %v3645_v30 }
  0x59   :  { %3731 = vmatmul.mubr.msk.f32.gmra.mrb[10].mxu1 %vm88_vm3, %v3645_v30  ;;  %494 = vmatprep.mubr.f32.mxu0 %v4937_v7 }
  0x5a   :  { %873 = vmatprep.mubr.f32.mxu1 %v4937_v7 }
  0x5c   :  { %3689 = vmatmul.mubr.msk.f32.gmra.mrb[12].mxu0 %vm88_vm3, %v3646_v31 }
  0x5d   :  { %3732 = vmatmul.mubr.msk.f32.gmra.mrb[12].mxu1 %vm88_vm3, %v3646_v31  ;;  %1059 = vmatprep.mubr.f32.mxu0 %v4937_v7 }
  0x5e   :  { %1155 = vmatprep.mubr.f32.mxu1 %v4937_v7 }
 0x117   :  { %v460_v39 = vpop.f32.mrb[0].mxu0 }
 0x118   :  { %v906_v40 = vadd.f32 %v5349_v37, %v460_v39  ;;  %v839_v41 = vpop.f32.mrb[0].mxu1  ;;  %v462_v42 = vpop.f32.mrb[1].mxu0 }
 0x119   :  { %v934_v43 = vadd.f32 %v5349_v37, %v839_v41  ;;  %v907_v44 = vadd.f32 %v5353_v38, %v462_v42  ;;  %v841_v45 = vpop.f32.mrb[1].mxu1 }
 0x11a   :  { %v920_v46 = vmax.f32 %v906_v40, 0.0  ;;  %v935_v47 = vadd.f32 %v5353_v38, %v841_v45 }
 0x11b   :  { %v948_v48 = vmax.f32 %v934_v43, 0.0  ;;  %v921_v49 = vmax.f32 %v907_v44, 0.0  ;;  %v466_v50 = vpop.f32.mrb[2].mxu0 }
 0x11c   :  { %v949_v51 = vmax.f32 %v935_v47, 0.0  ;;  %v908_v52 = vadd.f32 %v5349_v37, %v466_v50  ;;  %v845_v53 = vpop.f32.mrb[2].mxu1  ;;  %v468_v54 = vpop.f32.mrb[3].mxu0 }
 0x11d   :  { %v962_v55 = vmax.f32 %v920_v46, %v948_v48  ;;  %v936_v56 = vadd.f32 %v5349_v37, %v845_v53  ;;  %v909_v57 = vadd.f32 %v5353_v38, %v468_v54  ;;  %v847_v58 = vpop.f32.mrb[3].mxu1 }
 0x11e   :  { %v963_v59 = vmax.f32 %v921_v49, %v949_v51  ;;  %v922_v60 = vmax.f32 %v908_v52, 0.0  ;;  %v937_v61 = vadd.f32 %v5353_v38, %v847_v58 }
 0x11f   :  { %v950_v62 = vmax.f32 %v936_v56, 0.0  ;;  %v923_v63 = vmax.f32 %v909_v57, 0.0  ;;  %v472_v0 = vpop.f32.mrb[4].mxu0 }
 0x120   :  { %v951_v1 = vmax.f32 %v937_v61, 0.0  ;;  %v910_v2 = vadd.f32 %v5349_v37, %v472_v0  ;;  %v851_v3 = vpop.f32.mrb[4].mxu1  ;;  %v474_v4 = vpop.f32.mrb[5].mxu0 }
 0x121   :  { %v964_v5 = vmax.f32 %v922_v60, %v950_v62  ;;  %v938_v6 = vadd.f32 %v5349_v37, %v851_v3  ;;  %v911_v8 = vadd.f32 %v5353_v38, %v474_v4  ;;  %v853_v9 = vpop.f32.mrb[5].mxu1 }
 0x122   :  { %v965_v10 = vmax.f32 %v923_v63, %v951_v1  ;;  %v924_v11 = vmax.f32 %v910_v2, 0.0  ;;  %v939_v12 = vadd.f32 %v5353_v38, %v853_v9 }
 0x123   :  { %v5367_v13 = vpack.c.bf16 %v964_v5, %v962_v55  ;;  %v952_v14 = vmax.f32 %v938_v6, 0.0  ;;  %v925_v16 = vmax.f32 %v911_v8, 0.0  ;;  %v478_v17 = vpop.f32.mrb[6].mxu0 }
 0x124   :  { %v5369_v18 = vpack.c.bf16 %v965_v10, %v963_v59  ;;  %v953_v19 = vmax.f32 %v939_v12, 0.0  ;;  %v912_v20 = vadd.f32 %v5349_v37, %v478_v17  ;;  %v857_v21 = vpop.f32.mrb[6].mxu1  ;;  %v480_v22 = vpop.f32.mrb[7].mxu0 }
 0x125   :  { %v966_v15 = vmax.f32 %v924_v11, %v952_v14  ;;  %v940_v23 = vadd.f32 %v5349_v37, %v857_v21  ;;  %v913_v24 = vadd.f32 %v5353_v38, %v480_v22  ;;  %v859_v25 = vpop.f32.mrb[7].mxu1 }
 0x126   :  { %v967_v26 = vmax.f32 %v925_v16, %v953_v19  ;;  %v926_v27 = vmax.f32 %v912_v20, 0.0  ;;  %v941_v28 = vadd.f32 %v5353_v38, %v859_v25  ;;  %4233 = vmatprep.subr.bf16.mxu0 %v5369_v18  ;;  %4245 = vmatprep.subr.bf16.mxu1 %v5369_v18  ;;  %v3739_v25 = vld [vmem:[%s7076_s7 + $0x20] sm:$0xff] }
 0x127   :  { %v954_v29 = vmax.f32 %v940_v23, 0.0  ;;  %v927_v30 = vmax.f32 %v913_v24, 0.0  ;;  %4235 = vmatpush1.bf16.msra.mxu0 %v5367_v13  ;;  %4247 = vmatpush1.bf16.msra.mxu1 %v5367_v13  ;;  %v484_v31 = vpop.f32.mrb[8].mxu0  ;;  %v977_v24 = vld [vmem:[%s7076_s7 + $0x8] sm:$0xff] }
 0x128   :  { %v955_v32 = vmax.f32 %v941_v28, 0.0  ;;  %v914_v35 = vadd.f32 %v5349_v37, %v484_v31  ;;  %v863_v39 = vpop.f32.mrb[8].mxu1  ;;  %v486_v40 = vpop.f32.mrb[9].mxu0  ;;  %v3746_v28 = vld [vmem:[%s7076_s7 + $0x30] sm:$0xff] }
 0x129   :  { %v968_v41 = vmax.f32 %v926_v27, %v954_v29  ;;  %v942_v42 = vadd.f32 %v5349_v37, %v863_v39  ;;  %v915_v43 = vadd.f32 %v5353_v38, %v486_v40  ;;  %v865_v44 = vpop.f32.mrb[9].mxu1  ;;  %v3740_v27 = vld [vmem:[%s7076_s7 + $0x28] sm:$0x3f]  ;;  %v3755_v31 = vld [vmem:[%s7076_s7 + $0x50] sm:$0xff]  ;;  %v3894_v40 = vld [vmem:[%s7074_s5 + $0x1b8] sm:$0xff] }
 0x12a   :  { %v969_v45 = vmax.f32 %v927_v30, %v955_v32  ;;  %v928_v46 = vmax.f32 %v914_v35, 0.0  ;;  %v943_v47 = vadd.f32 %v5353_v38, %v865_v44  ;;  %v3754_v29 = vld [vmem:[%s7076_s7 + $0x48] sm:$0xff]  ;;  %v3747_v30 = vld [vmem:[%s7076_s7 + $0x38] sm:$0xff]  ;;  %v3893_v44 = vld [vmem:[%s7074_s5 + $0x1b0] sm:$0xff] }
 0x12b   :  { %v5383_v48 = vpack.c.bf16 %v968_v41, %v966_v15  ;;  %v956_v49 = vmax.f32 %v942_v42, 0.0  ;;  %v929_v50 = vmax.f32 %v915_v43, 0.0  ;;  %v490_v51 = vpop.f32.mrb[10].mxu0  ;;  %v3779_v32 = vld [vmem:[%s7073_s4 + $0x1a8] sm:$0xff]  ;;  %v3781_v35 = vld [vmem:[%s7073_s4 + $0x1b8] sm:$0xff]  ;;  %v3778_v41 = vld [vmem:[%s7073_s4 + $0x1a0] sm:$0xff] }
 0x12c   :  { %v5385_v52 = vpack.c.bf16 %v969_v45, %v967_v26  ;;  %v957_v53 = vmax.f32 %v943_v47, 0.0  ;;  %v916_v54 = vadd.f32 %v5349_v37, %v490_v51  ;;  %v869_v55 = vpop.f32.mrb[10].mxu1  ;;  %v492_v56 = vpop.f32.mrb[11].mxu0  ;;  %v978_v26 = vld [vmem:[%s7076_s7 + $0x10] sm:$0x3f]  ;;  %v3892_v39 = vld [vmem:[%s7074_s5 + $0x1a8] sm:$0xff]  ;;  %v4304_v47 = vpack.c.bf16 %v3781_v35, %v3779_v32 }
 0x12d   :  { %v970_v57 = vmax.f32 %v928_v46, %v956_v49  ;;  %v944_v58 = vadd.f32 %v5349_v37, %v869_v55  ;;  %v917_v59 = vadd.f32 %v5353_v38, %v492_v56  ;;  %v871_v60 = vpop.f32.mrb[11].mxu1  ;;  %v3780_v42 = vld [vmem:[%s7073_s4 + $0x1b0] sm:$0xff]  ;;  %v3891_v43 = vld [vmem:[%s7074_s5 + $0x1a0] sm:$0xff]  ;;  %v3770_v46 = vld [vmem:[%s7076_s7 + $0x78] sm:$0xff] }
 0x12e   :  { %v971_v61 = vmax.f32 %v929_v50, %v957_v53  ;;  %v930_v62 = vmax.f32 %v916_v54, 0.0  ;;  %v945_v63 = vadd.f32 %v5353_v38, %v871_v60  ;;  %4237 = vmatprep.subr.bf16.mxu0 %v5385_v52  ;;  %4249 = vmatprep.subr.bf16.mxu1 %v5385_v52  ;;  %v3762_v45 = vld [vmem:[%s7076_s7 + $0x60] sm:$0xff]  ;;  %v3783_v49 = vld [vmem:[%s7073_s4 + $0x1c8] sm:$0xff]  ;;  %v3785_v50 = vld [vmem:[%s7073_s4 + $0x1d8] sm:$0xff]  ;;  %v4306_v51 = vpack.c.bf16 %v3780_v42, %v3778_v41 }
 0x12f   :  { %v958_v0 = vmax.f32 %v944_v58, 0.0  ;;  %v931_v1 = vmax.f32 %v917_v59, 0.0  ;;  %4239 = vmatpush1.bf16.msra.mxu0 %v5383_v48  ;;  %4251 = vmatpush1.bf16.msra.mxu1 %v5383_v48  ;;  %v496_v2 = vpop.f32.mrb[12].mxu0  ;;  %v3896_v53 = vld [vmem:[%s7074_s5 + $0x1c8] sm:$0xff]  ;;  %v3898_v54 = vld [vmem:[%s7074_s5 + $0x1d8] sm:$0xff]  ;;  %v3782_v55 = vld [vmem:[%s7073_s4 + $0x1c0] sm:$0xff] }
 0x130   :  { %v959_v3 = vmax.f32 %v945_v63, 0.0  ;;  %v918_v4 = vadd.f32 %v5349_v37, %v496_v2  ;;  %v875_v5 = vpop.f32.mrb[12].mxu1  ;;  %v498_v6 = vpop.f32.mrb[13].mxu0  ;;  %v3784_v56 = vld [vmem:[%s7073_s4 + $0x1d0] sm:$0xff]  ;;  %v3763_v59 = vld [vmem:[%s7076_s7 + $0x68] sm:$0xff]  ;;  %v3771_v60 = vld [vmem:[%s7076_s7 + $0x80] sm:$0xff]  ;;  %v4464_v63 = vpack.c.bf16 %v3898_v54, %v3896_v53 }
 0x131   :  { %v972_v8 = vmax.f32 %v930_v62, %v958_v0  ;;  %v946_v9 = vadd.f32 %v5349_v37, %v875_v5  ;;  %v919_v10 = vadd.f32 %v5353_v38, %v498_v6  ;;  %v877_v11 = vpop.f32.mrb[13].mxu1  ;;  %v976_v37 = vld [vmem:[%s7076_s7] sm:$0xff]  ;;  %v3897_v58 = vld [vmem:[%s7074_s5 + $0x1d0] sm:$0xff]  ;;  %v4308_v62 = vpack.c.bf16 %v3785_v50, %v3783_v49  ;;  %v3789_v0 = vld [vmem:[%s7073_s4 + $0x1f8] sm:$0xff] }
 0x132   :  { %v973_v12 = vmax.f32 %v931_v1, %v959_v3  ;;  %v932_v14 = vmax.f32 %v918_v4, 0.0  ;;  %v947_v16 = vadd.f32 %v5353_v38, %v877_v11  ;;  %v3738_v38 = vld [vmem:[%s7076_s7 + $0x18] sm:$0xff]  ;;  %v3900_v1 = vld [vmem:[%s7074_s5 + $0x1e8] sm:$0xff]  ;;  %v3764_v3 = vld [vmem:[%s7076_s7 + $0x70] sm:$0x3f]  ;;  %v4310_v5 = vpack.c.bf16 %v3784_v56, %v3782_v55 }
 0x133   :  { %v5399_v17 = vpack.c.bf16 %v972_v8, %v970_v57  ;;  %v960_v19 = vmax.f32 %v946_v9, 0.0  ;;  %v933_v20 = vmax.f32 %v919_v10, 0.0  ;;  %v3895_v57 = vld [vmem:[%s7074_s5 + $0x1c0] sm:$0xff]  ;;  %v3902_v2 = vld [vmem:[%s7074_s5 + $0x1f8] sm:$0xff]  ;;  %v3772_v4 = vld [vmem:[%s7076_s7 + $0x88] sm:$0x3f] }
 0x134   :  { %v5401_v21 = vpack.c.bf16 %v973_v12, %v971_v61  ;;  %v961_v22 = vmax.f32 %v947_v16, 0.0  ;;  %v3787_v61 = vld [vmem:[%s7073_s4 + $0x1e8] sm:$0xff]  ;;  %v4466_v6 = vpack.c.bf16 %v3897_v58, %v3895_v57  ;;  %v3786_v8 = vld [vmem:[%s7073_s4 + $0x1e0] sm:$0xff]  ;;  %v3788_v9 = vld [vmem:[%s7073_s4 + $0x1f0] sm:$0xff]  ;;  %v4468_v16 = vpack.c.bf16 %v3902_v2, %v3900_v1 }
 0x135   :  { %v5403_v15 = vmax.f32 %v932_v14, %v960_v19  ;;  %v3899_v10 = vld [vmem:[%s7074_s5 + $0x1e0] sm:$0xff]  ;;  %v3901_v11 = vld [vmem:[%s7074_s5 + $0x1f0] sm:$0xff]  ;;  %v3791_v12 = vld [vmem:[%s7073_s4 + $0x208] sm:$0xff]  ;;  %v4312_v14 = vpack.c.bf16 %v3789_v0, %v3787_v61 }
 0x136   :  { %v5405_v23 = vmax.f32 %v933_v20, %v961_v22  ;;  %4241 = vmatprep.subr.bf16.mxu0 %v5401_v21  ;;  %4253 = vmatprep.subr.bf16.mxu1 %v5401_v21  ;;  %v3904_v19 = vld [vmem:[%s7074_s5 + $0x208] sm:$0xff]  ;;  %v3906_v20 = vld [vmem:[%s7074_s5 + $0x218] sm:$0xff]  ;;  %v4470_v22 = vpack.c.bf16 %v3901_v11, %v3899_v10  ;;  %v3917_v0 = vld [vmem:[%s7074_s5 + $0x270] sm:$0xff] }
 0x137   :  { %4243 = vmatpush1.bf16.msra.mxu0 %v5399_v17  ;;  %4255 = vmatpush1.bf16.msra.mxu1 %v5399_v17  ;;  %v3799_v41 = vld [vmem:[%s7073_s4 + $0x248] sm:$0xff]  ;;  %v3801_v42 = vld [vmem:[%s7073_s4 + $0x258] sm:$0xff] }
 0x138   :  { %3733 = vmatprep.subr.msk.mxu0 %vm110_vm0, %v5405_v23  ;;  %3741 = vmatprep.subr.msk.mxu1 %vm110_vm0, %v5405_v23  ;;  %v4324_v49 = vpack.c.bf16 %v3801_v42, %v3799_v41  ;;  %v3803_v53 = vld [vmem:[%s7073_s4 + $0x268] sm:$0xff]  ;;  %v3805_v54 = vld [vmem:[%s7073_s4 + $0x278] sm:$0xff]  ;;  %v3929_v41 = vld [vmem:[%s7074_s5 + $0x2d0] sm:$0xff] }
 0x139   :  { %v3916_v55 = vld [vmem:[%s7074_s5 + $0x268] sm:$0xff]  ;;  %v3918_v56 = vld [vmem:[%s7074_s5 + $0x278] sm:$0xff]  ;;  %v4328_v61 = vpack.c.bf16 %v3805_v54, %v3803_v53  ;;  %v3933_v53 = vld [vmem:[%s7074_s5 + $0x2f0] sm:$0xff] }
 0x13a   :  { %v3807_v1 = vld [vmem:[%s7073_s4 + $0x288] sm:$0xff]  ;;  %v3809_v2 = vld [vmem:[%s7073_s4 + $0x298] sm:$0xff] }
 0x13b   :  { %3734 = vmatpush1.msk.msra.mxu0 %vm110_vm0, %v5403_v15  ;;  %3742 = vmatpush1.msk.msra.mxu1 %vm110_vm0, %v5403_v15  ;;  %v4332_v10 = vpack.c.bf16 %v3809_v2, %v3807_v1  ;;  %v3937_v1 = vld [vmem:[%s7074_s5 + $0x310] sm:$0xff] }
 0x13c   :  { %4257 = vmatprep.subr.bf16.mxu0 %v5369_v18  ;;  %4269 = vmatprep.subr.bf16.mxu1 %v5369_v18 }
 0x13d   :  { %3735 = vmatmul.mubr.msk.f32.vlgmr.msra.gmra.mrb[14].mxu0 %vm979_vm4, %v976_v37  ;;  %3743 = vmatmul.mubr.msk.f32.vlgmr.msra.gmra.mrb[14].mxu1 %vm979_vm4, %v3738_v38  ;;  %v4472_v38 = vpack.c.bf16 %v3906_v20, %v3904_v19  ;;  %v3924_v19 = vld [vmem:[%s7074_s5 + $0x2a8] sm:$0xff]  ;;  %v3926_v20 = vld [vmem:[%s7074_s5 + $0x2b8] sm:$0xff] }
 0x13e   :  { %4259 = vmatpush1.bf16.msra.mxu0 %v5367_v13  ;;  %4271 = vmatpush1.bf16.msra.mxu1 %v5367_v13 }
 0x13f   :  { %4261 = vmatprep.subr.bf16.mxu0 %v5385_v52  ;;  %4273 = vmatprep.subr.bf16.mxu1 %v5385_v52 }
 0x140   :  { %1065 = vmatprep.mubr.f32.mxu0 %v4937_v7  ;;  %1161 = vmatprep.mubr.f32.mxu1 %v4937_v7 }
 0x141   :  { %3736 = vmatmul.mubr.msk.f32.gmra.mrb[16].mxu0 %vm979_vm4, %v977_v24  ;;  %3744 = vmatmul.mubr.msk.f32.gmra.mrb[16].mxu1 %vm979_vm4, %v3739_v25  ;;  %v3903_v24 = vld [vmem:[%s7074_s5 + $0x200] sm:$0xff]  ;;  %v3905_v25 = vld [vmem:[%s7074_s5 + $0x210] sm:$0xff] }
 0x142   :  { %4263 = vmatpush1.bf16.msra.mxu0 %v5383_v48  ;;  %4275 = vmatpush1.bf16.msra.mxu1 %v5383_v48 }
 0x143   :  { %4265 = vmatprep.subr.bf16.mxu0 %v5401_v21  ;;  %4277 = vmatprep.subr.bf16.mxu1 %v5401_v21 }
 0x144   :  { %1071 = vmatprep.mubr.f32.mxu0 %v4937_v7  ;;  %1167 = vmatprep.mubr.f32.mxu1 %v4937_v7 }
 0x145   :  { %3737 = vmatmul.mubr.msk.f32.gmra.mrb[18].mxu0 %vm979_vm4, %v978_v26  ;;  %3745 = vmatmul.mubr.msk.f32.gmra.mrb[18].mxu1 %vm979_vm4, %v3740_v27  ;;  %v3795_v26 = vld [vmem:[%s7073_s4 + $0x228] sm:$0xff]  ;;  %v3797_v27 = vld [vmem:[%s7073_s4 + $0x238] sm:$0xff] }
 0x146   :  { %4267 = vmatpush1.bf16.msra.mxu0 %v5399_v17  ;;  %4279 = vmatpush1.bf16.msra.mxu1 %v5399_v17  ;;  %v4320_v32 = vpack.c.bf16 %v3797_v27, %v3795_v26 }
 0x147   :  { %3749 = vmatprep.subr.msk.mxu0 %vm110_vm0, %v5405_v23  ;;  %3757 = vmatprep.subr.msk.mxu1 %vm110_vm0, %v5405_v23 }
 0x148   :  { %1257 = vmatprep.mubr.f32.mxu0 %v4937_v7  ;;  %1353 = vmatprep.mubr.f32.mxu1 %v4937_v7 }
 0x14a   :  { %3750 = vmatpush1.msk.msra.mxu0 %vm110_vm0, %v5403_v15  ;;  %3758 = vmatpush1.msk.msra.mxu1 %vm110_vm0, %v5403_v15 }
 0x14b   :  { %3751 = vmatmul.mubr.msk.f32.vlgmr.msra.gmra.mrb[20].mxu0 %vm979_vm4, %v3746_v28  ;;  %3759 = vmatmul.mubr.msk.f32.vlgmr.msra.gmra.mrb[20].mxu1 %vm979_vm4, %v3754_v29  ;;  %v3908_v28 = vld [vmem:[%s7074_s5 + $0x228] sm:$0xff]  ;;  %v3910_v29 = vld [vmem:[%s7074_s5 + $0x238] sm:$0xff] }
 0x14c   :  { %4281 = vmatprep.subr.bf16.mxu0 %v5369_v18  ;;  %4293 = vmatprep.subr.bf16.mxu1 %v5369_v18  ;;  %v3756_v18 = vld [vmem:[%s7076_s7 + $0x58] sm:$0x3f]  ;;  %v4476_v35 = vpack.c.bf16 %v3910_v29, %v3908_v28  ;;  %v3815_v28 = vld [vmem:[%s7073_s4 + $0x2c8] sm:$0xff] }
 0x14d   :  { %4283 = vmatpush1.bf16.msra.mxu0 %v5367_v13  ;;  %4295 = vmatpush1.bf16.msra.mxu1 %v5367_v13  ;;  %v3748_v13 = vld [vmem:[%s7076_s7 + $0x40] sm:$0x3f]  ;;  %v3817_v29 = vld [vmem:[%s7073_s4 + $0x2d8] sm:$0xff] }
 0x14e   :  { %4285 = vmatprep.subr.bf16.mxu0 %v5385_v52  ;;  %4297 = vmatprep.subr.bf16.mxu1 %v5385_v52  ;;  %v4462_v52 = vpack.c.bf16 %v3893_v44, %v3891_v43  ;;  %v3912_v43 = vld [vmem:[%s7074_s5 + $0x248] sm:$0xff]  ;;  %v3914_v44 = vld [vmem:[%s7074_s5 + $0x258] sm:$0xff] }
 0x14f   :  { %1263 = vmatprep.mubr.f32.mxu0 %v4937_v7  ;;  %1359 = vmatprep.mubr.f32.mxu1 %v4937_v7  ;;  %v4480_v50 = vpack.c.bf16 %v3914_v44, %v3912_v43  ;;  %v3819_v43 = vld [vmem:[%s7073_s4 + $0x2e8] sm:$0xff]  ;;  %v3821_v44 = vld [vmem:[%s7073_s4 + $0x2f8] sm:$0xff] }
 0x150   :  { %3752 = vmatmul.mubr.msk.f32.gmra.mrb[22].mxu0 %vm979_vm4, %v3747_v30  ;;  %3760 = vmatmul.mubr.msk.f32.gmra.mrb[22].mxu1 %vm979_vm4, %v3755_v31  ;;  %v4474_v31 = vpack.c.bf16 %v3905_v25, %v3903_v24  ;;  %v3923_v24 = vld [vmem:[%s7074_s5 + $0x2a0] sm:$0xff]  ;;  %v3925_v25 = vld [vmem:[%s7074_s5 + $0x2b0] sm:$0xff] }
 0x151   :  { %4287 = vmatpush1.bf16.msra.mxu0 %v5383_v48  ;;  %4299 = vmatpush1.bf16.msra.mxu1 %v5383_v48  ;;  %v4460_v48 = vpack.c.bf16 %v3894_v40, %v3892_v39  ;;  %v3907_v39 = vld [vmem:[%s7074_s5 + $0x220] sm:$0xff]  ;;  %v3909_v40 = vld [vmem:[%s7074_s5 + $0x230] sm:$0xff]  ;;  %v4494_v27 = vpack.c.bf16 %v3925_v25, %v3923_v24 }
 0x152   :  { %4289 = vmatprep.subr.bf16.mxu0 %v5401_v21  ;;  %4301 = vmatprep.subr.bf16.mxu1 %v5401_v21  ;;  %v4314_v21 = vpack.c.bf16 %v3788_v9, %v3786_v8  ;;  %v3806_v8 = vld [vmem:[%s7073_s4 + $0x280] sm:$0xff]  ;;  %v3808_v9 = vld [vmem:[%s7073_s4 + $0x290] sm:$0xff] }
 0x153   :  { %1269 = vmatprep.mubr.f32.mxu0 %v4937_v7  ;;  %1365 = vmatprep.mubr.f32.mxu1 %v4937_v7 }
 0x154   :  { %3753 = vmatmul.mubr.msk.f32.gmra.mrb[24].mxu0 %vm979_vm4, %v3748_v13  ;;  %3761 = vmatmul.mubr.msk.f32.gmra.mrb[24].mxu1 %vm979_vm4, %v3756_v18  ;;  %v3794_v13 = vld [vmem:[%s7073_s4 + $0x220] sm:$0xff]  ;;  %v3796_v18 = vld [vmem:[%s7073_s4 + $0x230] sm:$0xff] }
 0x155   :  { %4291 = vmatpush1.bf16.msra.mxu0 %v5399_v17  ;;  %4303 = vmatpush1.bf16.msra.mxu1 %v5399_v17  ;;  %v3793_v17 = vld [vmem:[%s7073_s4 + $0x218] sm:$0xff] }
 0x156   :  { %3765 = vmatprep.subr.msk.mxu0 %vm110_vm0, %v5405_v23  ;;  %3773 = vmatprep.subr.msk.mxu1 %vm110_vm0, %v5405_v23  ;;  %v3792_v23 = vld [vmem:[%s7073_s4 + $0x210] sm:$0xff]  ;;  %v4316_v37 = vpack.c.bf16 %v3793_v17, %v3791_v12  ;;  %v3919_v12 = vld [vmem:[%s7074_s5 + $0x280] sm:$0xff]  ;;  %v3813_v17 = vld [vmem:[%s7073_s4 + $0x2b8] sm:$0xff] }
 0x157   :  { %1455 = vmatprep.mubr.f32.mxu0 %v4937_v7  ;;  %1551 = vmatprep.mubr.f32.mxu1 %v4937_v7 }
 0x159   :  { %3766 = vmatpush1.msk.msra.mxu0 %vm110_vm0, %v5403_v15  ;;  %3774 = vmatpush1.msk.msra.mxu1 %vm110_vm0, %v5403_v15  ;;  %v3790_v15 = vld [vmem:[%s7073_s4 + $0x200] sm:$0xff] }
 0x15a   :  { %3767 = vmatmul.mubr.msk.f32.vlgmr.msra.gmra.mrb[26].mxu0 %vm979_vm4, %v3762_v45  ;;  %3775 = vmatmul.mubr.msk.f32.vlgmr.msra.gmra.mrb[26].mxu1 %vm979_vm4, %v3770_v46  ;;  %v4318_v30 = vpack.c.bf16 %v3792_v23, %v3790_v15  ;;  %v4322_v45 = vpack.c.bf16 %v3796_v18, %v3794_v13  ;;  %v4478_v46 = vpack.c.bf16 %v3909_v40, %v3907_v39  ;;  %v3810_v15 = vld [vmem:[%s7073_s4 + $0x2a0] sm:$0xff]  ;;  %v3930_v13 = vld [vmem:[%s7074_s5 + $0x2d8] sm:$0xff] }
 0x15b   :  { %1461 = vmatprep.mubr.f32.mxu0 %v4937_v7  ;;  %1557 = vmatprep.mubr.f32.mxu1 %v4937_v7  ;;  %v3814_v18 = vld [vmem:[%s7073_s4 + $0x2c0] sm:$0xff] }
 0x15c   :  { %4305 = vmatprep.subr.bf16.mxu0 %v4304_v47  ;;  %4461 = vmatprep.subr.bf16.mxu1 %v4460_v48  ;;  %v3798_v47 = vld [vmem:[%s7073_s4 + $0x240] sm:$0xff]  ;;  %v3800_v48 = vld [vmem:[%s7073_s4 + $0x250] sm:$0xff] }
 0x15d   :  { %4307 = vmatpush1.bf16.msra.mxu0 %v4306_v51  ;;  %4463 = vmatpush1.bf16.msra.mxu1 %v4462_v52  ;;  %v3911_v51 = vld [vmem:[%s7074_s5 + $0x240] sm:$0xff]  ;;  %v3913_v52 = vld [vmem:[%s7074_s5 + $0x250] sm:$0xff]  ;;  %v4326_v57 = vpack.c.bf16 %v3800_v48, %v3798_v47  ;;  %v3934_v47 = vld [vmem:[%s7074_s5 + $0x2f8] sm:$0xff] }
 0x15e   :  { %3768 = vmatmul.mubr.msk.f32.gmra.mrb[28].mxu0 %vm979_vm4, %v3763_v59  ;;  %3776 = vmatmul.mubr.msk.f32.gmra.mrb[28].mxu1 %vm979_vm4, %v3771_v60  ;;  %v4482_v58 = vpack.c.bf16 %v3913_v52, %v3911_v51  ;;  %v3802_v59 = vld [vmem:[%s7073_s4 + $0x260] sm:$0xff]  ;;  %v3804_v60 = vld [vmem:[%s7073_s4 + $0x270] sm:$0xff] }
 0x15f   :  { %1467 = vmatprep.mubr.f32.mxu0 %v4937_v7  ;;  %1563 = vmatprep.mubr.f32.mxu1 %v4937_v7  ;;  %v3927_v40 = vld [vmem:[%s7074_s5 + $0x2c0] sm:$0xff] }
 0x160   :  { %4309 = vmatprep.subr.bf16.mxu0 %v4308_v62  ;;  %4465 = vmatprep.subr.bf16.mxu1 %v4464_v63  ;;  %v4484_v62 = vpack.c.bf16 %v3918_v56, %v3916_v55  ;;  %v3915_v63 = vld [vmem:[%s7074_s5 + $0x260] sm:$0xff]  ;;  %v4498_v42 = vpack.c.bf16 %v3929_v41, %v3927_v40  ;;  %v3823_v55 = vld [vmem:[%s7073_s4 + $0x308] sm:$0xff]  ;;  %v3825_v56 = vld [vmem:[%s7073_s4 + $0x318] sm:$0xff] }
 0x161   :  { %4311 = vmatpush1.bf16.msra.mxu0 %v4310_v5  ;;  %4467 = vmatpush1.bf16.msra.mxu1 %v4466_v6  ;;  %v4330_v5 = vpack.c.bf16 %v3804_v60, %v3802_v59  ;;  %v4486_v6 = vpack.c.bf16 %v3917_v0, %v3915_v63  ;;  %v3818_v48 = vld [vmem:[%s7073_s4 + $0x2e0] sm:$0xff]  ;;  %v3938_v59 = vld [vmem:[%s7074_s5 + $0x318] sm:$0xff] }
 0x162   :  { %3769 = vmatmul.mubr.msk.f32.gmra.mrb[30].mxu0 %vm979_vm4, %v3764_v3  ;;  %3777 = vmatmul.mubr.msk.f32.gmra.mrb[30].mxu1 %vm979_vm4, %v3772_v4  ;;  %v3920_v3 = vld [vmem:[%s7074_s5 + $0x288] sm:$0xff]  ;;  %v3922_v4 = vld [vmem:[%s7074_s5 + $0x298] sm:$0xff]  ;;  %v3931_v52 = vld [vmem:[%s7074_s5 + $0x2e0] sm:$0xff] }
 0x163   :  { %4313 = vmatprep.subr.bf16.mxu0 %v4312_v14  ;;  %4469 = vmatprep.subr.bf16.mxu1 %v4468_v16  ;;  %v4488_v11 = vpack.c.bf16 %v3922_v4, %v3920_v3  ;;  %v3921_v14 = vld [vmem:[%s7074_s5 + $0x290] sm:$0xff]  ;;  %v3811_v16 = vld [vmem:[%s7073_s4 + $0x2a8] sm:$0xff]  ;;  %v4502_v54 = vpack.c.bf16 %v3933_v53, %v3931_v52  ;;  %v3822_v60 = vld [vmem:[%s7073_s4 + $0x300] sm:$0xff] }
 0x164   :  { %v4336_v23 = vpack.c.bf16 %v3813_v17, %v3811_v16  ;;  %v3935_v0 = vld [vmem:[%s7074_s5 + $0x300] sm:$0xff]  ;;  %v3827_v3 = vld [vmem:[%s7073_s4 + $0x328] sm:$0xff]  ;;  %v3829_v4 = vld [vmem:[%s7073_s4 + $0x338] sm:$0xff] }
 0x165   :  { %4315 = vmatpush1.bf16.msra.mxu0 %v4314_v21  ;;  %4471 = vmatpush1.bf16.msra.mxu1 %v4470_v22  ;;  %v4334_v21 = vpack.c.bf16 %v3808_v9, %v3806_v8  ;;  %v4490_v22 = vpack.c.bf16 %v3921_v14, %v3919_v12  ;;  %v4506_v2 = vpack.c.bf16 %v3937_v1, %v3935_v0  ;;  %v3942_v8 = vld [vmem:[%s7074_s5 + $0x338] sm:$0xff]  ;;  %v3826_v9 = vld [vmem:[%s7073_s4 + $0x320] sm:$0xff]  ;;  %v3941_v16 = vld [vmem:[%s7074_s5 + $0x330] sm:$0xff] }
 0x166   :  { %4317 = vmatprep.subr.bf16.mxu0 %v4316_v37  ;;  %4473 = vmatprep.subr.bf16.mxu1 %v4472_v38  ;;  %v4492_v37 = vpack.c.bf16 %v3926_v20, %v3924_v19  ;;  %v3812_v38 = vld [vmem:[%s7073_s4 + $0x2b0] sm:$0xff]  ;;  %v3939_v14 = vld [vmem:[%s7074_s5 + $0x320] sm:$0xff]  ;;  %v1577_v19 = vld [vmem:[%s7073_s4 + $0x8] sm:$0xff] }
 0x167   :  { %v4338_v26 = vpack.c.bf16 %v3812_v38, %v3810_v15  ;;  %v4510_v17 = vpack.c.bf16 %v3941_v16, %v3939_v14  ;;  %v1579_v20 = vld [vmem:[%s7073_s4 + $0x18] sm:$0xff]  ;;  %v2023_v0 = vld [vmem:[%s7074_s5 + $0x30] sm:$0xff]  ;;  %v1585_v1 = vld [vmem:[%s7073_s4 + $0x48] sm:$0xff] }
 0x168   :  { %v2020_v15 = vld [vmem:[%s7074_s5 + $0x18] sm:$0xff]  ;;  %v1584_v16 = vld [vmem:[%s7073_s4 + $0x40] sm:$0xff] }
 0x169   :  { %4319 = vmatpush1.bf16.msra.mxu0 %v4318_v30  ;;  %4475 = vmatpush1.bf16.msra.mxu1 %v4474_v31  ;;  %v3928_v30 = vld [vmem:[%s7074_s5 + $0x2c8] sm:$0xff]  ;;  %v4340_v31 = vpack.c.bf16 %v3817_v29, %v3815_v28  ;;  %v2024_v52 = vld [vmem:[%s7074_s5 + $0x38] sm:$0xff] }
 0x16a   :  { %4321 = vmatprep.subr.bf16.mxu0 %v4320_v32  ;;  %4477 = vmatprep.subr.bf16.mxu1 %v4476_v35  ;;  %v3816_v32 = vld [vmem:[%s7073_s4 + $0x2d0] sm:$0xff]  ;;  %v4496_v35 = vpack.c.bf16 %v3930_v13, %v3928_v30 }
 0x16b   :  { %v4342_v39 = vpack.c.bf16 %v3816_v32, %v3814_v18 }
 0x16d   :  { %4323 = vmatpush1.bf16.msra.mxu0 %v4322_v45  ;;  %4479 = vmatpush1.bf16.msra.mxu1 %v4478_v46  ;;  %v3932_v45 = vld [vmem:[%s7074_s5 + $0x2e8] sm:$0xff]  ;;  %v4344_v46 = vpack.c.bf16 %v3821_v44, %v3819_v43  ;;  %v1576_v43 = vld [vmem:[%s7073_s4] sm:$0xff]  ;;  %v1578_v44 = vld [vmem:[%s7073_s4 + $0x10] sm:$0xff] }
 0x16e   :  { %4325 = vmatprep.subr.bf16.mxu0 %v4324_v49  ;;  %4481 = vmatprep.subr.bf16.mxu1 %v4480_v50  ;;  %v3820_v49 = vld [vmem:[%s7073_s4 + $0x2f0] sm:$0xff]  ;;  %v4500_v50 = vpack.c.bf16 %v3934_v47, %v3932_v45  ;;  %v2017_v45 = vld [vmem:[%s7074_s5] sm:$0xff]  ;;  %v1581_v47 = vld [vmem:[%s7073_s4 + $0x28] sm:$0xff] }
 0x16f   :  { %v4346_v51 = vpack.c.bf16 %v3820_v49, %v3818_v48 }
 0x171   :  { %4327 = vmatpush1.bf16.msra.mxu0 %v4326_v57  ;;  %4483 = vmatpush1.bf16.msra.mxu1 %v4482_v58  ;;  %v3936_v57 = vld [vmem:[%s7074_s5 + $0x308] sm:$0xff]  ;;  %v4348_v58 = vpack.c.bf16 %v3825_v56, %v3823_v55 }
 0x172   :  { %4329 = vmatprep.subr.bf16.mxu0 %v4328_v61  ;;  %4485 = vmatprep.subr.bf16.mxu1 %v4484_v62  ;;  %v3824_v61 = vld [vmem:[%s7073_s4 + $0x310] sm:$0xff]  ;;  %v4504_v62 = vpack.c.bf16 %v3938_v59, %v3936_v57  ;;  %v4358_v57 = vpack.c.bf16 %v1578_v44, %v1576_v43  ;;  %v2029_v43 = vld [vmem:[%s7074_s5 + $0x60] sm:$0xff] }
 0x173   :  { %v4350_v63 = vpack.c.bf16 %v3824_v61, %v3822_v60  ;;  %v1580_v61 = vld [vmem:[%s7073_s4 + $0x20] sm:$0xff]  ;;  %v2031_v44 = vld [vmem:[%s7074_s5 + $0x70] sm:$0xff] }
 0x175   :  { %4331 = vmatpush1.bf16.msra.mxu0 %v4330_v5  ;;  %4487 = vmatpush1.bf16.msra.mxu1 %v4486_v6  ;;  %v3940_v5 = vld [vmem:[%s7074_s5 + $0x328] sm:$0xff]  ;;  %v4352_v6 = vpack.c.bf16 %v3829_v4, %v3827_v3  ;;  %v1587_v4 = vld [vmem:[%s7073_s4 + $0x58] sm:$0xff] }
 0x176   :  { %4333 = vmatprep.subr.bf16.mxu0 %v4332_v10  ;;  %4489 = vmatprep.subr.bf16.mxu1 %v4488_v11  ;;  %v3828_v10 = vld [vmem:[%s7073_s4 + $0x330] sm:$0xff]  ;;  %v4508_v11 = vpack.c.bf16 %v3942_v8, %v3940_v5  ;;  %v2026_v5 = vld [vmem:[%s7074_s5 + $0x48] sm:$0xff] }
 0x177   :  { %v4354_v12 = vpack.c.bf16 %v3828_v10, %v3826_v9 }
 0x179   :  { %4335 = vmatpush1.bf16.msra.mxu0 %v4334_v21  ;;  %4491 = vmatpush1.bf16.msra.mxu1 %v4490_v22  ;;  %v2018_v21 = vld [vmem:[%s7074_s5 + $0x8] sm:$0xff]  ;;  %v4356_v22 = vpack.c.bf16 %v1579_v20, %v1577_v19  ;;  %v1586_v20 = vld [vmem:[%s7073_s4 + $0x50] sm:$0xff] }
 0x17a   :  { %4337 = vmatprep.subr.bf16.mxu0 %v4336_v23  ;;  %4493 = vmatprep.subr.bf16.mxu1 %v4492_v37  ;;  %v4512_v23 = vpack.c.bf16 %v2020_v15, %v2018_v21  ;;  %v2025_v21 = vld [vmem:[%s7074_s5 + $0x40] sm:$0xff] }
 0x17d   :  { %4339 = vmatpush1.bf16.msra.mxu0 %v4338_v26  ;;  %4495 = vmatpush1.bf16.msra.mxu1 %v4494_v27 }
 0x17e   :  { %4341 = vmatprep.subr.bf16.mxu0 %v4340_v31  ;;  %4497 = vmatprep.subr.bf16.mxu1 %v4496_v35 }
 0x181   :  { %4343 = vmatpush1.bf16.msra.mxu0 %v4342_v39  ;;  %4499 = vmatpush1.bf16.msra.mxu1 %v4498_v42 }
 0x182   :  { %4345 = vmatprep.subr.bf16.mxu0 %v4344_v46  ;;  %4501 = vmatprep.subr.bf16.mxu1 %v4500_v50  ;;  %v2019_v46 = vld [vmem:[%s7074_s5 + $0x10] sm:$0xff]  ;;  %v1583_v50 = vld [vmem:[%s7073_s4 + $0x38] sm:$0xff] }
 0x183   :  { %v4360_v59 = vpack.c.bf16 %v1583_v50, %v1581_v47  ;;  %v2036_v50 = vld [vmem:[%s7074_s5 + $0x98] sm:$0xff] }
 0x185   :  { %4347 = vmatpush1.bf16.msra.mxu0 %v4346_v51  ;;  %4503 = vmatpush1.bf16.msra.mxu1 %v4502_v54  ;;  %v2022_v51 = vld [vmem:[%s7074_s5 + $0x28] sm:$0xff] }
 0x186   :  { %4349 = vmatprep.subr.bf16.mxu0 %v4348_v58  ;;  %4505 = vmatprep.subr.bf16.mxu1 %v4504_v62  ;;  %v4514_v58 = vpack.c.bf16 %v2019_v46, %v2017_v45  ;;  %v4516_v60 = vpack.c.bf16 %v2024_v52, %v2022_v51  ;;  %v1582_v62 = vld [vmem:[%s7073_s4 + $0x30] sm:$0xff]  ;;  %v1593_v45 = vld [vmem:[%s7073_s4 + $0x88] sm:$0xff]  ;;  %v4526_v52 = vpack.c.bf16 %v2031_v44, %v2029_v43 }
 0x189   :  { %4351 = vmatpush1.bf16.msra.mxu0 %v4350_v63  ;;  %4507 = vmatpush1.bf16.msra.mxu1 %v4506_v2  ;;  %v2021_v63 = vld [vmem:[%s7074_s5 + $0x20] sm:$0xff] }
 0x18a   :  { %4353 = vmatprep.subr.bf16.mxu0 %v4352_v6  ;;  %4509 = vmatprep.subr.bf16.mxu1 %v4508_v11  ;;  %v2028_v6 = vld [vmem:[%s7074_s5 + $0x58] sm:$0xff]  ;;  %v4518_v14 = vpack.c.bf16 %v2023_v0, %v2021_v63 }
 0x18b   :  { %v4520_v19 = vpack.c.bf16 %v2028_v6, %v2026_v5  ;;  %v1596_v6 = vld [vmem:[%s7073_s4 + $0xa0] sm:$0xff] }
 0x18d   :  { %4355 = vmatpush1.bf16.msra.mxu0 %v4354_v12  ;;  %4511 = vmatpush1.bf16.msra.mxu1 %v4510_v17  ;;  %v4362_v12 = vpack.c.bf16 %v1582_v62, %v1580_v61  ;;  %v4364_v17 = vpack.c.bf16 %v1587_v4, %v1585_v1  ;;  %v1597_v61 = vld [vmem:[%s7073_s4 + $0xa8] sm:$0xff] }
 0x18e   :  { %4357 = vmatprep.subr.bf16.mxu0 %v4356_v22  ;;  %4513 = vmatprep.subr.bf16.mxu1 %v4512_v23  ;;  %v2027_v22 = vld [vmem:[%s7074_s5 + $0x50] sm:$0xff]  ;;  %v2038_v1 = vld [vmem:[%s7074_s5 + $0xa8] sm:$0xff] }
 0x210   :  { %v1061_v37 = vpop.f32.mrb[14].mxu0  ;;  %v1157_v38 = vpop.f32.mrb[14].mxu1 }
 0x211   :  { %v5871_v24 = vmax.f32 %v1061_v37, %v1157_v38  ;;  %v1063_v25 = vpop.f32.mrb[15].mxu0  ;;  %v1159_v26 = vpop.f32.mrb[15].mxu1  ;;  %v1589_v37 = vld [vmem:[%s7073_s4 + $0x68] sm:$0xff] }
 0x212   :  { %v5873_v27 = vmax.f32 %v1063_v25, %v1159_v26 }
 0x214   :  { %v1067_v28 = vpop.f32.mrb[16].mxu0  ;;  %v1163_v29 = vpop.f32.mrb[16].mxu1 }
 0x215   :  { %v5875_v30 = vmax.f32 %v1067_v28, %v1163_v29  ;;  %v1069_v31 = vpop.f32.mrb[17].mxu0  ;;  %v1165_v13 = vpop.f32.mrb[17].mxu1  ;;  %v1591_v28 = vld [vmem:[%s7073_s4 + $0x78] sm:$0xff]  ;;  %v2030_v29 = vld [vmem:[%s7074_s5 + $0x68] sm:$0xff] }
 0x216   :  { %v5877_v18 = vmax.f32 %v1069_v31, %v1165_v13  ;;  %v2032_v31 = vld [vmem:[%s7074_s5 + $0x78] sm:$0xff]  ;;  %v4368_v46 = vpack.c.bf16 %v1591_v28, %v1589_v37  ;;  %v1602_v28 = vld [vmem:[%s7073_s4 + $0xd0] sm:$0xff] }
 0x217   :  { %v4524_v47 = vpack.c.bf16 %v2032_v31, %v2030_v29 }
 0x218   :  { %v1073_v32 = vpop.f32.mrb[18].mxu0  ;;  %v1169_v35 = vpop.f32.mrb[18].mxu1 }
 0x219   :  { %v5879_v39 = vmax.f32 %v1073_v32, %v1169_v35  ;;  %v1075_v40 = vpop.f32.mrb[19].mxu0  ;;  %v1171_v41 = vpop.f32.mrb[19].mxu1  ;;  %v4366_v32 = vpack.c.bf16 %v1586_v20, %v1584_v16  ;;  %v4522_v35 = vpack.c.bf16 %v2027_v22, %v2025_v21  ;;  %v2039_v16 = vld [vmem:[%s7074_s5 + $0xb0] sm:$0xff]  ;;  %v1603_v22 = vld [vmem:[%s7073_s4 + $0xd8] sm:$0xff] }
 0x21a   :  { %v5881_v42 = vmax.f32 %v1075_v40, %v1171_v41  ;;  %v1588_v40 = vld [vmem:[%s7073_s4 + $0x60] sm:$0xff]  ;;  %v1590_v41 = vld [vmem:[%s7073_s4 + $0x70] sm:$0xff] }
 0x21b   :  { %v4370_v51 = vpack.c.bf16 %v1590_v41, %v1588_v40  ;;  %v2043_v40 = vld [vmem:[%s7074_s5 + $0xd0] sm:$0xff]  ;;  %v1605_v41 = vld [vmem:[%s7073_s4 + $0xe8] sm:$0xff] }
 0x21e   :  { %v1259_v48 = vpop.f32.mrb[20].mxu0  ;;  %v1355_v49 = vpop.f32.mrb[20].mxu1 }
 0x21f   :  { %v1372_v53 = vmax.f32 %v1259_v48, %v1355_v49  ;;  %v1261_v54 = vpop.f32.mrb[21].mxu0  ;;  %v1357_v55 = vpop.f32.mrb[21].mxu1  ;;  %v1595_v48 = vld [vmem:[%s7073_s4 + $0x98] sm:$0xff]  ;;  %v2034_v49 = vld [vmem:[%s7074_s5 + $0x88] sm:$0xff] }
 0x220   :  { %v1373_v56 = vmax.f32 %v1261_v54, %v1357_v55  ;;  %v1594_v54 = vld [vmem:[%s7073_s4 + $0x90] sm:$0xff] }
 0x222   :  { %3830 = vmatprep.mubr.msk.f32.mxu0 %vm1681_vm5, %v1373_v56  ;;  %3943 = vmatprep.mubr.msk.f32.mxu1 %vm1681_vm5, %v1373_v56 }
 0x223   :  { %v1265_v2 = vpop.f32.mrb[22].mxu0  ;;  %v1361_v3 = vpop.f32.mrb[22].mxu1  ;;  %1756 = vmatmul.mubr.f32.vlgmr.msra.gmra.mrb[32].mxu0 %v1372_v53  ;;  %2187 = vmatmul.mubr.f32.vlgmr.msra.gmra.mrb[32].mxu1 %v1372_v53  ;;  %v1592_v53 = vld [vmem:[%s7073_s4 + $0x80] sm:$0xff] }
 0x224   :  { %v1374_v8 = vmax.f32 %v1265_v2, %v1361_v3  ;;  %v1267_v9 = vpop.f32.mrb[23].mxu0  ;;  %v1363_v10 = vpop.f32.mrb[23].mxu1  ;;  %4359 = vmatpush1.bf16.msra.mxu0 %v4358_v57  ;;  %4515 = vmatpush1.bf16.msra.mxu1 %v4514_v58  ;;  %v4372_v57 = vpack.c.bf16 %v1595_v48, %v1593_v45  ;;  %v4528_v58 = vpack.c.bf16 %v2036_v50, %v2034_v49  ;;  %v2040_v2 = vld [vmem:[%s7074_s5 + $0xb8] sm:$0xff] }
 0x225   :  { %v1375_v11 = vmax.f32 %v1267_v9, %v1363_v10  ;;  %4361 = vmatprep.subr.bf16.mxu0 %v4360_v59  ;;  %4517 = vmatprep.subr.bf16.mxu1 %v4516_v60  ;;  %v2033_v59 = vld [vmem:[%s7074_s5 + $0x80] sm:$0xff]  ;;  %v2035_v60 = vld [vmem:[%s7074_s5 + $0x90] sm:$0xff]  ;;  %v4374_v4 = vpack.c.bf16 %v1594_v54, %v1592_v53  ;;  %v2048_v48 = vld [vmem:[%s7074_s5 + $0xf8] sm:$0xff] }
 0x226   :  { %v4530_v5 = vpack.c.bf16 %v2035_v60, %v2033_v59  ;;  %v1606_v53 = vld [vmem:[%s7073_s4 + $0xf0] sm:$0xff]  ;;  %v1611_v59 = vld [vmem:[%s7073_s4 + $0x118] sm:$0xff]  ;;  %v2050_v60 = vld [vmem:[%s7074_s5 + $0x108] sm:$0xff] }
 0x227   :  { %v1271_v15 = vpop.f32.mrb[24].mxu0  ;;  %v1367_v23 = vpop.f32.mrb[24].mxu1  ;;  %3831 = vmatprep.mubr.msk.f32.mxu0 %vm1681_vm5, %v1375_v11  ;;  %3944 = vmatprep.mubr.msk.f32.mxu1 %vm1681_vm5, %v1375_v11 }
 0x228   :  { %v1376_v38 = vmax.f32 %v1271_v15, %v1367_v23  ;;  %v1273_v25 = vpop.f32.mrb[25].mxu0  ;;  %v1369_v26 = vpop.f32.mrb[25].mxu1  ;;  %1762 = vmatmul.mubr.f32.gmra.mrb[34].mxu0 %v1374_v8  ;;  %2193 = vmatmul.mubr.f32.gmra.mrb[34].mxu1 %v1374_v8  ;;  %v1598_v8 = vld [vmem:[%s7073_s4 + $0xb0] sm:$0xff]  ;;  %v2042_v15 = vld [vmem:[%s7074_s5 + $0xc8] sm:$0xff]  ;;  %v2044_v23 = vld [vmem:[%s7074_s5 + $0xd8] sm:$0xff] }
 0x229   :  { %v1377_v13 = vmax.f32 %v1273_v25, %v1369_v26  ;;  %4363 = vmatpush1.bf16.msra.mxu0 %v4362_v12  ;;  %4519 = vmatpush1.bf16.msra.mxu1 %v4518_v14  ;;  %v4532_v12 = vpack.c.bf16 %v2040_v2, %v2038_v1  ;;  %v2037_v14 = vld [vmem:[%s7074_s5 + $0xa0] sm:$0xff]  ;;  %v1610_v1 = vld [vmem:[%s7073_s4 + $0x110] sm:$0xff] }
 0x22a   :  { %4365 = vmatprep.subr.bf16.mxu0 %v4364_v17  ;;  %4521 = vmatprep.subr.bf16.mxu1 %v4520_v19  ;;  %v1601_v17 = vld [vmem:[%s7073_s4 + $0xc8] sm:$0xff]  ;;  %v4534_v25 = vpack.c.bf16 %v2039_v16, %v2037_v14  ;;  %v1600_v26 = vld [vmem:[%s7073_s4 + $0xc0] sm:$0xff] }
 0x22b   :  { %3832 = vmatprep.mubr.msk.f32.mxu0 %vm1681_vm5, %v1377_v13  ;;  %3945 = vmatprep.mubr.msk.f32.mxu1 %vm1681_vm5, %v1377_v13  ;;  %v4380_v13 = vpack.c.bf16 %v1603_v22, %v1601_v17  ;;  %v4382_v50 = vpack.c.bf16 %v1602_v28, %v1600_v26  ;;  %v1612_v16 = vld [vmem:[%s7073_s4 + $0x120] sm:$0xff]  ;;  %v1614_v17 = vld [vmem:[%s7073_s4 + $0x130] sm:$0xff]  ;;  %v2060_v26 = vld [vmem:[%s7074_s5 + $0x158] sm:$0xff] }
 0x22c   :  { %1768 = vmatmul.mubr.f32.gmra.mrb[36].mxu0 %v1376_v38  ;;  %2199 = vmatmul.mubr.f32.gmra.mrb[36].mxu1 %v1376_v38  ;;  %v4378_v38 = vpack.c.bf16 %v1598_v8, %v1596_v6  ;;  %v2051_v6 = vld [vmem:[%s7074_s5 + $0x110] sm:$0xff]  ;;  %v1613_v8 = vld [vmem:[%s7073_s4 + $0x128] sm:$0xff]  ;;  %v2053_v22 = vld [vmem:[%s7074_s5 + $0x120] sm:$0xff]  ;;  %v4394_v28 = vpack.c.bf16 %v1614_v17, %v1612_v16 }
 0x22d   :  { %4367 = vmatpush1.bf16.msra.mxu0 %v4366_v32  ;;  %4523 = vmatpush1.bf16.msra.mxu1 %v4522_v35  ;;  %v1457_v55 = vpop.f32.mrb[26].mxu0  ;;  %v1553_v56 = vpop.f32.mrb[26].mxu1  ;;  %v4536_v32 = vpack.c.bf16 %v2044_v23, %v2042_v15  ;;  %v2041_v35 = vld [vmem:[%s7074_s5 + $0xc0] sm:$0xff]  ;;  %v2055_v15 = vld [vmem:[%s7074_s5 + $0x130] sm:$0xff]  ;;  %v1617_v23 = vld [vmem:[%s7073_s4 + $0x148] sm:$0xff] }
 0x22e   :  { %3833 = vmatprep.mubr.msk.f32.mxu0 %vm1681_vm5, %v5873_v27  ;;  %3946 = vmatprep.mubr.msk.f32.mxu1 %vm1681_vm5, %v5873_v27  ;;  %v6004_v62 = vmax.f32 %v1457_v55, %v1553_v56  ;;  %v1459_v63 = vpop.f32.mrb[27].mxu0  ;;  %v1555_v0 = vpop.f32.mrb[27].mxu1  ;;  %v1599_v27 = vld [vmem:[%s7073_s4 + $0xb8] sm:$0xff]  ;;  %v2045_v56 = vld [vmem:[%s7074_s5 + $0xe0] sm:$0xff] }
 0x22f   :  { %4369 = vmatprep.subr.bf16.mxu0 %v4368_v46  ;;  %4525 = vmatprep.subr.bf16.mxu1 %v4524_v47  ;;  %v6015_v3 = vmax.f32 %v1459_v63, %v1555_v0  ;;  %v4376_v11 = vpack.c.bf16 %v1599_v27, %v1597_v61  ;;  %v1607_v46 = vld [vmem:[%s7073_s4 + $0xf8] sm:$0xff]  ;;  %v2046_v47 = vld [vmem:[%s7074_s5 + $0xe8] sm:$0xff]  ;;  %v1608_v27 = vld [vmem:[%s7073_s4 + $0x100] sm:$0xff] }
 0x230   :  { %v4384_v54 = vpack.c.bf16 %v1607_v46, %v1605_v41  ;;  %v4540_v55 = vpack.c.bf16 %v2048_v48, %v2046_v47  ;;  %v2052_v61 = vld [vmem:[%s7074_s5 + $0x118] sm:$0xff]  ;;  %v2059_v41 = vld [vmem:[%s7074_s5 + $0x150] sm:$0xff]  ;;  %v2062_v46 = vld [vmem:[%s7074_s5 + $0x168] sm:$0xff] }
 0x231   :  { %4371 = vmatpush1.bf16.msra.mxu0 %v4370_v51  ;;  %4527 = vmatpush1.bf16.msra.mxu1 %v4526_v52  ;;  %v1463_v9 = vpop.f32.mrb[28].mxu0  ;;  %v1559_v10 = vpop.f32.mrb[28].mxu1  ;;  %v4538_v51 = vpack.c.bf16 %v2043_v40, %v2041_v35  ;;  %v1604_v52 = vld [vmem:[%s7073_s4 + $0xe0] sm:$0xff]  ;;  %v2064_v47 = vld [vmem:[%s7074_s5 + $0x178] sm:$0xff] }
 0x232   :  { %4373 = vmatprep.subr.bf16.mxu0 %v4372_v57  ;;  %4529 = vmatprep.subr.bf16.mxu1 %v4528_v58  ;;  %v6032_v19 = vmax.f32 %v1463_v9, %v1559_v10  ;;  %v1465_v20 = vpop.f32.mrb[29].mxu0  ;;  %v1561_v21 = vpop.f32.mrb[29].mxu1  ;;  %v2047_v57 = vld [vmem:[%s7074_s5 + $0xf0] sm:$0xff]  ;;  %v1609_v58 = vld [vmem:[%s7073_s4 + $0x108] sm:$0xff]  ;;  %v4386_v63 = vpack.c.bf16 %v1606_v53, %v1604_v52  ;;  %v1615_v9 = vld [vmem:[%s7073_s4 + $0x138] sm:$0xff] }
 0x233   :  { %v6043_v37 = vmax.f32 %v1465_v20, %v1561_v21  ;;  %v4542_v0 = vpack.c.bf16 %v2047_v57, %v2045_v56  ;;  %v4388_v2 = vpack.c.bf16 %v1611_v59, %v1609_v58  ;;  %v2054_v10 = vld [vmem:[%s7074_s5 + $0x128] sm:$0xff]  ;;  %v4392_v20 = vpack.c.bf16 %v1615_v9, %v1613_v8  ;;  %v2057_v40 = vld [vmem:[%s7074_s5 + $0x140] sm:$0xff]  ;;  %v1622_v52 = vld [vmem:[%s7073_s4 + $0x170] sm:$0xff] }
 0x234   :  { %v2063_v56 = vld [vmem:[%s7074_s5 + $0x170] sm:$0xff]  ;;  %v1625_v57 = vld [vmem:[%s7073_s4 + $0x188] sm:$0xff]  ;;  %v1627_v58 = vld [vmem:[%s7073_s4 + $0x198] sm:$0xff] }
 0x235   :  { %4375 = vmatpush1.bf16.msra.mxu0 %v4374_v4  ;;  %4531 = vmatpush1.bf16.msra.mxu1 %v4530_v5  ;;  %v1469_v29 = vpop.f32.mrb[30].mxu0  ;;  %v1565_v31 = vpop.f32.mrb[30].mxu1  ;;  %v4544_v4 = vpack.c.bf16 %v2052_v61, %v2050_v60  ;;  %v2049_v5 = vld [vmem:[%s7074_s5 + $0x100] sm:$0xff]  ;;  %v2066_v59 = vld [vmem:[%s7074_s5 + $0x188] sm:$0xff]  ;;  %v2068_v60 = vld [vmem:[%s7074_s5 + $0x198] sm:$0xff] }
 0x236   :  { %4377 = vmatprep.subr.bf16.mxu0 %v4376_v11  ;;  %4533 = vmatprep.subr.bf16.mxu1 %v4532_v12  ;;  %v6060_v43 = vmax.f32 %v1469_v29, %v1565_v31  ;;  %v1471_v44 = vpop.f32.mrb[31].mxu0  ;;  %v1567_v45 = vpop.f32.mrb[31].mxu1  ;;  %v2056_v11 = vld [vmem:[%s7074_s5 + $0x138] sm:$0xff]  ;;  %v4390_v12 = vpack.c.bf16 %v1610_v1, %v1608_v27  ;;  %v4546_v14 = vpack.c.bf16 %v2051_v6, %v2049_v5  ;;  %v1616_v31 = vld [vmem:[%s7073_s4 + $0x140] sm:$0xff]  ;;  %v1626_v27 = vld [vmem:[%s7073_s4 + $0x190] sm:$0xff] }
 0x237   :  { %v6071_v49 = vmax.f32 %v1471_v44, %v1567_v45  ;;  %v4548_v21 = vpack.c.bf16 %v2056_v11, %v2054_v10  ;;  %v4550_v29 = vpack.c.bf16 %v2055_v15, %v2053_v22  ;;  %v1621_v44 = vld [vmem:[%s7073_s4 + $0x168] sm:$0xff]  ;;  %v1623_v45 = vld [vmem:[%s7073_s4 + $0x178] sm:$0xff]  ;;  %v4404_v1 = vpack.c.bf16 %v1627_v58, %v1625_v57  ;;  %v2067_v5 = vld [vmem:[%s7074_s5 + $0x190] sm:$0xff] }
 0x238   :  { %v4400_v53 = vpack.c.bf16 %v1623_v45, %v1621_v44  ;;  %v3837_v6 = vld [vmem:[%s7073_s4 + $0x348] sm:$0xff]  ;;  %v3839_v8 = vld [vmem:[%s7073_s4 + $0x358] sm:$0xff]  ;;  %v3836_v17 = vld [vmem:[%s7073_s4 + $0x340] sm:$0xff] }
 0x239   :  { %4379 = vmatpush1.bf16.msra.mxu0 %v4378_v38  ;;  %4535 = vmatpush1.bf16.msra.mxu1 %v4534_v25  ;;  %v1619_v38 = vld [vmem:[%s7073_s4 + $0x158] sm:$0xff]  ;;  %v2058_v25 = vld [vmem:[%s7074_s5 + $0x148] sm:$0xff]  ;;  %v3951_v22 = vld [vmem:[%s7074_s5 + $0x350] sm:$0xff] }
 0x23a   :  { %4381 = vmatprep.subr.bf16.mxu0 %v4380_v13  ;;  %4537 = vmatprep.subr.bf16.mxu1 %v4536_v32  ;;  %v1618_v13 = vld [vmem:[%s7073_s4 + $0x150] sm:$0xff]  ;;  %v4396_v32 = vpack.c.bf16 %v1619_v38, %v1617_v23  ;;  %v4552_v35 = vpack.c.bf16 %v2060_v26, %v2058_v25  ;;  %v3950_v9 = vld [vmem:[%s7074_s5 + $0x348] sm:$0xff]  ;;  %v3952_v10 = vld [vmem:[%s7074_s5 + $0x358] sm:$0xff] }
 0x23b   :  { %v4398_v48 = vpack.c.bf16 %v1618_v13, %v1616_v31  ;;  %v4564_v16 = vpack.c.bf16 %v3952_v10, %v3950_v9  ;;  %v3841_v15 = vld [vmem:[%s7073_s4 + $0x368] sm:$0xff]  ;;  %v3843_v23 = vld [vmem:[%s7073_s4 + $0x378] sm:$0xff]  ;;  %v3842_v31 = vld [vmem:[%s7073_s4 + $0x370] sm:$0xff] }
 0x23c   :  { %v3954_v38 = vld [vmem:[%s7074_s5 + $0x368] sm:$0xff]  ;;  %v3956_v25 = vld [vmem:[%s7074_s5 + $0x378] sm:$0xff]  ;;  %v4412_v13 = vpack.c.bf16 %v3843_v23, %v3841_v15  ;;  %v3854_v9 = vld [vmem:[%s7073_s4 + $0x3d0] sm:$0xff] }
 0x23d   :  { %4383 = vmatpush1.bf16.msra.mxu0 %v4382_v50  ;;  %4539 = vmatpush1.bf16.msra.mxu1 %v4538_v51  ;;  %v4554_v50 = vpack.c.bf16 %v2059_v41, %v2057_v40  ;;  %v1620_v51 = vld [vmem:[%s7073_s4 + $0x160] sm:$0xff]  ;;  %v3955_v40 = vld [vmem:[%s7074_s5 + $0x370] sm:$0xff]  ;;  %v3845_v41 = vld [vmem:[%s7073_s4 + $0x388] sm:$0xff] }
 0x23e   :  { %4385 = vmatprep.subr.bf16.mxu0 %v4384_v54  ;;  %4541 = vmatprep.subr.bf16.mxu1 %v4540_v55  ;;  %v4556_v54 = vpack.c.bf16 %v2064_v47, %v2062_v46  ;;  %v2061_v55 = vld [vmem:[%s7074_s5 + $0x160] sm:$0xff]  ;;  %v4402_v61 = vpack.c.bf16 %v1622_v52, %v1620_v51  ;;  %v3847_v44 = vld [vmem:[%s7073_s4 + $0x398] sm:$0xff]  ;;  %v3958_v45 = vld [vmem:[%s7074_s5 + $0x388] sm:$0xff] }
 0x23f   :  { %v3960_v46 = vld [vmem:[%s7074_s5 + $0x398] sm:$0xff]  ;;  %v3957_v51 = vld [vmem:[%s7074_s5 + $0x380] sm:$0xff]  ;;  %v4416_v52 = vpack.c.bf16 %v3847_v44, %v3845_v41  ;;  %v3862_v44 = vld [vmem:[%s7073_s4 + $0x410] sm:$0xff] }
 0x240   :  { %v3964_v57 = vld [vmem:[%s7074_s5 + $0x3b8] sm:$0xff]  ;;  %v3965_v10 = vld [vmem:[%s7074_s5 + $0x3c0] sm:$0xff] }
 0x241   :  { %4387 = vmatpush1.bf16.msra.mxu0 %v4386_v63  ;;  %4543 = vmatpush1.bf16.msra.mxu1 %v4542_v0  ;;  %v4558_v63 = vpack.c.bf16 %v2063_v56, %v2061_v55  ;;  %v1624_v0 = vld [vmem:[%s7073_s4 + $0x180] sm:$0xff]  ;;  %v3851_v55 = vld [vmem:[%s7073_s4 + $0x3b8] sm:$0xff]  ;;  %v3962_v56 = vld [vmem:[%s7074_s5 + $0x3a8] sm:$0xff] }
 0x242   :  { %4389 = vmatprep.subr.bf16.mxu0 %v4388_v2  ;;  %4545 = vmatprep.subr.bf16.mxu1 %v4544_v4  ;;  %v4560_v2 = vpack.c.bf16 %v2068_v60, %v2066_v59  ;;  %v2065_v4 = vld [vmem:[%s7074_s5 + $0x180] sm:$0xff]  ;;  %v4406_v11 = vpack.c.bf16 %v1626_v27, %v1624_v0  ;;  %v4576_v0 = vpack.c.bf16 %v3964_v57, %v3962_v56  ;;  %v3853_v27 = vld [vmem:[%s7073_s4 + $0x3c8] sm:$0xff] }
 0x243   :  { %v3856_v23 = vld [vmem:[%s7073_s4 + $0x3e0] sm:$0xff] }
 0x244   :  { %v3860_v41 = vld [vmem:[%s7073_s4 + $0x400] sm:$0xff] }
 0x245   :  { %4391 = vmatpush1.bf16.msra.mxu0 %v4390_v12  ;;  %4547 = vmatpush1.bf16.msra.mxu1 %v4546_v14  ;;  %v4562_v12 = vpack.c.bf16 %v2067_v5, %v2065_v4  ;;  %v4408_v14 = vpack.c.bf16 %v3839_v8, %v3837_v6  ;;  %v3968_v4 = vld [vmem:[%s7074_s5 + $0x3d8] sm:$0xff]  ;;  %v3977_v56 = vld [vmem:[%s7074_s5 + $0x420] sm:$0xff] }
 0x246   :  { %4393 = vmatprep.subr.bf16.mxu0 %v4392_v20  ;;  %4549 = vmatprep.subr.bf16.mxu1 %v4548_v21  ;;  %v3838_v20 = vld [vmem:[%s7073_s4 + $0x350] sm:$0xff]  ;;  %v3949_v21 = vld [vmem:[%s7074_s5 + $0x340] sm:$0xff] }
 0x247   :  { %v4410_v26 = vpack.c.bf16 %v3838_v20, %v3836_v17  ;;  %v3970_v17 = vld [vmem:[%s7074_s5 + $0x3e8] sm:$0xff]  ;;  %v3972_v20 = vld [vmem:[%s7074_s5 + $0x3f8] sm:$0xff] }
 0x249   :  { %4395 = vmatpush1.bf16.msra.mxu0 %v4394_v28  ;;  %4551 = vmatpush1.bf16.msra.mxu1 %v4550_v29  ;;  %v4566_v28 = vpack.c.bf16 %v3951_v22, %v3949_v21  ;;  %v3840_v29 = vld [vmem:[%s7073_s4 + $0x360] sm:$0xff] }
 0x24a   :  { %4397 = vmatprep.subr.bf16.mxu0 %v4396_v32  ;;  %4553 = vmatprep.subr.bf16.mxu1 %v4552_v35  ;;  %v4568_v32 = vpack.c.bf16 %v3956_v25, %v3954_v38  ;;  %v3953_v35 = vld [vmem:[%s7074_s5 + $0x360] sm:$0xff]  ;;  %v4414_v47 = vpack.c.bf16 %v3842_v31, %v3840_v29  ;;  %v4584_v25 = vpack.c.bf16 %v3972_v20, %v3970_v17  ;;  %v3863_v29 = vld [vmem:[%s7073_s4 + $0x418] sm:$0xff]  ;;  %v3974_v31 = vld [vmem:[%s7074_s5 + $0x408] sm:$0xff] }
 0x24b   :  { %v3969_v38 = vld [vmem:[%s7074_s5 + $0x3e0] sm:$0xff] }
 0x24c   :  { %v3985_v17 = vld [vmem:[%s7074_s5 + $0x460] sm:$0xff] }
 0x24d   :  { %4399 = vmatpush1.bf16.msra.mxu0 %v4398_v48  ;;  %4555 = vmatpush1.bf16.msra.mxu1 %v4554_v50  ;;  %v3844_v48 = vld [vmem:[%s7073_s4 + $0x380] sm:$0xff]  ;;  %v3846_v50 = vld [vmem:[%s7073_s4 + $0x390] sm:$0xff] }
 0x24e   :  { %4401 = vmatprep.subr.bf16.mxu0 %v4400_v53  ;;  %4557 = vmatprep.subr.bf16.mxu1 %v4556_v54  ;;  %v4572_v53 = vpack.c.bf16 %v3960_v46, %v3958_v45  ;;  %v3849_v54 = vld [vmem:[%s7073_s4 + $0x3a8] sm:$0xff]  ;;  %v4418_v58 = vpack.c.bf16 %v3846_v50, %v3844_v48  ;;  %v3973_v45 = vld [vmem:[%s7074_s5 + $0x400] sm:$0xff]  ;;  %v3867_v48 = vld [vmem:[%s7073_s4 + $0x438] sm:$0xff] }
 0x24f   :  { %v4420_v60 = vpack.c.bf16 %v3851_v55, %v3849_v54  ;;  %v3978_v50 = vld [vmem:[%s7074_s5 + $0x428] sm:$0xff]  ;;  %v3864_v54 = vld [vmem:[%s7073_s4 + $0x420] sm:$0xff]  ;;  %v3866_v55 = vld [vmem:[%s7073_s4 + $0x430] sm:$0xff] }
 0x251   :  { %4403 = vmatpush1.bf16.msra.mxu0 %v4402_v61  ;;  %4559 = vmatpush1.bf16.msra.mxu1 %v4558_v63  ;;  %v3850_v61 = vld [vmem:[%s7073_s4 + $0x3b0] sm:$0xff]  ;;  %v3961_v63 = vld [vmem:[%s7074_s5 + $0x3a0] sm:$0xff] }
 0x252   :  { %4405 = vmatprep.subr.bf16.mxu0 %v4404_v1  ;;  %4561 = vmatprep.subr.bf16.mxu1 %v4560_v2  ;;  %v3855_v1 = vld [vmem:[%s7073_s4 + $0x3d8] sm:$0xff]  ;;  %v3966_v2 = vld [vmem:[%s7074_s5 + $0x3c8] sm:$0xff] }
 0x253   :  { %v4424_v8 = vpack.c.bf16 %v3855_v1, %v3853_v27  ;;  %v3868_v27 = vld [vmem:[%s7073_s4 + $0x440] sm:$0xff]  ;;  %v3870_v1 = vld [vmem:[%s7073_s4 + $0x450] sm:$0xff] }
 0x255   :  { %4407 = vmatpush1.bf16.msra.mxu0 %v4406_v11  ;;  %4563 = vmatpush1.bf16.msra.mxu1 %v4562_v12  ;;  %v4580_v11 = vpack.c.bf16 %v3968_v4, %v3966_v2  ;;  %v3967_v12 = vld [vmem:[%s7074_s5 + $0x3d0] sm:$0xff]  ;;  %v3981_v2 = vld [vmem:[%s7074_s5 + $0x440] sm:$0xff] }
 0x256   :  { %4409 = vmatprep.subr.bf16.mxu0 %v4408_v14  ;;  %4565 = vmatprep.subr.bf16.mxu1 %v4564_v16  ;;  %v3857_v14 = vld [vmem:[%s7073_s4 + $0x3e8] sm:$0xff]  ;;  %v3859_v16 = vld [vmem:[%s7073_s4 + $0x3f8] sm:$0xff]  ;;  %v4582_v22 = vpack.c.bf16 %v3967_v12, %v3965_v10  ;;  %v4442_v10 = vpack.c.bf16 %v3870_v1, %v3868_v27 }
 0x257   :  { %v4428_v15 = vpack.c.bf16 %v3859_v16, %v3857_v14  ;;  %v3872_v14 = vld [vmem:[%s7073_s4 + $0x460] sm:$0xff]  ;;  %v3874_v16 = vld [vmem:[%s7073_s4 + $0x470] sm:$0xff] }
 0x258   :  { %1848 = vmatmul.mubr.f32.vlgmr.msra.gmra.mrb[32].mxu0 %v5871_v24  ;;  %2270 = vmatmul.mubr.f32.vlgmr.msra.gmra.mrb[32].mxu1 %v5871_v24  ;;  %v4570_v24 = vpack.c.bf16 %v3955_v40, %v3953_v35 }
 0x259   :  { %3834 = vmatprep.mubr.msk.f32.mxu0 %vm1681_vm5, %v5877_v18  ;;  %4411 = vmatpush1.bf16.msra.mxu0 %v4410_v26  ;;  %v3971_v26 = vld [vmem:[%s7074_s5 + $0x3f0] sm:$0xff] }
 0x25a   :  { %3947 = vmatprep.mubr.msk.f32.mxu1 %vm1681_vm5, %v5877_v18  ;;  %4567 = vmatpush1.bf16.msra.mxu1 %v4566_v28  ;;  %v3959_v18 = vld [vmem:[%s7074_s5 + $0x390] sm:$0xff]  ;;  %v3861_v28 = vld [vmem:[%s7073_s4 + $0x408] sm:$0xff]  ;;  %v4586_v35 = vpack.c.bf16 %v3971_v26, %v3969_v38  ;;  %v4446_v38 = vpack.c.bf16 %v3874_v16, %v3872_v14 }
 0x25b   :  { %4413 = vmatprep.subr.bf16.mxu0 %v4412_v13  ;;  %4569 = vmatprep.subr.bf16.mxu1 %v4568_v32  ;;  %v4574_v59 = vpack.c.bf16 %v3959_v18, %v3957_v51  ;;  %v3976_v13 = vld [vmem:[%s7074_s5 + $0x418] sm:$0xff]  ;;  %v4432_v40 = vpack.c.bf16 %v3863_v29, %v3861_v28  ;;  %v3876_v28 = vld [vmem:[%s7073_s4 + $0x480] sm:$0xff]  ;;  %v3878_v29 = vld [vmem:[%s7073_s4 + $0x490] sm:$0xff] }
 0x25c   :  { %1854 = vmatmul.mubr.f32.gmra.mrb[34].mxu0 %v5875_v30  ;;  %2276 = vmatmul.mubr.f32.gmra.mrb[34].mxu1 %v5875_v30  ;;  %v3848_v30 = vld [vmem:[%s7073_s4 + $0x3a0] sm:$0xff]  ;;  %v4588_v46 = vpack.c.bf16 %v3976_v13, %v3974_v31  ;;  %v3980_v51 = vld [vmem:[%s7074_s5 + $0x438] sm:$0xff] }
 0x25d   :  { %3835 = vmatprep.mubr.msk.f32.mxu0 %vm1681_vm5, %v5881_v42  ;;  %4415 = vmatpush1.bf16.msra.mxu0 %v4414_v47  ;;  %v4422_v5 = vpack.c.bf16 %v3850_v61, %v3848_v30  ;;  %v3975_v47 = vld [vmem:[%s7074_s5 + $0x410] sm:$0xff]  ;;  %v4592_v57 = vpack.c.bf16 %v3980_v51, %v3978_v50  ;;  %v3982_v30 = vld [vmem:[%s7074_s5 + $0x448] sm:$0xff]  ;;  %v3984_v61 = vld [vmem:[%s7074_s5 + $0x458] sm:$0xff] }
 0x25e   :  { %3948 = vmatprep.mubr.msk.f32.mxu1 %vm1681_vm5, %v5881_v42  ;;  %4571 = vmatpush1.bf16.msra.mxu1 %v4570_v24  ;;  %v3963_v42 = vld [vmem:[%s7074_s5 + $0x3b0] sm:$0xff]  ;;  %v3865_v24 = vld [vmem:[%s7073_s4 + $0x428] sm:$0xff]  ;;  %v4596_v4 = vpack.c.bf16 %v3984_v61, %v3982_v30  ;;  %v3989_v31 = vld [vmem:[%s7074_s5 + $0x480] sm:$0xff] }
 0x25f   :  { %4417 = vmatprep.subr.bf16.mxu0 %v4416_v52  ;;  %4573 = vmatprep.subr.bf16.mxu1 %v4572_v53  ;;  %v4578_v6 = vpack.c.bf16 %v3963_v42, %v3961_v63  ;;  %v4434_v52 = vpack.c.bf16 %v3862_v44, %v3860_v41  ;;  %v4590_v53 = vpack.c.bf16 %v3975_v47, %v3973_v45  ;;  %v3994_v41 = vld [vmem:[%s7074_s5 + $0x4a8] sm:$0xff]  ;;  %v3996_v44 = vld [vmem:[%s7074_s5 + $0x4b8] sm:$0xff]  ;;  %v3993_v50 = vld [vmem:[%s7074_s5 + $0x4a0] sm:$0xff] }
 0x260   :  { %1860 = vmatmul.mubr.f32.gmra.mrb[36].mxu0 %v5879_v39  ;;  %2282 = vmatmul.mubr.f32.gmra.mrb[36].mxu1 %v5879_v39  ;;  %v3852_v39 = vld [vmem:[%s7073_s4 + $0x3c0] sm:$0xff]  ;;  %v4436_v18 = vpack.c.bf16 %v3867_v48, %v3865_v24  ;;  %v4438_v63 = vpack.c.bf16 %v3866_v55, %v3864_v54  ;;  %v4450_v45 = vpack.c.bf16 %v3878_v29, %v3876_v28  ;;  %v3882_v48 = vld [vmem:[%s7073_s4 + $0x4b0] sm:$0xff]  ;;  %v3998_v54 = vld [vmem:[%s7074_s5 + $0x4c8] sm:$0xff] }
 0x261   :  { %4419 = vmatpush1.bf16.msra.mxu0 %v4418_v58  ;;  %3888 = vmatprep.mubr.msk.f32.mxu0 %vm1681_vm5, %v6015_v3  ;;  %v4426_v21 = vpack.c.bf16 %v3854_v9, %v3852_v39  ;;  %v3979_v58 = vld [vmem:[%s7074_s5 + $0x430] sm:$0xff]  ;;  %v3986_v39 = vld [vmem:[%s7074_s5 + $0x468] sm:$0xff]  ;;  %v3988_v9 = vld [vmem:[%s7074_s5 + $0x478] sm:$0xff]  ;;  %v4608_v51 = vpack.c.bf16 %v3996_v44, %v3994_v41 }
 0x262   :  { %4575 = vmatpush1.bf16.msra.mxu1 %v4574_v59  ;;  %4421 = vmatprep.subr.bf16.mxu0 %v4420_v60  ;;  %v3869_v59 = vld [vmem:[%s7073_s4 + $0x448] sm:$0xff]  ;;  %v3871_v60 = vld [vmem:[%s7073_s4 + $0x458] sm:$0xff]  ;;  %v4600_v20 = vpack.c.bf16 %v3988_v9, %v3986_v39  ;;  %v3880_v24 = vld [vmem:[%s7073_s4 + $0x4a0] sm:$0xff] }
 0x263   :  { %4577 = vmatprep.subr.bf16.mxu1 %v4576_v0  ;;  %4001 = vmatprep.mubr.msk.f32.mxu1 %vm1681_vm5, %v6015_v3  ;;  %v3858_v3 = vld [vmem:[%s7073_s4 + $0x3f0] sm:$0xff]  ;;  %v4594_v0 = vpack.c.bf16 %v3979_v58, %v3977_v56  ;;  %v4440_v42 = vpack.c.bf16 %v3871_v60, %v3869_v59  ;;  %v4000_v55 = vld [vmem:[%s7074_s5 + $0x4d8] sm:$0xff]  ;;  %v4454_v56 = vpack.c.bf16 %v3882_v48, %v3880_v24  ;;  %v3884_v59 = vld [vmem:[%s7073_s4 + $0x4c0] sm:$0xff] }
 0x264   :  { %v4430_v32 = vpack.c.bf16 %v3858_v3, %v3856_v23  ;;  %v3990_v23 = vld [vmem:[%s7074_s5 + $0x488] sm:$0xff]  ;;  %v3992_v3 = vld [vmem:[%s7074_s5 + $0x498] sm:$0xff]  ;;  %v3886_v60 = vld [vmem:[%s7073_s4 + $0x4d0] sm:$0xff]  ;;  %v4612_v30 = vpack.c.bf16 %v4000_v55, %v3998_v54 }
 0x265   :  { %4423 = vmatpush1.bf16.msra.mxu0 %v4422_v5  ;;  %v3983_v5 = vld [vmem:[%s7074_s5 + $0x450] sm:$0xff]  ;;  %v4604_v13 = vpack.c.bf16 %v3992_v3, %v3990_v23  ;;  %v3997_v61 = vld [vmem:[%s7074_s5 + $0x4c0] sm:$0xff] }
 0x266   :  { %4579 = vmatpush1.bf16.msra.mxu1 %v4578_v6  ;;  %4425 = vmatprep.subr.bf16.mxu0 %v4424_v8  ;;  %v3873_v6 = vld [vmem:[%s7073_s4 + $0x468] sm:$0xff]  ;;  %v3875_v8 = vld [vmem:[%s7073_s4 + $0x478] sm:$0xff] }
 0x267   :  { %4581 = vmatprep.subr.bf16.mxu1 %v4580_v11  ;;  %v4598_v11 = vpack.c.bf16 %v3983_v5, %v3981_v2  ;;  %v4444_v12 = vpack.c.bf16 %v3875_v8, %v3873_v6 }
 0x269   :  { %4427 = vmatpush1.bf16.msra.mxu0 %v4426_v21  ;;  %v3987_v21 = vld [vmem:[%s7074_s5 + $0x470] sm:$0xff] }
 0x26a   :  { %4583 = vmatpush1.bf16.msra.mxu1 %v4582_v22  ;;  %4429 = vmatprep.subr.bf16.mxu0 %v4428_v15  ;;  %v3877_v22 = vld [vmem:[%s7073_s4 + $0x488] sm:$0xff]  ;;  %v3879_v15 = vld [vmem:[%s7073_s4 + $0x498] sm:$0xff] }
 0x26b   :  { %4585 = vmatprep.subr.bf16.mxu1 %v4584_v25  ;;  %v4602_v25 = vpack.c.bf16 %v3987_v21, %v3985_v17  ;;  %v4448_v26 = vpack.c.bf16 %v3879_v15, %v3877_v22 }
 0x26d   :  { %4431 = vmatpush1.bf16.msra.mxu0 %v4430_v32  ;;  %v3991_v32 = vld [vmem:[%s7074_s5 + $0x490] sm:$0xff] }
 0x26e   :  { %4587 = vmatpush1.bf16.msra.mxu1 %v4586_v35  ;;  %4433 = vmatprep.subr.bf16.mxu0 %v4432_v40  ;;  %v3881_v35 = vld [vmem:[%s7073_s4 + $0x4a8] sm:$0xff]  ;;  %v3883_v40 = vld [vmem:[%s7073_s4 + $0x4b8] sm:$0xff] }
 0x26f   :  { %4589 = vmatprep.subr.bf16.mxu1 %v4588_v46  ;;  %v4606_v46 = vpack.c.bf16 %v3991_v32, %v3989_v31  ;;  %v4452_v47 = vpack.c.bf16 %v3883_v40, %v3881_v35 }
 0x271   :  { %4435 = vmatpush1.bf16.msra.mxu0 %v4434_v52  ;;  %v3995_v52 = vld [vmem:[%s7074_s5 + $0x4b0] sm:$0xff] }
 0x272   :  { %4591 = vmatpush1.bf16.msra.mxu1 %v4590_v53  ;;  %4437 = vmatprep.subr.bf16.mxu0 %v4436_v18  ;;  %v3885_v53 = vld [vmem:[%s7073_s4 + $0x4c8] sm:$0xff]  ;;  %v3887_v18 = vld [vmem:[%s7073_s4 + $0x4d8] sm:$0xff] }
 0x273   :  { %4593 = vmatprep.subr.bf16.mxu1 %v4592_v57  ;;  %v4610_v57 = vpack.c.bf16 %v3995_v52, %v3993_v50  ;;  %v4456_v58 = vpack.c.bf16 %v3887_v18, %v3885_v53  ;;  %v4008_v52 = vld [vmem:[%s7077_s8 + $0x10] sm:$0xff]  ;;  %v2473_v53 = vld [vmem:[%s7077_s8 + $0x8] sm:$0x3]  ;;  %v4009_v18 = vld [vmem:[%s7077_s8 + $0x18] sm:$0x3] }
 0x275   :  { %4439 = vmatpush1.bf16.msra.mxu0 %v4438_v63  ;;  %v3999_v63 = vld [vmem:[%s7074_s5 + $0x4d0] sm:$0xff] }
 0x276   :  { %4595 = vmatpush1.bf16.msra.mxu1 %v4594_v0  ;;  %4441 = vmatprep.subr.bf16.mxu0 %v4440_v42  ;;  %v4458_v0 = vpack.c.bf16 %v3886_v60, %v3884_v59  ;;  %v4614_v42 = vpack.c.bf16 %v3999_v63, %v3997_v61 }
 0x277   :  { %4597 = vmatprep.subr.bf16.mxu1 %v4596_v4 }
 0x279   :  { %4443 = vmatpush1.bf16.msra.mxu0 %v4442_v10 }
 0x27a   :  { %4599 = vmatpush1.bf16.msra.mxu1 %v4598_v11  ;;  %4445 = vmatprep.subr.bf16.mxu0 %v4444_v12 }
 0x27b   :  { %4601 = vmatprep.subr.bf16.mxu1 %v4600_v20 }
 0x27d   :  { %4447 = vmatpush1.bf16.msra.mxu0 %v4446_v38 }
 0x27e   :  { %4603 = vmatpush1.bf16.msra.mxu1 %v4602_v25  ;;  %4449 = vmatprep.subr.bf16.mxu0 %v4448_v26 }
 0x27f   :  { %4605 = vmatprep.subr.bf16.mxu1 %v4604_v13 }
 0x281   :  { %4451 = vmatpush1.bf16.msra.mxu0 %v4450_v45 }
 0x282   :  { %4607 = vmatpush1.bf16.msra.mxu1 %v4606_v46  ;;  %4453 = vmatprep.subr.bf16.mxu0 %v4452_v47 }
 0x283   :  { %4609 = vmatprep.subr.bf16.mxu1 %v4608_v51  ;;  %v2472_v51 = vld [vmem:[%s7077_s8] sm:$0xff] }
 0x285   :  { %4455 = vmatpush1.bf16.msra.mxu0 %v4454_v56 }
 0x286   :  { %4611 = vmatpush1.bf16.msra.mxu1 %v4610_v57  ;;  %4457 = vmatprep.subr.bf16.mxu0 %v4456_v58 }
 0x287   :  { %4613 = vmatprep.subr.bf16.mxu1 %v4612_v30 }
 0x289   :  { %4459 = vmatpush1.bf16.msra.mxu0 %v4458_v0 }
 0x28a   :  { %4615 = vmatpush1.bf16.msra.mxu1 %v4614_v42 }
 0x28c   :  { %1993 = vmatmul.mubr.f32.vlgmr.msra.gmra.mrb[32].mxu0 %v6004_v62 }
 0x28d   :  { %2406 = vmatmul.mubr.f32.vlgmr.msra.gmra.mrb[32].mxu1 %v6004_v62  ;;  %3889 = vmatprep.mubr.msk.f32.mxu0 %vm1681_vm5, %v6043_v37  ;;  %v2430_v62 = vld [vmem:[%s7075_s6] sm:$0x3] }
 0x28e   :  { %4002 = vmatprep.mubr.msk.f32.mxu1 %vm1681_vm5, %v6043_v37  ;;  %v2439_v37 = vrot.slane %v2430_v62, %v902_v36 }
 0x290   :  { %1999 = vmatmul.mubr.f32.gmra.mrb[34].mxu0 %v6032_v19 }
 0x291   :  { %2412 = vmatmul.mubr.f32.gmra.mrb[34].mxu1 %v6032_v19  ;;  %3890 = vmatprep.mubr.msk.f32.mxu0 %vm1681_vm5, %v6071_v49  ;;  %v2435_v19 = vrot.slane %v2430_v62, %v898_v34 }
 0x292   :  { %4003 = vmatprep.mubr.msk.f32.mxu1 %vm1681_vm5, %v6071_v49 }
 0x294   :  { %2005 = vmatmul.mubr.f32.gmra.mrb[36].mxu0 %v6060_v43 }
 0x295   :  { %2418 = vmatmul.mubr.f32.gmra.mrb[36].mxu1 %v6060_v43  ;;  %2552 = vmatprep.mubr.f32.mxu0 %v4937_v7 }
 0x296   :  { %2638 = vmatprep.mubr.f32.mxu1 %v4937_v7 }
 0x35f   :  { %v1994_v27 = vpop.f32.mrb[32].mxu0 }
 0x360   :  { %v2442_v49 = vadd.f32 %v2435_v19, %v1994_v27  ;;  %v2407_v1 = vpop.f32.mrb[32].mxu1  ;;  %v1996_v2 = vpop.f32.mrb[33].mxu0 }
 0x361   :  { %v2454_v4 = vadd.f32 %v2435_v19, %v2407_v1  ;;  %v2443_v43 = vadd.f32 %v2439_v37, %v1996_v2  ;;  %v2409_v5 = vpop.f32.mrb[33].mxu1  ;;  %v2738_v1 = vld [vmem:[%s7079_s10] sm:$0xff]  ;;  %v2739_v2 = vld [vmem:[%s7079_s10 + $0x8] sm:$0xff] }
 0x362   :  { %v2448_v6 = vmax.f32 %v2442_v49, 0.0  ;;  %v2455_v8 = vadd.f32 %v2439_v37, %v2409_v5  ;;  %v4022_v49 = vld [vmem:[%s7079_s10 + $0xa8] sm:$0xff] }
 0x363   :  { %v2460_v39 = vmax.f32 %v2454_v4, 0.0  ;;  %v2449_v9 = vmax.f32 %v2443_v43, 0.0  ;;  %v2000_v10 = vpop.f32.mrb[34].mxu0  ;;  %v2655_v4 = vld [vmem:[%s7078_s9] sm:$0x3] }
 0x364   :  { %v2461_v11 = vmax.f32 %v2455_v8, 0.0  ;;  %v2444_v12 = vadd.f32 %v2435_v19, %v2000_v10  ;;  %v2413_v14 = vpop.f32.mrb[34].mxu1  ;;  %v2002_v16 = vpop.f32.mrb[35].mxu0  ;;  %v4017_v43 = vld [vmem:[%s7078_s9 + $0x2] sm:$0x3]  ;;  %v4667_v8 = vpack.c.bf16 %v2739_v2, %v2738_v1  ;;  %v2740_v10 = vld [vmem:[%s7079_s10 + $0x10] sm:$0xff] }
 0x365   :  { %v2466_v34 = vmax.f32 %v2448_v6, %v2460_v39  ;;  %v2456_v17 = vadd.f32 %v2435_v19, %v2413_v14  ;;  %v2445_v33 = vadd.f32 %v2439_v37, %v2002_v16  ;;  %v2415_v36 = vpop.f32.mrb[35].mxu1  ;;  %v4023_v6 = vld [vmem:[%s7079_s10 + $0xb0] sm:$0xff]  ;;  %v4939_v39 = vmov 0.0|0.0   ;;  %v4025_v14 = vld [vmem:[%s7079_s10 + $0xc0] sm:$0xff] }
 0x366   :  { %v2467_v20 = vmax.f32 %v2449_v9, %v2461_v11  ;;  %v2450_v21 = vmax.f32 %v2444_v12, 0.0  ;;  %v2457_v22 = vadd.f32 %v2439_v37, %v2415_v36  ;;  %v4024_v9 = vld [vmem:[%s7079_s10 + $0xb8] sm:$0xff]  ;;  %v4047_v2 = vld [vmem:[%s7079_s10 + $0x140] sm:$0xff] }
 0x367   :  { %v2462_v15 = vmax.f32 %v2456_v17, 0.0  ;;  %v2451_v23 = vmax.f32 %v2445_v33, 0.0  ;;  %v2006_v3 = vpop.f32.mrb[36].mxu0  ;;  %v2741_v11 = vld [vmem:[%s7079_s10 + $0x18] sm:$0xff]  ;;  %v4640_v12 = vpack.c.bf16 %v4024_v9, %v4023_v6  ;;  %v2742_v17 = vld [vmem:[%s7079_s10 + $0x20] sm:$0xff]  ;;  %v2743_v33 = vld [vmem:[%s7079_s10 + $0x28] sm:$0xff] }
 0x368   :  { %v2463_v38 = vmax.f32 %v2457_v22, 0.0  ;;  %v2446_v25 = vadd.f32 %v2435_v19, %v2006_v3  ;;  %v2419_v26 = vpop.f32.mrb[36].mxu1  ;;  %v2008_v28 = vpop.f32.mrb[37].mxu0  ;;  %v4670_v16 = vpack.c.bf16 %v2741_v11, %v2740_v10  ;;  %v4028_v22 = vld [vmem:[%s7079_s10 + $0xd8] sm:$0xff]  ;;  %v4049_v10 = vld [vmem:[%s7079_s10 + $0x150] sm:$0xff] }
 0x369   :  { %v2468_v29 = vmax.f32 %v2450_v21, %v2462_v15  ;;  %v2458_v31 = vadd.f32 %v2435_v19, %v2419_v26  ;;  %v2447_v13 = vadd.f32 %v2439_v37, %v2008_v28  ;;  %v2421_v32 = vpop.f32.mrb[37].mxu1  ;;  %v4673_v21 = vpack.c.bf16 %v2743_v33, %v2742_v17  ;;  %v2744_v15 = vld [vmem:[%s7079_s10 + $0x30] sm:$0xff]  ;;  %v4030_v26 = vld [vmem:[%s7079_s10 + $0xe8] sm:$0xff]  ;;  %v2746_v28 = vld [vmem:[%s7079_s10 + $0x40] sm:$0xff] }
 0x36a   :  { %v2469_v35 = vmax.f32 %v2451_v23, %v2463_v38  ;;  %v2452_v40 = vmax.f32 %v2446_v25, 0.0  ;;  %v2459_v41 = vadd.f32 %v2439_v37, %v2421_v32  ;;  %v4021_v37 = vld [vmem:[%s7079_s10 + $0xa0] sm:$0xff]  ;;  %v2745_v23 = vld [vmem:[%s7079_s10 + $0x38] sm:$0xff]  ;;  %v4073_v33 = vld [vmem:[%s7079_s10 + $0x1e8] sm:$0xff] }
 0x36b   :  { %v4618_v44 = vpack.c.bf16 %v2468_v29, %v2466_v34  ;;  %v2464_v45 = vmax.f32 %v2458_v31, 0.0  ;;  %v2453_v46 = vmax.f32 %v2447_v13, 0.0  ;;  %v4637_v5 = vpack.c.bf16 %v4022_v49, %v4021_v37  ;;  %v4026_v34 = vld [vmem:[%s7079_s10 + $0xc8] sm:$0xff]  ;;  %v4029_v38 = vld [vmem:[%s7079_s10 + $0xe0] sm:$0xff]  ;;  %v4031_v13 = vld [vmem:[%s7079_s10 + $0xf0] sm:$0xff] }
 0x36c   :  { %v2465_v47 = vmax.f32 %v2459_v41, 0.0  ;;  %v4616_v24 = vpack.c.bf16 %v2469_v35, %v2467_v20  ;;  %v4643_v36 = vpack.c.bf16 %v4026_v34, %v4025_v14  ;;  %v4027_v20 = vld [vmem:[%s7079_s10 + $0xd0] sm:$0xff]  ;;  %v4676_v25 = vpack.c.bf16 %v2745_v23, %v2744_v15  ;;  %v2747_v29 = vld [vmem:[%s7079_s10 + $0x48] sm:$0xff]  ;;  %v4032_v35 = vld [vmem:[%s7079_s10 + $0xf8] sm:$0xff] }
 0x36d   :  { %v2470_v48 = vmax.f32 %v2452_v40, %v2464_v45  ;;  %v4646_v3 = vpack.c.bf16 %v4028_v22, %v4027_v20  ;;  %v4649_v31 = vpack.c.bf16 %v4030_v26, %v4029_v38  ;;  %v4679_v32 = vpack.c.bf16 %v2747_v29, %v2746_v28  ;;  %v2748_v40 = vld [vmem:[%s7079_s10 + $0x50] sm:$0xff]  ;;  %v2749_v41 = vld [vmem:[%s7079_s10 + $0x58] sm:$0xff]  ;;  %v4033_v45 = vld [vmem:[%s7079_s10 + $0x100] sm:$0xff] }
 0x36e   :  { %v2471_v50 = vmax.f32 %v2453_v46, %v2465_v47  ;;  %4617 = vmatprep.subr.bf16.mxu0 %v4616_v24  ;;  %4621 = vmatprep.subr.bf16.mxu1 %v4616_v24  ;;  %v4682_v46 = vpack.c.bf16 %v2749_v41, %v2748_v40  ;;  %v4034_v47 = vld [vmem:[%s7079_s10 + $0x108] sm:$0xff]  ;;  %v2750_v24 = vld [vmem:[%s7079_s10 + $0x60] sm:$0xff]  ;;  %v2757_v37 = vld [vmem:[%s7079_s10 + $0x98] sm:$0xff] }
 0x36f   :  { %4619 = vmatpush1.bf16.msra.mxu0 %v4618_v44  ;;  %4623 = vmatpush1.bf16.msra.mxu1 %v4618_v44  ;;  %v4652_v44 = vpack.c.bf16 %v4032_v35, %v4031_v13  ;;  %v4050_v11 = vld [vmem:[%s7079_s10 + $0x158] sm:$0xff]  ;;  %v4052_v34 = vld [vmem:[%s7079_s10 + $0x168] sm:$0xff]  ;;  %v4072_v17 = vld [vmem:[%s7079_s10 + $0x1e0] sm:$0xff] }
 0x370   :  { %4004 = vmatprep.subr.msk.mxu0 %vm2481_vm6, %v2471_v50  ;;  %4010 = vmatprep.subr.msk.mxu1 %vm2481_vm6, %v2471_v50  ;;  %v4655_v50 = vpack.c.bf16 %v4034_v47, %v4033_v45  ;;  %v4706_v14 = vpack.c.bf16 %v4050_v11, %v4049_v10  ;;  %v4068_v20 = vld [vmem:[%s7078_s9 + $0x6] sm:$0x3]  ;;  %v4739_v22 = vpack.c.bf16 %v4073_v33, %v4072_v17  ;;  %v4054_v15 = vld [vmem:[%s7079_s10 + $0x178] sm:$0xff]  ;;  %v4074_v23 = vld [vmem:[%s7079_s10 + $0x1f0] sm:$0xff] }
 0x371   :  { %v4056_v28 = vld [vmem:[%s7079_s10 + $0x188] sm:$0xff]  ;;  %v4076_v29 = vld [vmem:[%s7079_s10 + $0x200] sm:$0xff]  ;;  %v4058_v40 = vld [vmem:[%s7079_s10 + $0x198] sm:$0xff] }
 0x372   :  { %v4078_v41 = vld [vmem:[%s7079_s10 + $0x210] sm:$0xff]  ;;  %v4097_v17 = vld [vmem:[%s7079_s10 + $0x280] sm:$0xff]  ;;  %v4098_v33 = vld [vmem:[%s7079_s10 + $0x288] sm:$0xff] }
 0x373   :  { %4005 = vmatpush1.msk.msra.mxu0 %vm2481_vm6, %v2470_v48  ;;  %4011 = vmatpush1.msk.msra.mxu1 %vm2481_vm6, %v2470_v48  ;;  %v2751_v48 = vld [vmem:[%s7079_s10 + $0x68] sm:$0xff]  ;;  %v4100_v19 = vld [vmem:[%s7079_s10 + $0x298] sm:$0xff] }
 0x374   :  { %4006 = vmatmul.mubr.msk.f32.vlgmr.msra.gmra.mrb[38].mxu0 %vm2474_vm7, %v2472_v51  ;;  %4012 = vmatmul.mubr.msk.f32.vlgmr.msra.gmra.mrb[38].mxu1 %vm2474_vm7, %v4008_v52  ;;  %v4035_v51 = vld [vmem:[%s7079_s10 + $0x110] sm:$0xff]  ;;  %v4685_v52 = vpack.c.bf16 %v2751_v48, %v2750_v24  ;;  %v4060_v24 = vld [vmem:[%s7079_s10 + $0x1a8] sm:$0xff]  ;;  %v4080_v48 = vld [vmem:[%s7079_s10 + $0x220] sm:$0xff] }
 0x375   :  { %2558 = vmatprep.mubr.f32.mxu0 %v4937_v7  ;;  %2644 = vmatprep.mubr.f32.mxu1 %v4937_v7 }
 0x378   :  { %4007 = vmatmul.mubr.msk.f32.gmra.mrb[40].mxu0 %vm2474_vm7, %v2473_v53  ;;  %4013 = vmatmul.mubr.msk.f32.gmra.mrb[40].mxu1 %vm2474_vm7, %v4009_v18  ;;  %v4036_v53 = vld [vmem:[%s7079_s10 + $0x118] sm:$0xff]  ;;  %v2752_v18 = vld [vmem:[%s7079_s10 + $0x70] sm:$0xff] }
 0x379   :  { %2731 = vmatprep.mubr.f32.mxu0 %v4937_v7  ;;  %2827 = vmatprep.mubr.f32.mxu1 %v4937_v7 }
 0x447   :  { %v2554_v54 = vpop.f32.mrb[38].mxu0  ;;  %v2640_v55 = vpop.f32.mrb[38].mxu1 }
 0x448   :  { %v2651_v56 = vmax.f32 %v2554_v54, %v2640_v55  ;;  %v2556_v57 = vpop.f32.mrb[39].mxu0  ;;  %v2642_v58 = vpop.f32.mrb[39].mxu1  ;;  %v2753_v54 = vld [vmem:[%s7079_s10 + $0x78] sm:$0xff]  ;;  %v4658_v55 = vpack.c.bf16 %v4036_v53, %v4035_v51 }
 0x449   :  { %v2652_v59 = vmax.f32 %v2556_v57, %v2642_v58  ;;  %v4688_v57 = vpack.c.bf16 %v2753_v54, %v2752_v18  ;;  %v4038_v58 = vld [vmem:[%s7079_s10 + $0x128] sm:$0xff]  ;;  %v4062_v18 = vld [vmem:[%s7079_s10 + $0x1b8] sm:$0xff]  ;;  %v4082_v54 = vld [vmem:[%s7079_s10 + $0x230] sm:$0xff] }
 0x44b   :  { %v2560_v60 = vpop.f32.mrb[40].mxu0  ;;  %v2646_v30 = vpop.f32.mrb[40].mxu1 }
 0x44c   :  { %v2653_v61 = vmax.f32 %v2560_v60, %v2646_v30  ;;  %v2562_v63 = vpop.f32.mrb[41].mxu0  ;;  %v2648_v0 = vpop.f32.mrb[41].mxu1  ;;  %v2755_v60 = vld [vmem:[%s7079_s10 + $0x88] sm:$0xff] }
 0x44d   :  { %v2654_v42 = vmax.f32 %v2562_v63, %v2648_v0  ;;  %v4040_v0 = vld [vmem:[%s7079_s10 + $0x138] sm:$0xff] }
 0x44e   :  { %v6574_v62 = vpack.c.bf16 %v2653_v61, %v2651_v56  ;;  %v4037_v56 = vld [vmem:[%s7079_s10 + $0x120] sm:$0xff]  ;;  %v4039_v61 = vld [vmem:[%s7079_s10 + $0x130] sm:$0xff] }
 0x44f   :  { %v6584_v27 = vpack.c.bf16 %v2654_v42, %v2652_v59  ;;  %v2754_v59 = vld [vmem:[%s7079_s10 + $0x80] sm:$0xff]  ;;  %v4661_v30 = vpack.c.bf16 %v4038_v58, %v4037_v56  ;;  %v2756_v42 = vld [vmem:[%s7079_s10 + $0x90] sm:$0xff]  ;;  %v4664_v49 = vpack.c.bf16 %v4040_v0, %v4039_v61 }
 0x450   :  { %v4691_v63 = vpack.c.bf16 %v2755_v60, %v2754_v59  ;;  %v4694_v1 = vpack.c.bf16 %v2757_v37, %v2756_v42  ;;  %v4064_v59 = vld [vmem:[%s7079_s10 + $0x1c8] sm:$0xff]  ;;  %v4084_v60 = vld [vmem:[%s7079_s10 + $0x240] sm:$0xff]  ;;  %v4066_v42 = vld [vmem:[%s7079_s10 + $0x1d8] sm:$0xff] }
 0x451   :  { %4626 = vmatprep.subr.msk.bf16.mxu0 %vm6577_vm9, %v6584_v27  ;;  %4632 = vmatprep.subr.msk.bf16.mxu1 %vm6577_vm9, %v6584_v27  ;;  %v4086_v37 = vld [vmem:[%s7079_s10 + $0x250] sm:$0xff] }
 0x452   :  { %4629 = vmatpush1.bf16.msk.msra.mxu0 %vm6577_vm9, %v6574_v62  ;;  %4635 = vmatpush1.bf16.msk.msra.mxu1 %vm6577_vm9, %v6574_v62 }
 0x453   :  { %4636 = vmatprep.subr.bf16.mxu0 %v4939_v39  ;;  %4666 = vmatprep.subr.bf16.mxu1 %v4939_v39 }
 0x455   :  { %4016 = vmatmul.mubr.msk.f32.vlgmr.msra.gmra.mrb[42].mxu0 %vm2656_vm10, %v2655_v4  ;;  %4020 = vmatmul.mubr.msk.f32.vlgmr.msra.gmra.mrb[42].mxu1 %vm2656_vm10, %v4017_v43  ;;  %v4048_v4 = vld [vmem:[%s7079_s10 + $0x148] sm:$0xff] }
 0x456   :  { %4638 = vmatpush1.bf16.msra.mxu0 %v4637_v5  ;;  %4668 = vmatpush1.bf16.msra.mxu1 %v4667_v8  ;;  %v4703_v6 = vpack.c.bf16 %v4048_v4, %v4047_v2  ;;  %v4088_v4 = vld [vmem:[%s7079_s10 + $0x260] sm:$0xff] }
 0x457   :  { %4639 = vmatprep.subr.bf16.mxu0 %v4939_v39  ;;  %4669 = vmatprep.subr.bf16.mxu1 %v4939_v39 }
 0x45a   :  { %4641 = vmatpush1.bf16.msra.mxu0 %v4640_v12  ;;  %4671 = vmatpush1.bf16.msra.mxu1 %v4670_v16  ;;  %v4043_v12 = vld [vmem:[%s7078_s9 + $0x4] sm:$0x3] }
 0x45b   :  { %4642 = vmatprep.subr.bf16.mxu0 %v4939_v39  ;;  %4672 = vmatprep.subr.bf16.mxu1 %v4939_v39  ;;  %v4051_v16 = vld [vmem:[%s7079_s10 + $0x160] sm:$0xff] }
 0x45e   :  { %4644 = vmatpush1.bf16.msra.mxu0 %v4643_v36  ;;  %4674 = vmatpush1.bf16.msra.mxu1 %v4673_v21  ;;  %v4709_v36 = vpack.c.bf16 %v4052_v34, %v4051_v16  ;;  %v4053_v21 = vld [vmem:[%s7079_s10 + $0x170] sm:$0xff] }
 0x45f   :  { %4645 = vmatprep.subr.bf16.mxu0 %v4939_v39  ;;  %4675 = vmatprep.subr.bf16.mxu1 %v4939_v39  ;;  %v4712_v38 = vpack.c.bf16 %v4054_v15, %v4053_v21  ;;  %v4775_v21 = vpack.c.bf16 %v4098_v33, %v4097_v17  ;;  %v4099_v15 = vld [vmem:[%s7079_s10 + $0x290] sm:$0xff]  ;;  %v3539_v33 = vld [vmem:[%s7081_s12 + $0x78] sm:$0xff] }
 0x462   :  { %4647 = vmatpush1.bf16.msra.mxu0 %v4646_v3  ;;  %4677 = vmatpush1.bf16.msra.mxu1 %v4676_v25  ;;  %v4075_v3 = vld [vmem:[%s7079_s10 + $0x1f8] sm:$0xff]  ;;  %v4055_v25 = vld [vmem:[%s7079_s10 + $0x180] sm:$0xff] }
 0x463   :  { %4648 = vmatprep.subr.bf16.mxu0 %v4939_v39  ;;  %4678 = vmatprep.subr.bf16.mxu1 %v4939_v39  ;;  %v4742_v26 = vpack.c.bf16 %v4075_v3, %v4074_v23  ;;  %v4715_v13 = vpack.c.bf16 %v4056_v28, %v4055_v25  ;;  %v4101_v23 = vld [vmem:[%s7079_s10 + $0x2a0] sm:$0xff]  ;;  %v4102_v3 = vld [vmem:[%s7079_s10 + $0x2a8] sm:$0xff]  ;;  %v4103_v25 = vld [vmem:[%s7079_s10 + $0x2b0] sm:$0xff] }
 0x466   :  { %4650 = vmatpush1.bf16.msra.mxu0 %v4649_v31  ;;  %4680 = vmatpush1.bf16.msra.mxu1 %v4679_v32  ;;  %v4077_v31 = vld [vmem:[%s7079_s10 + $0x208] sm:$0xff]  ;;  %v4057_v32 = vld [vmem:[%s7079_s10 + $0x190] sm:$0xff] }
 0x467   :  { %4651 = vmatprep.subr.bf16.mxu0 %v4939_v39  ;;  %4681 = vmatprep.subr.bf16.mxu1 %v4939_v39  ;;  %v4745_v35 = vpack.c.bf16 %v4077_v31, %v4076_v29  ;;  %v4718_v45 = vpack.c.bf16 %v4058_v40, %v4057_v32  ;;  %v4105_v29 = vld [vmem:[%s7079_s10 + $0x2c0] sm:$0xff]  ;;  %v4106_v31 = vld [vmem:[%s7079_s10 + $0x2c8] sm:$0xff]  ;;  %v4107_v32 = vld [vmem:[%s7079_s10 + $0x2d0] sm:$0xff] }
 0x46a   :  { %4653 = vmatpush1.bf16.msra.mxu0 %v4652_v44  ;;  %4683 = vmatpush1.bf16.msra.mxu1 %v4682_v46  ;;  %v4079_v44 = vld [vmem:[%s7079_s10 + $0x218] sm:$0xff]  ;;  %v4059_v46 = vld [vmem:[%s7079_s10 + $0x1a0] sm:$0xff] }
 0x46b   :  { %4654 = vmatprep.subr.bf16.mxu0 %v4939_v39  ;;  %4684 = vmatprep.subr.bf16.mxu1 %v4939_v39  ;;  %v4748_v47 = vpack.c.bf16 %v4079_v44, %v4078_v41  ;;  %v4721_v51 = vpack.c.bf16 %v4060_v24, %v4059_v46  ;;  %v4109_v41 = vld [vmem:[%s7079_s10 + $0x2e0] sm:$0xff]  ;;  %v4110_v44 = vld [vmem:[%s7079_s10 + $0x2e8] sm:$0xff]  ;;  %v4111_v46 = vld [vmem:[%s7079_s10 + $0x2f0] sm:$0xff] }
 0x46e   :  { %4656 = vmatpush1.bf16.msra.mxu0 %v4655_v50  ;;  %4686 = vmatpush1.bf16.msra.mxu1 %v4685_v52  ;;  %v4081_v50 = vld [vmem:[%s7079_s10 + $0x228] sm:$0xff]  ;;  %v4061_v52 = vld [vmem:[%s7079_s10 + $0x1b0] sm:$0xff] }
 0x46f   :  { %4657 = vmatprep.subr.bf16.mxu0 %v4939_v39  ;;  %4687 = vmatprep.subr.bf16.mxu1 %v4939_v39  ;;  %v4751_v53 = vpack.c.bf16 %v4081_v50, %v4080_v48  ;;  %v4724_v56 = vpack.c.bf16 %v4062_v18, %v4061_v52  ;;  %v4113_v48 = vld [vmem:[%s7079_s10 + $0x300] sm:$0xff]  ;;  %v4114_v50 = vld [vmem:[%s7079_s10 + $0x308] sm:$0xff]  ;;  %v4115_v52 = vld [vmem:[%s7079_s10 + $0x310] sm:$0xff] }
 0x472   :  { %4659 = vmatpush1.bf16.msra.mxu0 %v4658_v55  ;;  %4689 = vmatpush1.bf16.msra.mxu1 %v4688_v57  ;;  %v4083_v55 = vld [vmem:[%s7079_s10 + $0x238] sm:$0xff]  ;;  %v4063_v57 = vld [vmem:[%s7079_s10 + $0x1c0] sm:$0xff] }
 0x473   :  { %4660 = vmatprep.subr.bf16.mxu0 %v4939_v39  ;;  %4690 = vmatprep.subr.bf16.mxu1 %v4939_v39  ;;  %v4754_v58 = vpack.c.bf16 %v4083_v55, %v4082_v54  ;;  %v4727_v61 = vpack.c.bf16 %v4064_v59, %v4063_v57  ;;  %v3524_v54 = vld [vmem:[%s7081_s12] sm:$0xff]  ;;  %v3525_v55 = vld [vmem:[%s7081_s12 + $0x8] sm:$0xff] }
 0x474   :  { %v4805_v57 = vpack.c.bf16 %v3525_v55, %v3524_v54 }
 0x476   :  { %4662 = vmatpush1.bf16.msra.mxu0 %v4661_v30  ;;  %4692 = vmatpush1.bf16.msra.mxu1 %v4691_v63  ;;  %v4085_v30 = vld [vmem:[%s7079_s10 + $0x248] sm:$0xff]  ;;  %v4065_v63 = vld [vmem:[%s7079_s10 + $0x1d0] sm:$0xff] }
 0x477   :  { %4663 = vmatprep.subr.bf16.mxu0 %v4939_v39  ;;  %4693 = vmatprep.subr.bf16.mxu1 %v4939_v39  ;;  %v4757_v0 = vpack.c.bf16 %v4085_v30, %v4084_v60  ;;  %v3528_v60 = vld [vmem:[%s7081_s12 + $0x20] sm:$0xff]  ;;  %v3529_v30 = vld [vmem:[%s7081_s12 + $0x28] sm:$0xff] }
 0x47a   :  { %4665 = vmatpush1.bf16.msra.mxu0 %v4664_v49  ;;  %4695 = vmatpush1.bf16.msra.mxu1 %v4694_v1  ;;  %v4087_v49 = vld [vmem:[%s7079_s10 + $0x258] sm:$0xff]  ;;  %v4730_v1 = vpack.c.bf16 %v4066_v42, %v4065_v63  ;;  %v3530_v63 = vld [vmem:[%s7081_s12 + $0x30] sm:$0xff] }
 0x47b   :  { %4698 = vmatprep.subr.msk.bf16.mxu0 %vm6577_vm9, %v6584_v27  ;;  %4702 = vmatprep.subr.bf16.mxu1 %v4939_v39  ;;  %v4760_v2 = vpack.c.bf16 %v4087_v49, %v4086_v37  ;;  %v3532_v37 = vld [vmem:[%s7081_s12 + $0x40] sm:$0xff]  ;;  %v3533_v49 = vld [vmem:[%s7081_s12 + $0x48] sm:$0xff] }
 0x528   :  { %v2733_v43 = vpop.f32.mrb[42].mxu0  ;;  %v2829_v5 = vpop.f32.mrb[42].mxu1 }
 0x529   :  { %v2735_v8 = vpop.f32.mrb[43].mxu0  ;;  %v2831_v9 = vpop.f32.mrb[43].mxu1 }
 0x52a   :  { %4041 = vmatprep.mubr.msk.f32.mxu0 %vm2855_vm11, %v2831_v9  ;;  %4042 = vmatprep.mubr.msk.f32.mxu1 %vm2855_vm11, %v2735_v8 }
 0x52b   :  { %2924 = vmatmul.mubr.f32.vlgmr.msra.gmra.mrb[44].mxu0 %v2829_v5  ;;  %2997 = vmatmul.mubr.f32.vlgmr.msra.gmra.mrb[44].mxu1 %v2733_v43  ;;  %v4089_v43 = vld [vmem:[%s7079_s10 + $0x268] sm:$0xff] }
 0x52c   :  { %4701 = vmatpush1.bf16.msk.msra.mxu0 %vm6577_vm9, %v6574_v62  ;;  %4704 = vmatpush1.bf16.msra.mxu1 %v4703_v6  ;;  %v4763_v5 = vpack.c.bf16 %v4089_v43, %v4088_v4  ;;  %v4090_v6 = vld [vmem:[%s7079_s10 + $0x270] sm:$0xff]  ;;  %v3535_v4 = vld [vmem:[%s7081_s12 + $0x58] sm:$0xff] }
 0x52d   :  { %4734 = vmatprep.subr.msk.bf16.mxu0 %vm6577_vm9, %v6584_v27  ;;  %3071 = vmatprep.mubr.f32.mxu0 %v4937_v7 }
 0x52e   :  { %4705 = vmatprep.subr.bf16.mxu1 %v4939_v39 }
 0x52f   :  { %4046 = vmatmul.mubr.msk.f32.vlgmr.msra.gmra.mrb[46].mxu0 %vm2656_vm10, %v4043_v12 }
 0x530   :  { %4707 = vmatpush1.bf16.msra.mxu1 %v4706_v14  ;;  %4737 = vmatpush1.bf16.msk.msra.mxu0 %vm6577_vm9, %v6574_v62 }
 0x531   :  { %4708 = vmatprep.subr.bf16.mxu1 %v4939_v39  ;;  %3242 = vmatprep.mubr.f32.mxu0 %v4937_v7 }
 0x532   :  { %4738 = vmatprep.subr.bf16.mxu0 %v4939_v39 }
 0x533   :  { %4071 = vmatmul.mubr.msk.f32.vlgmr.msra.gmra.mrb[48].mxu0 %vm2656_vm10, %v4068_v20  ;;  %v4093_v20 = vld [vmem:[%s7078_s9 + $0x8] sm:$0x3] }
 0x534   :  { %4710 = vmatpush1.bf16.msra.mxu1 %v4709_v36  ;;  %4740 = vmatpush1.bf16.msra.mxu0 %v4739_v22 }
 0x535   :  { %4711 = vmatprep.subr.bf16.mxu1 %v4939_v39  ;;  %4741 = vmatprep.subr.bf16.mxu0 %v4939_v39 }
 0x538   :  { %4713 = vmatpush1.bf16.msra.mxu1 %v4712_v38  ;;  %4743 = vmatpush1.bf16.msra.mxu0 %v4742_v26  ;;  %v4781_v38 = vpack.c.bf16 %v4102_v3, %v4101_v23  ;;  %v4104_v26 = vld [vmem:[%s7079_s10 + $0x2b8] sm:$0xff] }
 0x539   :  { %4714 = vmatprep.subr.bf16.mxu1 %v4939_v39  ;;  %4744 = vmatprep.subr.bf16.mxu0 %v4939_v39  ;;  %v4784_v28 = vpack.c.bf16 %v4104_v26, %v4103_v25 }
 0x53c   :  { %4716 = vmatpush1.bf16.msra.mxu1 %v4715_v13  ;;  %4746 = vmatpush1.bf16.msra.mxu0 %v4745_v35  ;;  %v4787_v13 = vpack.c.bf16 %v4106_v31, %v4105_v29  ;;  %v4108_v35 = vld [vmem:[%s7079_s10 + $0x2d8] sm:$0xff] }
 0x53d   :  { %4717 = vmatprep.subr.bf16.mxu1 %v4939_v39  ;;  %4747 = vmatprep.subr.bf16.mxu0 %v4939_v39  ;;  %v4790_v40 = vpack.c.bf16 %v4108_v35, %v4107_v32 }
 0x540   :  { %4719 = vmatpush1.bf16.msra.mxu1 %v4718_v45  ;;  %4749 = vmatpush1.bf16.msra.mxu0 %v4748_v47  ;;  %v4793_v45 = vpack.c.bf16 %v4110_v44, %v4109_v41  ;;  %v4112_v47 = vld [vmem:[%s7079_s10 + $0x2f8] sm:$0xff] }
 0x541   :  { %4720 = vmatprep.subr.bf16.mxu1 %v4939_v39  ;;  %4750 = vmatprep.subr.bf16.mxu0 %v4939_v39  ;;  %v4796_v24 = vpack.c.bf16 %v4112_v47, %v4111_v46 }
 0x544   :  { %4722 = vmatpush1.bf16.msra.mxu1 %v4721_v51  ;;  %4752 = vmatpush1.bf16.msra.mxu0 %v4751_v53  ;;  %v4799_v51 = vpack.c.bf16 %v4114_v50, %v4113_v48  ;;  %v4116_v53 = vld [vmem:[%s7079_s10 + $0x318] sm:$0xff] }
 0x545   :  { %4723 = vmatprep.subr.bf16.mxu1 %v4939_v39  ;;  %4753 = vmatprep.subr.bf16.mxu0 %v4939_v39  ;;  %v4802_v18 = vpack.c.bf16 %v4116_v53, %v4115_v52 }
 0x548   :  { %4725 = vmatpush1.bf16.msra.mxu1 %v4724_v56  ;;  %4755 = vmatpush1.bf16.msra.mxu0 %v4754_v58  ;;  %v3526_v56 = vld [vmem:[%s7081_s12 + $0x10] sm:$0xff]  ;;  %v3527_v58 = vld [vmem:[%s7081_s12 + $0x18] sm:$0xff] }
 0x549   :  { %4726 = vmatprep.subr.bf16.mxu1 %v4939_v39  ;;  %4756 = vmatprep.subr.bf16.mxu0 %v4939_v39  ;;  %v4808_v59 = vpack.c.bf16 %v3527_v58, %v3526_v56 }
 0x54c   :  { %4728 = vmatpush1.bf16.msra.mxu1 %v4727_v61  ;;  %4758 = vmatpush1.bf16.msra.mxu0 %v4757_v0  ;;  %v4811_v61 = vpack.c.bf16 %v3529_v30, %v3528_v60  ;;  %v3531_v0 = vld [vmem:[%s7081_s12 + $0x38] sm:$0xff] }
 0x54d   :  { %4729 = vmatprep.subr.bf16.mxu1 %v4939_v39  ;;  %4759 = vmatprep.subr.bf16.mxu0 %v4939_v39  ;;  %v4814_v42 = vpack.c.bf16 %v3531_v0, %v3530_v63 }
 0x550   :  { %4731 = vmatpush1.bf16.msra.mxu1 %v4730_v1  ;;  %4761 = vmatpush1.bf16.msra.mxu0 %v4760_v2  ;;  %v4817_v1 = vpack.c.bf16 %v3533_v49, %v3532_v37  ;;  %v3534_v2 = vld [vmem:[%s7081_s12 + $0x50] sm:$0xff] }
 0x551   :  { %4770 = vmatprep.subr.msk.bf16.mxu1 %vm6577_vm9, %v6584_v27  ;;  %4762 = vmatprep.subr.bf16.mxu0 %v4939_v39  ;;  %v4091_v27 = vld [vmem:[%s7079_s10 + $0x278] sm:$0xff]  ;;  %v4820_v43 = vpack.c.bf16 %v3535_v4, %v3534_v2 }
 0x552   :  { %v4766_v8 = vpack.c.bf16 %v4091_v27, %v4090_v6 }
 0x554   :  { %4764 = vmatpush1.bf16.msra.mxu0 %v4763_v5 }
 0x555   :  { %4765 = vmatprep.subr.bf16.mxu0 %v4939_v39 }
 0x558   :  { %4767 = vmatpush1.bf16.msra.mxu0 %v4766_v8 }
 0x559   :  { %4804 = vmatprep.subr.bf16.mxu0 %v4939_v39 }
 0x5fe   :  { %v2925_v9 = vpop.f32.mrb[44].mxu0  ;;  %v2998_v10 = vpop.f32.mrb[44].mxu1 }
 0x5ff   :  { %v2927_v11 = vpop.f32.mrb[45].mxu0  ;;  %v6911_v12 = vadd.f32 %v2998_v10, %v2925_v9  ;;  %v3000_v14 = vpop.f32.mrb[45].mxu1 }
 0x602   :  { %v3073_v16 = vpop.f32.mrb[46].mxu0 }
 0x603   :  { %v3075_v34 = vpop.f32.mrb[47].mxu0 }
 0x604   :  { %4067 = vmatprep.mubr.msk.f32.mxu1 %vm2855_vm11, %v3075_v34  ;;  %v3537_v34 = vld [vmem:[%s7081_s12 + $0x68] sm:$0xff] }
 0x605   :  { %3167 = vmatmul.mubr.f32.vlgmr.msra.gmra.mrb[46].mxu1 %v3073_v16  ;;  %v3536_v16 = vld [vmem:[%s7081_s12 + $0x60] sm:$0xff] }
 0x606   :  { %4773 = vmatpush1.bf16.msk.msra.mxu1 %vm6577_vm9, %v6574_v62  ;;  %v3244_v36 = vpop.f32.mrb[48].mxu0  ;;  %3413 = vmatprep.mubr.f32.mxu1 %v4937_v7  ;;  %v4778_v62 = vpack.c.bf16 %v4100_v19, %v4099_v15  ;;  %v4823_v17 = vpack.c.bf16 %v3537_v34, %v3536_v16 }
 0x607   :  { %v3246_v22 = vpop.f32.mrb[49].mxu0  ;;  %4774 = vmatprep.subr.bf16.mxu1 %v4939_v39 }
 0x608   :  { %4092 = vmatprep.mubr.msk.f32.mxu0 %vm2855_vm11, %v3246_v22 }
 0x609   :  { %3338 = vmatmul.mubr.f32.vlgmr.msra.gmra.mrb[50].mxu0 %v3244_v36  ;;  %4096 = vmatmul.mubr.msk.f32.vlgmr.msra.gmra.mrb[48].mxu1 %vm2656_vm10, %v4093_v20 }
 0x60a   :  { %4776 = vmatpush1.bf16.msra.mxu1 %v4775_v21  ;;  %4806 = vmatpush3.bf16.msra.mxu0 %v4805_v57  ;;  %v4118_v21 = vld [vmem:[%s7080_s11] ss:$0 sm:$0xff] }
 0x60b   :  { %4777 = vmatprep.subr.bf16.mxu1 %v4939_v39  ;;  %4807 = vmatprep.subr.bf16.mxu0 %v4939_v39 }
 0x60c   :  { %4169 = vmatprep.mubr.msk.f32.mxu0 %vm4940_vm12, %v4937_v7 }
 0x60e   :  { %4779 = vmatpush1.bf16.msra.mxu1 %v4778_v62  ;;  %4809 = vmatpush3.bf16.msra.mxu0 %v4808_v59  ;;  %v4119_v62 = vld [vmem:[%s7082_s13] ss:$0 sm:$0xff] }
 0x60f   :  { %4780 = vmatprep.subr.bf16.mxu1 %v4939_v39  ;;  %4810 = vmatprep.subr.bf16.mxu0 %v4939_v39 }
 0x612   :  { %4782 = vmatpush1.bf16.msra.mxu1 %v4781_v38  ;;  %4812 = vmatpush3.bf16.msra.mxu0 %v4811_v61 }
 0x613   :  { %4783 = vmatprep.subr.bf16.mxu1 %v4939_v39  ;;  %4813 = vmatprep.subr.bf16.mxu0 %v4939_v39 }
 0x616   :  { %4785 = vmatpush1.bf16.msra.mxu1 %v4784_v28  ;;  %4815 = vmatpush3.bf16.msra.mxu0 %v4814_v42 }
 0x617   :  { %4786 = vmatprep.subr.bf16.mxu1 %v4939_v39  ;;  %4816 = vmatprep.subr.bf16.mxu0 %v4939_v39 }
 0x61a   :  { %4788 = vmatpush1.bf16.msra.mxu1 %v4787_v13  ;;  %4818 = vmatpush3.bf16.msra.mxu0 %v4817_v1 }
 0x61b   :  { %4789 = vmatprep.subr.bf16.mxu1 %v4939_v39  ;;  %4819 = vmatprep.subr.bf16.mxu0 %v4939_v39 }
 0x61e   :  { %4791 = vmatpush1.bf16.msra.mxu1 %v4790_v40  ;;  %4821 = vmatpush3.bf16.msra.mxu0 %v4820_v43 }
 0x61f   :  { %4792 = vmatprep.subr.bf16.mxu1 %v4939_v39  ;;  %4822 = vmatprep.subr.bf16.mxu0 %v4939_v39 }
 0x622   :  { %4794 = vmatpush1.bf16.msra.mxu1 %v4793_v45  ;;  %4824 = vmatpush3.bf16.msra.mxu0 %v4823_v17 }
 0x623   :  { %4795 = vmatprep.subr.bf16.mxu1 %v4939_v39  ;;  %4825 = vmatprep.subr.bf16.mxu0 %v4939_v39 }
 0x626   :  { %4797 = vmatpush1.bf16.msra.mxu1 %v4796_v24 }
 0x627   :  { %4798 = vmatprep.subr.bf16.mxu1 %v4939_v39 }
 0x62a   :  { %4800 = vmatpush1.bf16.msra.mxu1 %v4799_v51 }
 0x62b   :  { %4801 = vmatprep.subr.bf16.mxu1 %v4939_v39 }
 0x62e   :  { %4803 = vmatpush1.bf16.msra.mxu1 %v4802_v18 }
 0x6d8   :  { %v3168_v5 = vpop.f32.mrb[46].mxu1 }
 0x6d9   :  { %v3172_v6 = vadd.f32 %v3168_v5, %v6911_v12  ;;  %v3170_v27 = vpop.f32.mrb[47].mxu1  ;;  %v3538_v12 = vld [vmem:[%s7081_s12 + $0x70] sm:$0xff]  ;;  %s4941_s12 = smov [#allocation2]  }
 0x6da   :  { %v4826_v36 = vpack.c.bf16 %v3539_v33, %v3538_v12  ;;  %s3625_s5 = sshll.u32 %s4941_s12, 4  ;;  %s3626_s5 = int_to_ptr.vmem [resolvable:$true] %s3625_s5 }
 0x6db   :  { %s4913_s6 = scalar_lea.vmem %s3626_s5, 32  ;;  %p4918_p1 = scmp.lt.s32.totalorder %s3626_s5, %s3626_s5 }
 0x6dc   :  { %v3339_v8 = vpop.f32.mrb[50].mxu0  ;;  %v3415_v9 = vpop.f32.mrb[48].mxu1  ;;  %4827 = vmatpush3.bf16.msra.mxu0 %v4826_v36  ;;  %p4914_p0 = scmp.ne.s32.totalorder %s3626_s5, %s4913_s6  ;;  %p4919_p2 = scmp.lt.s32.totalorder %s4913_s6, %s4913_s6 }
 0x6dd   :  { %v3343_v10 = vadd.f32 %v3339_v8, %v3172_v6  ;;  %v3417_v11 = vpop.f32.mrb[49].mxu1  ;;  %v3341_v14 = vpop.f32.mrb[51].mxu0 }
 0x6de   :  { %4117 = vmatprep.mubr.msk.f32.mxu1 %vm2855_vm11, %v3417_v11  ;;  %p4920_p3 = por %p4919_p2, %p4918_p1 }
 0x6df   :  { %3509 = vmatmul.mubr.f32.vlgmr.msra.gmra.mrb[50].mxu1 %v3415_v9 }
 0x6e0   :  { %p4921_p4 = pnand %p4920_p3, %p4914_p0 }
 0x7b2   :  { %v3510_v20 = vpop.f32.mrb[50].mxu1 }
 0x7b3   :  { %v3514_v22 = vadd.f32 %v3510_v20, %v3343_v10  ;;  %v3512_v39 = vpop.f32.mrb[51].mxu1 }
 0x7b5   :  { %v3522_v15 = vadd.f32 %v4118_v21, %v3514_v22 }
 0x7b7   :  { %v3523_v19 = vmax.f32 %v3522_v15, 0.0 }
 0x7b9   :  { %4170 = vmatmul.mubr.f32.vlgmr.msra.gmra.mrb[52].mxu0 %v3523_v19 }
 0x88c   :  { %v3613_v23 = vpop.f32.mrb[52].mxu0 }
 0x88d   :  { %v3614_v3 = vadd.f32 %v4119_v62, %v3613_v23  ;;  %v4171_v7 = vpop.f32.mrb[53].mxu0 }
 0x88f   :  { %3618 = vst.msk [vmem:[#allocation2] sm:$0x3] %vm3617_vm13, %v3614_v3 }
 0x890   :  { %4924 = shalt.err (!%p4921_p4)
}
 0x891   :  { %s4925_s2 = scalar_lea.hbm %s7083_s14, 32 }
 0x892   :  { %p4926_p5 = scmp.ne.s32.totalorder %s7083_s14, %s4925_s2  ;;  %p4929_p6 = scmp.lt.u32.totalorder %s4925_s2, %s7083_s14 }
 0x894   :  { %p4931_p7 = pnand %p4929_p6, %p4926_p5 }
 0x896   :  { %4934 = shalt.err (!%p4931_p7)
}
 0x897   :  { %3628 = dma.vmem_to_hbm [thread:$0]  %s3626_s5, 32, %s7083_s14, [#allocation3]  }
 0x898   :  { %4935 = dma.done.wait [#allocation3], 32  }
 0x899   :  { %4936 = vsyncadd [#allocation3], 4294967264 }
 0x89a   :  { %3632 = vsyncpa [#allocation3], 1 }

</bundles_post_ra>
